<compile_context>
chip_gen: v5e
topology: v5e:2x2
jax: 0.10.0
libtpu: 0.0.40
codegen_flags: <defaults>
</compile_context>

<pallas_src>
import functools

import jax
import jax.numpy as jnp
from jax import lax
from jax.experimental import pallas as pl
from jax.experimental.pallas import tpu as pltpu

EPS = 1e-5
LANE = 128
_VMEM_LIMIT = 48 * 1024 * 1024   # <= physical VMEM on v5e/v6e/v7x (v7x = 64 MiB)


def _round_up(x, m):
    return (x + m - 1) // m * m


def _stat_rows(y):
    """Pack per-channel sum / sum-of-squares into one lane-dense (8, C) tile."""
    s = jnp.sum(y, axis=0, keepdims=True)
    sq = jnp.sum(y * y, axis=0, keepdims=True)
    row = lax.broadcasted_iota(jnp.int32, (8, y.shape[-1]), 0)
    return jnp.where(row == 0, s, jnp.where(row == 1, sq, 0.0))


# ---------------------------------------------------------------------------
# Kernels
# ---------------------------------------------------------------------------
def stage1_kernel(x_ref, w1_ref, y1_ref, st_ref):
    # conv1 (1x1) as an MXU matmul: bf16 operands, f32 accumulation.
    x = x_ref[...].astype(jnp.bfloat16)
    y = jnp.dot(x, w1_ref[...], preferred_element_type=jnp.float32)
    y1_ref[...] = y
    st_ref[...] = _stat_rows(y)            # partial BN1 stats for this tile


def stage2_kernel(y1_ref, sc1_ref, b1_ref, w2_ref, y2_ref, st_ref, pad_ref,
                  *, H, W, d):
    # Fused: bn1 (folded scale/bias) + relu + zero-pad + 3x3 dilated conv with
    # the 9 taps folded into ONE long-K matmul + partial BN2 stats.
    Pp = y1_ref.shape[-1]
    HW = H * W

    a1 = jnp.maximum(y1_ref[...] * sc1_ref[...] + b1_ref[...], 0.0)   # f32
    pad_ref[...] = jnp.zeros(pad_ref.shape, pad_ref.dtype)
    pad_ref[pl.ds(d, H), pl.ds(d, W), :] = (
        a1.reshape(H, W, Pp).astype(pad_ref.dtype))                   # bf16

    # im2col entirely in VMEM: 9 dilated shifts concatenated along the
    # contraction axis -> a single (HW, 9*Pp) @ (9*Pp, Pp) MXU matmul.
    cols = []
    for kh in range(3):
        for kw in range(3):
            cols.append(
                pad_ref[pl.ds(kh * d, H), pl.ds(kw * d, W), :].reshape(HW, Pp))
    patches = jnp.concatenate(cols, axis=-1)
    y2 = jnp.dot(patches, w2_ref[...], preferred_element_type=jnp.float32)

    y2_ref[...] = y2
    st_ref[...] = _stat_rows(y2)


def stage3_kernel(y2_ref, sc2_ref, b2_ref, w3_ref, y3_ref, st_ref):
    # Fused: bn2 (folded) + relu + conv3 (1x1) + partial BN3 stats.
    a2 = jnp.maximum(y2_ref[...] * sc2_ref[...] + b2_ref[...], 0.0)
    y3 = jnp.dot(a2.astype(jnp.bfloat16), w3_ref[...],
                 preferred_element_type=jnp.float32)
    y3_ref[...] = y3
    st_ref[...] = _stat_rows(y3)


def stage4_kernel(y3_ref, sc3_ref, b3_ref, res_ref, o_ref):
    # bn3 (folded) + residual add + relu.
    o_ref[...] = jnp.maximum(
        y3_ref[...] * sc3_ref[...] + b3_ref[...] + res_ref[...], 0.0)


# ---------------------------------------------------------------------------
# Wrapper
# ---------------------------------------------------------------------------
def _compiler_params():
    return pltpu.CompilerParams(dimension_semantics=("parallel",),
                                vmem_limit_bytes=_VMEM_LIMIT)


def _finalize_bn(partial_stats, gamma, beta, m):
    """Cross-tile reduce of (sum, sumsq) rows -> folded BN scale / bias."""
    c = partial_stats.shape[-1]
    part = partial_stats.reshape(-1, 8, c)
    s = jnp.sum(part[:, 0, :], axis=0)
    sq = jnp.sum(part[:, 1, :], axis=0)
    mu = s / m
    var = jnp.maximum(sq / m - mu * mu, 0.0)   # single-pass, biased (training BN)
    scale = gamma * lax.rsqrt(var + EPS)       # (1, C)
    bias = beta - mu * scale                   # (1, C)
    return scale, bias


@functools.partial(jax.jit, static_argnames=("dilation",))
def bottleneck_forward(x_nchw, params, dilation=2):
    N, Cin, H, W = x_nchw.shape
    M = N * H * W
    HW = H * W
    d = dilation
    Pp = params["w1"].shape[1]        # padded planes (multiple of 128)
    Cout = params["w3"].shape[1]      # == inplanes (identity residual)
    assert Cout == Cin and Cin % LANE == 0 and HW % 8 == 0

    # Row tiling over M = N*H*W.  The per-step working set (~1 MB) stays far
    # below v7x's 64 MiB VMEM; the single grid axis is "parallel" so the v7x
    # megacore shards it across both TensorCores.
    tile_m = 256
    while M % tile_m:
        tile_m //= 2
    nt = M // tile_m

    # NCHW -> channels-last flattened (M, Cin) (layout glue only).
    x_flat = jnp.transpose(x_nchw, (0, 2, 3, 1)).reshape(M, Cin)

    # ---- stage 1: conv1 (1x1) + partial BN1 stats --------------------------
    y1, st1 = pl.pallas_call(
        stage1_kernel,
        grid=(nt,),
        in_specs=[pl.BlockSpec((tile_m, Cin), lambda i: (i, 0)),
                  pl.BlockSpec((Cin, Pp), lambda i: (0, 0))],
        out_specs=[pl.BlockSpec((tile_m, Pp), lambda i: (i, 0)),
                   pl.BlockSpec((8, Pp), lambda i: (i, 0))],
        out_shape=[jax.ShapeDtypeStruct((M, Pp), jnp.float32),
                   jax.ShapeDtypeStruct((nt * 8, Pp), jnp.float32)],
        compiler_params=_compiler_params(),
    )(x_flat, params["w1"])
    scale1, bias1 = _finalize_bn(st1, params["g1"], params["b1"], M)

    # ---- stage 2: bn1+relu fused with 3x3 dilated conv + partial BN2 stats -
    Hp, Wp = H + 2 * d, W + 2 * d
    y2, st2 = pl.pallas_call(
        functools.partial(stage2_kernel, H=H, W=W, d=d),
        grid=(N,),
        in_specs=[pl.BlockSpec((HW, Pp), lambda n: (n, 0)),
                  pl.BlockSpec((1, Pp), lambda n: (0, 0)),
                  pl.BlockSpec((1, Pp), lambda n: (0, 0)),
                  pl.BlockSpec((9 * Pp, Pp), lambda n: (0, 0))],
        out_specs=[pl.BlockSpec((HW, Pp), lambda n: (n, 0)),
                   pl.BlockSpec((8, Pp), lambda n: (n, 0))],
        out_shape=[jax.ShapeDtypeStruct((M, Pp), jnp.float32),
                   jax.ShapeDtypeStruct((N * 8, Pp), jnp.float32)],
        scratch_shapes=[pltpu.VMEM((Hp, Wp, Pp), jnp.bfloat16)],
        compiler_params=_compiler_params(),
    )(y1, scale1, bias1, params["w2"])
    scale2, bias2 = _finalize_bn(st2, params["g2"], params["b2"], M)

    # ---- stage 3: bn2+relu fused with conv3 (1x1) + partial BN3 stats ------
    y3, st3 = pl.pallas_call(
        stage3_kernel,
        grid=(nt,),
        in_specs=[pl.BlockSpec((tile_m, Pp), lambda i: (i, 0)),
                  pl.BlockSpec((1, Pp), lambda i: (0, 0)),
                  pl.BlockSpec((1, Pp), lambda i: (0, 0)),
                  pl.BlockSpec((Pp, Cout), lambda i: (0, 0))],
        out_specs=[pl.BlockSpec((tile_m, Cout), lambda i: (i, 0)),
                   pl.BlockSpec((8, Cout), lambda i: (i, 0))],
        out_shape=[jax.ShapeDtypeStruct((M, Cout), jnp.float32),
                   jax.ShapeDtypeStruct((nt * 8, Cout), jnp.float32)],
        compiler_params=_compiler_params(),
    )(y2, scale2, bias2, params["w3"])
    scale3, bias3 = _finalize_bn(st3, params["g3"], params["b3"], M)

    # ---- stage 4: bn3 (folded) + residual add + relu -----------------------
    # TODO(synk): input_output_aliases={3: 0} could reuse x_flat's HBM buffer.
    out_flat = pl.pallas_call(
        stage4_kernel,
        grid=(nt,),
        in_specs=[pl.BlockSpec((tile_m, Cout), lambda i: (i, 0)),
                  pl.BlockSpec((1, Cout), lambda i: (0, 0)),
                  pl.BlockSpec((1, Cout), lambda i: (0, 0)),
                  pl.BlockSpec((tile_m, Cout), lambda i: (i, 0))],
        out_specs=pl.BlockSpec((tile_m, Cout), lambda i: (i, 0)),
        out_shape=jax.ShapeDtypeStruct((M, Cout), jnp.float32),
        compiler_params=_compiler_params(),
    )(y3, scale3, bias3, x_flat)

    # (M, Cout) -> NCHW.
    return jnp.transpose(out_flat.reshape(N, H, W, Cout), (0, 3, 1, 2))


# ---------------------------------------------------------------------------
# Weight re-layout (PyTorch OIHW -> kernel matmul layout)
# ---------------------------------------------------------------------------
def make_params(w1_t, w2_t, w3_t, g1, b1, g2, b2, g3, b3):
    """1x1 convs -> (Cin, Cout) matmuls; 3x3 conv -> one folded (9*Pp, Pp)
    matrix; 'planes' zero-padded to a multiple of 128 for lane density; all
    matmul weights pre-cast to bf16 (MXU native)."""
    planes, inplanes = w1_t.shape[0], w1_t.shape[1]
    outplanes = w3_t.shape[0]
    Pp = _round_up(planes, LANE)
    assert inplanes % LANE == 0 and outplanes % LANE == 0

    w1 = jnp.transpose(w1_t[:, :, 0, 0])                    # (Cin, planes)
    w1 = jnp.pad(w1, ((0, 0), (0, Pp - planes)))
    w2 = jnp.transpose(w2_t, (2, 3, 1, 0)).reshape(9, planes, planes)
    w2 = jnp.pad(w2, ((0, 0), (0, Pp - planes), (0, Pp - planes)))
    w2 = w2.reshape(9 * Pp, Pp)                              # folded taps
    w3 = jnp.transpose(w3_t[:, :, 0, 0])                     # (planes, Cout)
    w3 = jnp.pad(w3, ((0, Pp - planes), (0, 0)))

    def vec(v, c):
        return jnp.pad(v, (0, c - v.shape[0])).reshape(1, c).astype(jnp.float32)

    return {
        "w1": w1.astype(jnp.bfloat16),
        "w2": w2.astype(jnp.bfloat16),
        "w3": w3.astype(jnp.bfloat16),
        "g1": vec(g1, Pp), "b1": vec(b1, Pp),
        "g2": vec(g2, Pp), "b2": vec(b2, Pp),
        "g3": vec(g3, outplanes), "b3": vec(b3, outplanes),
    }


# ---------------------------------------------------------------------------
# Pure-JAX reference (mirrors the PyTorch module, NCHW / OIHW)
# ---------------------------------------------------------------------------
def _conv(x, w, dil, pad):
    return lax.conv_general_dilated(
        x, w, window_strides=(1, 1), padding=[(pad, pad), (pad, pad)],
        rhs_dilation=(dil, dil), dimension_numbers=("NCHW", "OIHW", "NCHW"),
        precision=lax.Precision.HIGHEST)


def _bn(x, g, b):
    mu = jnp.mean(x, axis=(0, 2, 3), keepdims=True)
    var = jnp.mean(jnp.square(x - mu), axis=(0, 2, 3), keepdims=True)
    return ((x - mu) * lax.rsqrt(var + EPS) * g.reshape(1, -1, 1, 1)
            + b.reshape(1, -1, 1, 1))


def reference_forward(x, w1_t, w2_t, w3_t, g1, b1, g2, b2, g3, b3, dilation,
                      quantize_conv_inputs=False):
    """With quantize_conv_inputs=True, conv operands are rounded to bf16 first;
    this mirrors the kernel exactly (bf16 MXU operands, f32 accumulation)."""
    q = ((lambda a: a.astype(jnp.bfloat16).astype(jnp.float32))
         if quantize_conv_inputs else (lambda a: a))
    out = jax.nn.relu(_bn(_conv(q(x), q(w1_t), 1, 0), g1, b1))
    out = jax.nn.relu(_bn(_conv(q(out), q(w2_t), dilation, dilation), g2, b2))
    out = _bn(_conv(q(out), q(w3_t), 1, 0), g3, b3)
    return jax.nn.relu(out + x)


# ---------------------------------------------------------------------------
if __name__ == "__main__":
    # Small, lane-aligned shapes: batch=2, inplanes=128, planes=32
    # (expansion 4 -> 128 == inplanes so downsample=None), 16x16, dilation=2.
    N, H, W = 2, 16, 16
    inplanes, planes, dilation = 128, 32, 2
    outplanes = planes * 4
    assert outplanes == inplanes          # identity residual path

    key = jax.random.PRNGKey(0)
    kx, k1, k2, k3 = jax.random.split(key, 4)
    x = jax.random.normal(kx, (N, inplanes, H, W), dtype=jnp.float32)

    # Conv weights in PyTorch (O, I, kH, kW) layout; BN affine = default init.
    w1_t = jax.random.normal(k1, (planes, inplanes, 1, 1), jnp.float32) * 0.1
    w2_t = jax.random.normal(k2, (planes, planes, 3, 3), jnp.float32) * 0.1
    w3_t = jax.random.normal(k3, (outplanes, planes, 1, 1), jnp.float32) * 0.1
    g1 = jnp.ones((planes,), jnp.float32); b1 = jnp.zeros((planes,), jnp.float32)
    g2 = jnp.ones((planes,), jnp.float32); b2 = jnp.zeros((planes,), jnp.float32)
    g3 = jnp.ones((outplanes,), jnp.float32); b3 = jnp.zeros((outplanes,), jnp.float32)

    params = make_params(w1_t, w2_t, w3_t, g1, b1, g2, b2, g3, b3)

    out = jax.block_until_ready(bottleneck_forward(x, params, dilation=dilation))
    assert out.shape == (N, outplanes, H, W), out.shape

    # Main check: reference with bf16-rounded conv operands (exactly what the
    # bf16 MXU path computes), all other math in f32.
    ref_q = reference_forward(x, w1_t, w2_t, w3_t, g1, b1, g2, b2, g3, b3,
                              dilation, quantize_conv_inputs=True)
    assert jnp.allclose(out, ref_q, atol=3e-2, rtol=3e-2), (
        float(jnp.max(jnp.abs(out - ref_q))))

    # Coarse fidelity check vs. the full-f32 module forward.  Training-mode BN
    # renormalizes every layer, so bf16 operand rounding (~2^-8) appears as
    # ~1e-2-scale absolute differences here (as anticipated by the perf review).
    ref = reference_forward(x, w1_t, w2_t, w3_t, g1, b1, g2, b2, g3, b3,
                            dilation, quantize_conv_inputs=False)
    assert jnp.allclose(out, ref, atol=1.5e-1, rtol=1.5e-1), (
        float(jnp.max(jnp.abs(out - ref))))

    print("KERNEL_OK")
</pallas_src>

<mosaic_0001>
module attributes {stable_mosaic.version = 11 : i64} {
  func.func @stage4_kernel(%arg0: i32, %arg1: memref<256x128xf32, #tpu.memory_space<vmem>>, %arg2: memref<1x128xf32, #tpu.memory_space<vmem>>, %arg3: memref<1x128xf32, #tpu.memory_space<vmem>>, %arg4: memref<256x128xf32, #tpu.memory_space<vmem>>, %arg5: memref<256x128xf32, #tpu.memory_space<vmem>>) attributes {dimension_semantics = [#tpu.dimension_semantics<parallel>], iteration_bounds = array<i64: 2>, scalar_prefetch = 0 : i64, scratch_operands = 0 : i64, tpu.core_type = #tpu.core_type<tc>, window_params = [{transform_indices = @transform_0, window_bounds = array<i64: 256, 128>}, {pipeline_mode = #tpu.pipeline_mode<synchronous>, transform_indices = @transform_1, window_bounds = array<i64: 1, 128>}, {pipeline_mode = #tpu.pipeline_mode<synchronous>, transform_indices = @transform_2, window_bounds = array<i64: 1, 128>}, {transform_indices = @transform_3, window_bounds = array<i64: 256, 128>}, {transform_indices = @transform_4, window_bounds = array<i64: 256, 128>}]} {
    %c0 = arith.constant 0 : index
    %c0_0 = arith.constant 0 : index
    %0 = vector.load %arg1[%c0, %c0_0] : memref<256x128xf32, #tpu.memory_space<vmem>>, vector<256x128xf32>
    %c0_1 = arith.constant 0 : index
    %c0_2 = arith.constant 0 : index
    %1 = vector.load %arg2[%c0_1, %c0_2] : memref<1x128xf32, #tpu.memory_space<vmem>>, vector<1x128xf32>
    %2 = vector.broadcast %1 : vector<1x128xf32> to vector<256x128xf32>
    %3 = arith.mulf %0, %2 : vector<256x128xf32>
    %c0_3 = arith.constant 0 : index
    %c0_4 = arith.constant 0 : index
    %4 = vector.load %arg3[%c0_3, %c0_4] : memref<1x128xf32, #tpu.memory_space<vmem>>, vector<1x128xf32>
    %5 = vector.broadcast %4 : vector<1x128xf32> to vector<256x128xf32>
    %6 = arith.addf %3, %5 : vector<256x128xf32>
    %c0_5 = arith.constant 0 : index
    %c0_6 = arith.constant 0 : index
    %7 = vector.load %arg4[%c0_5, %c0_6] : memref<256x128xf32, #tpu.memory_space<vmem>>, vector<256x128xf32>
    %8 = arith.addf %6, %7 : vector<256x128xf32>
    %cst = arith.constant 0.000000e+00 : f32
    %9 = vector.broadcast %cst : f32 to vector<256x128xf32>
    %10 = arith.maximumf %8, %9 : vector<256x128xf32>
    %c0_7 = arith.constant 0 : index
    %c0_8 = arith.constant 0 : index
    %11 = vector.load %arg5[%c0_7, %c0_8] : memref<256x128xf32, #tpu.memory_space<vmem>>, vector<256x128xf32>
    tpu.vector_store %arg5[%c0_7, %c0_8], %10 {strides = array<i32>} : memref<256x128xf32, #tpu.memory_space<vmem>>, vector<256x128xf32>,
    return
  }
  func.func @transform_0(%arg0: i32) -> (i32, i32) {
    %c0_i32 = arith.constant 0 : i32
    %c0_i32_0 = arith.constant 0 : i32
    return %arg0, %c0_i32 : i32, i32
  }
  func.func @transform_1(%arg0: i32) -> (i32, i32) {
    %c0_i32 = arith.constant 0 : i32
    %c0_i32_0 = arith.constant 0 : i32
    %c0_i32_1 = arith.constant 0 : i32
    return %c0_i32, %c0_i32_0 : i32, i32
  }
  func.func @transform_2(%arg0: i32) -> (i32, i32) {
    %c0_i32 = arith.constant 0 : i32
    %c0_i32_0 = arith.constant 0 : i32
    %c0_i32_1 = arith.constant 0 : i32
    return %c0_i32, %c0_i32_0 : i32, i32
  }
  func.func @transform_3(%arg0: i32) -> (i32, i32) {
    %c0_i32 = arith.constant 0 : i32
    %c0_i32_0 = arith.constant 0 : i32
    return %arg0, %c0_i32 : i32, i32
  }
  func.func @transform_4(%arg0: i32) -> (i32, i32) {
    %c0_i32 = arith.constant 0 : i32
    %c0_i32_0 = arith.constant 0 : i32
    return %arg0, %c0_i32 : i32, i32
  }
}

module attributes {stable_mosaic.version = 11 : i64} {
  func.func @stage2_kernel(%arg0: i32, %arg1: memref<256x128xf32, #tpu.memory_space<vmem>>, %arg2: memref<1x128xf32, #tpu.memory_space<vmem>>, %arg3: memref<1x128xf32, #tpu.memory_space<vmem>>, %arg4: memref<1152x128xbf16, #tpu.memory_space<vmem>>, %arg5: memref<256x128xf32, #tpu.memory_space<vmem>>, %arg6: memref<8x128xf32, #tpu.memory_space<vmem>>, %arg7: memref<20x20x128xbf16, #tpu.memory_space<vmem>>) attributes {dimension_semantics = [#tpu.dimension_semantics<parallel>], iteration_bounds = array<i64: 2>, scalar_prefetch = 0 : i64, scratch_operands = 1 : i64, tpu.core_type = #tpu.core_type<tc>, window_params = [{transform_indices = @transform_0, window_bounds = array<i64: 256, 128>}, {pipeline_mode = #tpu.pipeline_mode<synchronous>, transform_indices = @transform_1, window_bounds = array<i64: 1, 128>}, {pipeline_mode = #tpu.pipeline_mode<synchronous>, transform_indices = @transform_2, window_bounds = array<i64: 1, 128>}, {pipeline_mode = #tpu.pipeline_mode<synchronous>, transform_indices = @transform_3, window_bounds = array<i64: 1152, 128>}, {transform_indices = @transform_4, window_bounds = array<i64: 256, 128>}, {transform_indices = @transform_5, window_bounds = array<i64: 8, 128>}]} {
    %c0 = arith.constant 0 : index
    %c0_0 = arith.constant 0 : index
    %0 = vector.load %arg1[%c0, %c0_0] : memref<256x128xf32, #tpu.memory_space<vmem>>, vector<256x128xf32>
    %c0_1 = arith.constant 0 : index
    %c0_2 = arith.constant 0 : index
    %1 = vector.load %arg2[%c0_1, %c0_2] : memref<1x128xf32, #tpu.memory_space<vmem>>, vector<1x128xf32>
    %2 = vector.broadcast %1 : vector<1x128xf32> to vector<256x128xf32>
    %3 = arith.mulf %0, %2 : vector<256x128xf32>
    %c0_3 = arith.constant 0 : index
    %c0_4 = arith.constant 0 : index
    %4 = vector.load %arg3[%c0_3, %c0_4] : memref<1x128xf32, #tpu.memory_space<vmem>>, vector<1x128xf32>
    %5 = vector.broadcast %4 : vector<1x128xf32> to vector<256x128xf32>
    %6 = arith.addf %3, %5 : vector<256x128xf32>
    %cst = arith.constant 0.000000e+00 : f32
    %7 = vector.broadcast %cst : f32 to vector<256x128xf32>
    %8 = arith.maximumf %6, %7 : vector<256x128xf32>
    %cst_5 = arith.constant 0.000000e+00 : bf16
    %9 = vector.broadcast %cst_5 : bf16 to vector<20x20x128xbf16>
    %c0_6 = arith.constant 0 : index
    %c0_7 = arith.constant 0 : index
    %c0_8 = arith.constant 0 : index
    %10 = vector.load %arg7[%c0_6, %c0_7, %c0_8] : memref<20x20x128xbf16, #tpu.memory_space<vmem>>, vector<20x20x128xbf16>
    tpu.vector_store %arg7[%c0_6, %c0_7, %c0_8], %9 {strides = array<i32>} : memref<20x20x128xbf16, #tpu.memory_space<vmem>>, vector<20x20x128xbf16>,
    %11 = vector.shape_cast %8 : vector<256x128xf32> to vector<16x16x128xf32>
    %12 = arith.truncf %11 : vector<16x16x128xf32> to vector<16x16x128xbf16>
    %c2 = arith.constant 2 : index
    %c2_9 = arith.constant 2 : index
    %c0_10 = arith.constant 0 : index
    %13 = vector.load %arg7[%c2, %c2_9, %c0_10] : memref<20x20x128xbf16, #tpu.memory_space<vmem>>, vector<16x16x128xbf16>
    tpu.vector_store %arg7[%c2, %c2_9, %c0_10], %12 {strides = array<i32>} : memref<20x20x128xbf16, #tpu.memory_space<vmem>>, vector<16x16x128xbf16>,
    %c0_11 = arith.constant 0 : index
    %c0_12 = arith.constant 0 : index
    %c0_13 = arith.constant 0 : index
    %14 = vector.load %arg7[%c0_11, %c0_12, %c0_13] : memref<20x20x128xbf16, #tpu.memory_space<vmem>>, vector<16x16x128xbf16>
    %15 = vector.shape_cast %14 : vector<16x16x128xbf16> to vector<256x128xbf16>
    %c0_14 = arith.constant 0 : index
    %c2_15 = arith.constant 2 : index
    %c0_16 = arith.constant 0 : index
    %16 = vector.load %arg7[%c0_14, %c2_15, %c0_16] : memref<20x20x128xbf16, #tpu.memory_space<vmem>>, vector<16x16x128xbf16>
    %17 = vector.shape_cast %16 : vector<16x16x128xbf16> to vector<256x128xbf16>
    %c0_17 = arith.constant 0 : index
    %c4 = arith.constant 4 : index
    %c0_18 = arith.constant 0 : index
    %18 = vector.load %arg7[%c0_17, %c4, %c0_18] : memref<20x20x128xbf16, #tpu.memory_space<vmem>>, vector<16x16x128xbf16>
    %19 = vector.shape_cast %18 : vector<16x16x128xbf16> to vector<256x128xbf16>
    %c2_19 = arith.constant 2 : index
    %c0_20 = arith.constant 0 : index
    %c0_21 = arith.constant 0 : index
    %20 = vector.load %arg7[%c2_19, %c0_20, %c0_21] : memref<20x20x128xbf16, #tpu.memory_space<vmem>>, vector<16x16x128xbf16>
    %21 = vector.shape_cast %20 : vector<16x16x128xbf16> to vector<256x128xbf16>
    %c2_22 = arith.constant 2 : index
    %c2_23 = arith.constant 2 : index
    %c0_24 = arith.constant 0 : index
    %22 = vector.load %arg7[%c2_22, %c2_23, %c0_24] : memref<20x20x128xbf16, #tpu.memory_space<vmem>>, vector<16x16x128xbf16>
    %23 = vector.shape_cast %22 : vector<16x16x128xbf16> to vector<256x128xbf16>
    %c2_25 = arith.constant 2 : index
    %c4_26 = arith.constant 4 : index
    %c0_27 = arith.constant 0 : index
    %24 = vector.load %arg7[%c2_25, %c4_26, %c0_27] : memref<20x20x128xbf16, #tpu.memory_space<vmem>>, vector<16x16x128xbf16>
    %25 = vector.shape_cast %24 : vector<16x16x128xbf16> to vector<256x128xbf16>
    %c4_28 = arith.constant 4 : index
    %c0_29 = arith.constant 0 : index
    %c0_30 = arith.constant 0 : index
    %26 = vector.load %arg7[%c4_28, %c0_29, %c0_30] : memref<20x20x128xbf16, #tpu.memory_space<vmem>>, vector<16x16x128xbf16>
    %27 = vector.shape_cast %26 : vector<16x16x128xbf16> to vector<256x128xbf16>
    %c4_31 = arith.constant 4 : index
    %c2_32 = arith.constant 2 : index
    %c0_33 = arith.constant 0 : index
    %28 = vector.load %arg7[%c4_31, %c2_32, %c0_33] : memref<20x20x128xbf16, #tpu.memory_space<vmem>>, vector<16x16x128xbf16>
    %29 = vector.shape_cast %28 : vector<16x16x128xbf16> to vector<256x128xbf16>
    %c4_34 = arith.constant 4 : index
    %c4_35 = arith.constant 4 : index
    %c0_36 = arith.constant 0 : index
    %30 = vector.load %arg7[%c4_34, %c4_35, %c0_36] : memref<20x20x128xbf16, #tpu.memory_space<vmem>>, vector<16x16x128xbf16>
    %31 = vector.shape_cast %30 : vector<16x16x128xbf16> to vector<256x128xbf16>
    %32 = tpu.concatenate %15, %17, %19, %21, %23, %25, %27, %29, %31 in 1 : vector<256x128xbf16>, vector<256x128xbf16>, vector<256x128xbf16>, vector<256x128xbf16>, vector<256x128xbf16>, vector<256x128xbf16>, vector<256x128xbf16>, vector<256x128xbf16>, vector<256x128xbf16> -> vector<256x1152xbf16>
    %c0_37 = arith.constant 0 : index
    %c0_38 = arith.constant 0 : index
    %33 = vector.load %arg4[%c0_37, %c0_38] : memref<1152x128xbf16, #tpu.memory_space<vmem>>, vector<1152x128xbf16>
    %cst_39 = arith.constant dense<0.000000e+00> : vector<256x128xf32>
    %34 = tpu.matmul %32, %33, %cst_39 {dimension_numbers = #tpu.dot_dimension_numbers<[1], [0], [0], [1], [0, 0, 1, 1], [], []>} : vector<256x1152xbf16>, vector<1152x128xbf16>, vector<256x128xf32> -> vector<256x128xf32>
    %c0_40 = arith.constant 0 : index
    %c0_41 = arith.constant 0 : index
    %35 = vector.load %arg5[%c0_40, %c0_41] : memref<256x128xf32, #tpu.memory_space<vmem>>, vector<256x128xf32>
    tpu.vector_store %arg5[%c0_40, %c0_41], %34 {strides = array<i32>} : memref<256x128xf32, #tpu.memory_space<vmem>>, vector<256x128xf32>,
    %cst_42 = arith.constant dense<0.000000e+00> : vector<128xf32>
    %36 = vector.multi_reduction <add>, %34, %cst_42 [0] : vector<256x128xf32> to vector<128xf32>
    %37 = vector.shape_cast %36 : vector<128xf32> to vector<1x128xf32>
    %38 = arith.mulf %34, %34 : vector<256x128xf32>
    %cst_43 = arith.constant dense<0.000000e+00> : vector<128xf32>
    %39 = vector.multi_reduction <add>, %38, %cst_43 [0] : vector<256x128xf32> to vector<128xf32>
    %40 = vector.shape_cast %39 : vector<128xf32> to vector<1x128xf32>
    %41 = tpu.iota {dimensions = array<i32: 0>} : vector<8x128xi32>
    %c0_i32 = arith.constant 0 : i32
    %42 = vector.broadcast %c0_i32 : i32 to vector<8x128xi32>
    %43 = arith.cmpi eq, %41, %42 : vector<8x128xi32>
    %c1_i32 = arith.constant 1 : i32
    %44 = vector.broadcast %c1_i32 : i32 to vector<8x128xi32>
    %45 = arith.cmpi eq, %41, %44 : vector<8x128xi32>
    %cst_44 = arith.constant 0.000000e+00 : f32
    %46 = vector.shape_cast %40 : vector<1x128xf32> to vector<1x128xf32>
    %47 = vector.broadcast %46 : vector<1x128xf32> to vector<8x128xf32>
    %48 = vector.broadcast %cst_44 : f32 to vector<8x128xf32>
    %49 = arith.select %45, %47, %48 : vector<8x128xi1>, vector<8x128xf32>
    %50 = vector.shape_cast %37 : vector<1x128xf32> to vector<1x128xf32>
    %51 = vector.broadcast %50 : vector<1x128xf32> to vector<8x128xf32>
    %52 = arith.select %43, %51, %49 : vector<8x128xi1>, vector<8x128xf32>
    %c0_45 = arith.constant 0 : index
    %c0_46 = arith.constant 0 : index
    %53 = vector.load %arg6[%c0_45, %c0_46] : memref<8x128xf32, #tpu.memory_space<vmem>>, vector<8x128xf32>
    tpu.vector_store %arg6[%c0_45, %c0_46], %52 {strides = array<i32>} : memref<8x128xf32, #tpu.memory_space<vmem>>, vector<8x128xf32>,
    return
  }
  func.func @transform_0(%arg0: i32) -> (i32, i32) {
    %c0_i32 = arith.constant 0 : i32
    %c0_i32_0 = arith.constant 0 : i32
    return %arg0, %c0_i32 : i32, i32
  }
  func.func @transform_1(%arg0: i32) -> (i32, i32) {
    %c0_i32 = arith.constant 0 : i32
    %c0_i32_0 = arith.constant 0 : i32
    %c0_i32_1 = arith.constant 0 : i32
    return %c0_i32, %c0_i32_0 : i32, i32
  }
  func.func @transform_2(%arg0: i32) -> (i32, i32) {
    %c0_i32 = arith.constant 0 : i32
    %c0_i32_0 = arith.constant 0 : i32
    %c0_i32_1 = arith.constant 0 : i32
    return %c0_i32, %c0_i32_0 : i32, i32
  }
  func.func @transform_3(%arg0: i32) -> (i32, i32) {
    %c0_i32 = arith.constant 0 : i32
    %c0_i32_0 = arith.constant 0 : i32
    %c0_i32_1 = arith.constant 0 : i32
    return %c0_i32, %c0_i32_0 : i32, i32
  }
  func.func @transform_4(%arg0: i32) -> (i32, i32) {
    %c0_i32 = arith.constant 0 : i32
    %c0_i32_0 = arith.constant 0 : i32
    return %arg0, %c0_i32 : i32, i32
  }
  func.func @transform_5(%arg0: i32) -> (i32, i32) {
    %c0_i32 = arith.constant 0 : i32
    %c0_i32_0 = arith.constant 0 : i32
    return %arg0, %c0_i32 : i32, i32
  }
}

module attributes {stable_mosaic.version = 11 : i64} {
  func.func @stage1_kernel(%arg0: i32, %arg1: memref<256x128xf32, #tpu.memory_space<vmem>>, %arg2: memref<128x128xbf16, #tpu.memory_space<vmem>>, %arg3: memref<256x128xf32, #tpu.memory_space<vmem>>, %arg4: memref<8x128xf32, #tpu.memory_space<vmem>>) attributes {dimension_semantics = [#tpu.dimension_semantics<parallel>], iteration_bounds = array<i64: 2>, scalar_prefetch = 0 : i64, scratch_operands = 0 : i64, tpu.core_type = #tpu.core_type<tc>, window_params = [{transform_indices = @transform_0, window_bounds = array<i64: 256, 128>}, {pipeline_mode = #tpu.pipeline_mode<synchronous>, transform_indices = @transform_1, window_bounds = array<i64: 128, 128>}, {transform_indices = @transform_2, window_bounds = array<i64: 256, 128>}, {transform_indices = @transform_3, window_bounds = array<i64: 8, 128>}]} {
    %c0 = arith.constant 0 : index
    %c0_0 = arith.constant 0 : index
    %0 = vector.load %arg1[%c0, %c0_0] : memref<256x128xf32, #tpu.memory_space<vmem>>, vector<256x128xf32>
    %1 = arith.truncf %0 : vector<256x128xf32> to vector<256x128xbf16>
    %c0_1 = arith.constant 0 : index
    %c0_2 = arith.constant 0 : index
    %2 = vector.load %arg2[%c0_1, %c0_2] : memref<128x128xbf16, #tpu.memory_space<vmem>>, vector<128x128xbf16>
    %cst = arith.constant dense<0.000000e+00> : vector<256x128xf32>
    %3 = tpu.matmul %1, %2, %cst {dimension_numbers = #tpu.dot_dimension_numbers<[1], [0], [0], [1], [0, 0, 1, 1], [], []>} : vector<256x128xbf16>, vector<128x128xbf16>, vector<256x128xf32> -> vector<256x128xf32>
    %c0_3 = arith.constant 0 : index
    %c0_4 = arith.constant 0 : index
    %4 = vector.load %arg3[%c0_3, %c0_4] : memref<256x128xf32, #tpu.memory_space<vmem>>, vector<256x128xf32>
    tpu.vector_store %arg3[%c0_3, %c0_4], %3 {strides = array<i32>} : memref<256x128xf32, #tpu.memory_space<vmem>>, vector<256x128xf32>,
    %cst_5 = arith.constant dense<0.000000e+00> : vector<128xf32>
    %5 = vector.multi_reduction <add>, %3, %cst_5 [0] : vector<256x128xf32> to vector<128xf32>
    %6 = vector.shape_cast %5 : vector<128xf32> to vector<1x128xf32>
    %7 = arith.mulf %3, %3 : vector<256x128xf32>
    %cst_6 = arith.constant dense<0.000000e+00> : vector<128xf32>
    %8 = vector.multi_reduction <add>, %7, %cst_6 [0] : vector<256x128xf32> to vector<128xf32>
    %9 = vector.shape_cast %8 : vector<128xf32> to vector<1x128xf32>
    %10 = tpu.iota {dimensions = array<i32: 0>} : vector<8x128xi32>
    %c0_i32 = arith.constant 0 : i32
    %11 = vector.broadcast %c0_i32 : i32 to vector<8x128xi32>
    %12 = arith.cmpi eq, %10, %11 : vector<8x128xi32>
    %c1_i32 = arith.constant 1 : i32
    %13 = vector.broadcast %c1_i32 : i32 to vector<8x128xi32>
    %14 = arith.cmpi eq, %10, %13 : vector<8x128xi32>
    %cst_7 = arith.constant 0.000000e+00 : f32
    %15 = vector.shape_cast %9 : vector<1x128xf32> to vector<1x128xf32>
    %16 = vector.broadcast %15 : vector<1x128xf32> to vector<8x128xf32>
    %17 = vector.broadcast %cst_7 : f32 to vector<8x128xf32>
    %18 = arith.select %14, %16, %17 : vector<8x128xi1>, vector<8x128xf32>
    %19 = vector.shape_cast %6 : vector<1x128xf32> to vector<1x128xf32>
    %20 = vector.broadcast %19 : vector<1x128xf32> to vector<8x128xf32>
    %21 = arith.select %12, %20, %18 : vector<8x128xi1>, vector<8x128xf32>
    %c0_8 = arith.constant 0 : index
    %c0_9 = arith.constant 0 : index
    %22 = vector.load %arg4[%c0_8, %c0_9] : memref<8x128xf32, #tpu.memory_space<vmem>>, vector<8x128xf32>
    tpu.vector_store %arg4[%c0_8, %c0_9], %21 {strides = array<i32>} : memref<8x128xf32, #tpu.memory_space<vmem>>, vector<8x128xf32>,
    return
  }
  func.func @transform_0(%arg0: i32) -> (i32, i32) {
    %c0_i32 = arith.constant 0 : i32
    %c0_i32_0 = arith.constant 0 : i32
    return %arg0, %c0_i32 : i32, i32
  }
  func.func @transform_1(%arg0: i32) -> (i32, i32) {
    %c0_i32 = arith.constant 0 : i32
    %c0_i32_0 = arith.constant 0 : i32
    %c0_i32_1 = arith.constant 0 : i32
    return %c0_i32, %c0_i32_0 : i32, i32
  }
  func.func @transform_2(%arg0: i32) -> (i32, i32) {
    %c0_i32 = arith.constant 0 : i32
    %c0_i32_0 = arith.constant 0 : i32
    return %arg0, %c0_i32 : i32, i32
  }
  func.func @transform_3(%arg0: i32) -> (i32, i32) {
    %c0_i32 = arith.constant 0 : i32
    %c0_i32_0 = arith.constant 0 : i32
    return %arg0, %c0_i32 : i32, i32
  }
}

module attributes {stable_mosaic.version = 11 : i64} {
  func.func @stage3_kernel(%arg0: i32, %arg1: memref<256x128xf32, #tpu.memory_space<vmem>>, %arg2: memref<1x128xf32, #tpu.memory_space<vmem>>, %arg3: memref<1x128xf32, #tpu.memory_space<vmem>>, %arg4: memref<128x128xbf16, #tpu.memory_space<vmem>>, %arg5: memref<256x128xf32, #tpu.memory_space<vmem>>, %arg6: memref<8x128xf32, #tpu.memory_space<vmem>>) attributes {dimension_semantics = [#tpu.dimension_semantics<parallel>], iteration_bounds = array<i64: 2>, scalar_prefetch = 0 : i64, scratch_operands = 0 : i64, tpu.core_type = #tpu.core_type<tc>, window_params = [{transform_indices = @transform_0, window_bounds = array<i64: 256, 128>}, {pipeline_mode = #tpu.pipeline_mode<synchronous>, transform_indices = @transform_1, window_bounds = array<i64: 1, 128>}, {pipeline_mode = #tpu.pipeline_mode<synchronous>, transform_indices = @transform_2, window_bounds = array<i64: 1, 128>}, {pipeline_mode = #tpu.pipeline_mode<synchronous>, transform_indices = @transform_3, window_bounds = array<i64: 128, 128>}, {transform_indices = @transform_4, window_bounds = array<i64: 256, 128>}, {transform_indices = @transform_5, window_bounds = array<i64: 8, 128>}]} {
    %c0 = arith.constant 0 : index
    %c0_0 = arith.constant 0 : index
    %0 = vector.load %arg1[%c0, %c0_0] : memref<256x128xf32, #tpu.memory_space<vmem>>, vector<256x128xf32>
    %c0_1 = arith.constant 0 : index
    %c0_2 = arith.constant 0 : index
    %1 = vector.load %arg2[%c0_1, %c0_2] : memref<1x128xf32, #tpu.memory_space<vmem>>, vector<1x128xf32>
    %2 = vector.broadcast %1 : vector<1x128xf32> to vector<256x128xf32>
    %3 = arith.mulf %0, %2 : vector<256x128xf32>
    %c0_3 = arith.constant 0 : index
    %c0_4 = arith.constant 0 : index
    %4 = vector.load %arg3[%c0_3, %c0_4] : memref<1x128xf32, #tpu.memory_space<vmem>>, vector<1x128xf32>
    %5 = vector.broadcast %4 : vector<1x128xf32> to vector<256x128xf32>
    %6 = arith.addf %3, %5 : vector<256x128xf32>
    %cst = arith.constant 0.000000e+00 : f32
    %7 = vector.broadcast %cst : f32 to vector<256x128xf32>
    %8 = arith.maximumf %6, %7 : vector<256x128xf32>
    %9 = arith.truncf %8 : vector<256x128xf32> to vector<256x128xbf16>
    %c0_5 = arith.constant 0 : index
    %c0_6 = arith.constant 0 : index
    %10 = vector.load %arg4[%c0_5, %c0_6] : memref<128x128xbf16, #tpu.memory_space<vmem>>, vector<128x128xbf16>
    %cst_7 = arith.constant dense<0.000000e+00> : vector<256x128xf32>
    %11 = tpu.matmul %9, %10, %cst_7 {dimension_numbers = #tpu.dot_dimension_numbers<[1], [0], [0], [1], [0, 0, 1, 1], [], []>} : vector<256x128xbf16>, vector<128x128xbf16>, vector<256x128xf32> -> vector<256x128xf32>
    %c0_8 = arith.constant 0 : index
    %c0_9 = arith.constant 0 : index
    %12 = vector.load %arg5[%c0_8, %c0_9] : memref<256x128xf32, #tpu.memory_space<vmem>>, vector<256x128xf32>
    tpu.vector_store %arg5[%c0_8, %c0_9], %11 {strides = array<i32>} : memref<256x128xf32, #tpu.memory_space<vmem>>, vector<256x128xf32>,
    %cst_10 = arith.constant dense<0.000000e+00> : vector<128xf32>
    %13 = vector.multi_reduction <add>, %11, %cst_10 [0] : vector<256x128xf32> to vector<128xf32>
    %14 = vector.shape_cast %13 : vector<128xf32> to vector<1x128xf32>
    %15 = arith.mulf %11, %11 : vector<256x128xf32>
    %cst_11 = arith.constant dense<0.000000e+00> : vector<128xf32>
    %16 = vector.multi_reduction <add>, %15, %cst_11 [0] : vector<256x128xf32> to vector<128xf32>
    %17 = vector.shape_cast %16 : vector<128xf32> to vector<1x128xf32>
    %18 = tpu.iota {dimensions = array<i32: 0>} : vector<8x128xi32>
    %c0_i32 = arith.constant 0 : i32
    %19 = vector.broadcast %c0_i32 : i32 to vector<8x128xi32>
    %20 = arith.cmpi eq, %18, %19 : vector<8x128xi32>
    %c1_i32 = arith.constant 1 : i32
    %21 = vector.broadcast %c1_i32 : i32 to vector<8x128xi32>
    %22 = arith.cmpi eq, %18, %21 : vector<8x128xi32>
    %cst_12 = arith.constant 0.000000e+00 : f32
    %23 = vector.shape_cast %17 : vector<1x128xf32> to vector<1x128xf32>
    %24 = vector.broadcast %23 : vector<1x128xf32> to vector<8x128xf32>
    %25 = vector.broadcast %cst_12 : f32 to vector<8x128xf32>
    %26 = arith.select %22, %24, %25 : vector<8x128xi1>, vector<8x128xf32>
    %27 = vector.shape_cast %14 : vector<1x128xf32> to vector<1x128xf32>
    %28 = vector.broadcast %27 : vector<1x128xf32> to vector<8x128xf32>
    %29 = arith.select %20, %28, %26 : vector<8x128xi1>, vector<8x128xf32>
    %c0_13 = arith.constant 0 : index
    %c0_14 = arith.constant 0 : index
    %30 = vector.load %arg6[%c0_13, %c0_14] : memref<8x128xf32, #tpu.memory_space<vmem>>, vector<8x128xf32>
    tpu.vector_store %arg6[%c0_13, %c0_14], %29 {strides = array<i32>} : memref<8x128xf32, #tpu.memory_space<vmem>>, vector<8x128xf32>,
    return
  }
  func.func @transform_0(%arg0: i32) -> (i32, i32) {
    %c0_i32 = arith.constant 0 : i32
    %c0_i32_0 = arith.constant 0 : i32
    return %arg0, %c0_i32 : i32, i32
  }
  func.func @transform_1(%arg0: i32) -> (i32, i32) {
    %c0_i32 = arith.constant 0 : i32
    %c0_i32_0 = arith.constant 0 : i32
    %c0_i32_1 = arith.constant 0 : i32
    return %c0_i32, %c0_i32_0 : i32, i32
  }
  func.func @transform_2(%arg0: i32) -> (i32, i32) {
    %c0_i32 = arith.constant 0 : i32
    %c0_i32_0 = arith.constant 0 : i32
    %c0_i32_1 = arith.constant 0 : i32
    return %c0_i32, %c0_i32_0 : i32, i32
  }
  func.func @transform_3(%arg0: i32) -> (i32, i32) {
    %c0_i32 = arith.constant 0 : i32
    %c0_i32_0 = arith.constant 0 : i32
    %c0_i32_1 = arith.constant 0 : i32
    return %c0_i32, %c0_i32_0 : i32, i32
  }
  func.func @transform_4(%arg0: i32) -> (i32, i32) {
    %c0_i32 = arith.constant 0 : i32
    %c0_i32_0 = arith.constant 0 : i32
    return %arg0, %c0_i32 : i32, i32
  }
  func.func @transform_5(%arg0: i32) -> (i32, i32) {
    %c0_i32 = arith.constant 0 : i32
    %c0_i32_0 = arith.constant 0 : i32
    return %arg0, %c0_i32 : i32, i32
  }
}

</mosaic_0001>

<bundles_post_ra>
// kernel: bottleneck_forward.7
= control target key start
LH: loop header
LB: loop body
LE: loop exit
PB: predicated region body
PF: predicated region fallthrough
CT: control target
= control target key end

     0   :  { %9 = vsyncpa [#allocation3], 0  ;;  %s1084_s0 = inlined_call_operand.vmem [shape: f32[512,128], index: 0, kind: input, shape index: {}]   ;;  %s1085_s1 = inlined_call_operand.vmem [shape: f32[1,128], index: 1, kind: input, shape index: {}]   ;;  %s1086_s2 = inlined_call_operand.vmem [shape: f32[1,128], index: 2, kind: input, shape index: {}]   ;;  %s1087_s3 = inlined_call_operand.hbm [shape: f32[512,128], index: 3, kind: input, shape index: {}]   ;;  %s1088_s4 = inlined_call_operand.hbm [shape: f32[512,128], index: 4, kind: output, shape index: {}]  }
   0x1   :  { %11 = vsyncpa [#allocation3 + $0x1], 0 }
   0x2   :  { %12 = vsyncpa [#allocation4], 0 }
   0x3   :  { %14 = vsyncpa [#allocation4 + $0x1], 0  ;;  %s772_s15 = smov 0   ;;  %s774_s16 = smov 0  }
   0x4   :  { %s776_s17 = smov 0   ;;  %s778_s18 = smov 0  }
   0x5 LB: > { %s793_s19 = sadd.s32 4294967295, %s741_s18   ;;  %s575_s20 = sadd.s32 4294967294, %s741_s18   ;;  %s741_s18 = sphi %s778_s18, %s1098_s18   ;;  %s737_s17 = sphi %s776_s17, %s1097_s17   ;;  %s733_s16 = sphi %s774_s16, %s1096_s16   ;;  %s729_s15 = sphi %s772_s15, %s1095_s15  }
   0x6   : > { %s797_s21 = sadd.s32 1, %s741_s18   ;;  %s95_s22 = sadd.s32 1, %s737_s17 }
   0x7   : > { %s92_s23 = ssub.s32 %s741_s18, %s797_s21  ;;  %p102_p0 = scmp.ne.s32.totalorder %s737_s17, %s733_s16 }
   0x8   : > { %p93_p1 = scmp.eq.s32.totalorder %s92_s23, 0  ;;  %p103_p2 = scmp.eq.s32.totalorder %s741_s18, 0 }
   0x9   : > { %p108_p3 = scmp.ne.s32.totalorder %s733_s16, %s729_s15  ;;  %p109_p4 = scmp.eq.s32.totalorder %s793_s19, 0 }
   0xa   : > { %s809_s24 = scalar_select %p93_p1, %s737_s17, %s95_s22  }
   0xb   : > { %p811_p5 = por %p103_p2, %p102_p0  ;;  %p815_p6 = por %p109_p4, %p108_p3 }
   0xc   : > { %p132_p7 = scmp.eq.s32.totalorder %s793_s19, 1  ;;  %p138_p8 = scmp.eq.s32.totalorder %s575_s20, 1 }
   0xd   : > { %p605_p10 = scmp.lt.s32.totalorder %s741_s18, 2  ;;  %s173_s29 = sand.u32 1, %s737_s17  }
   0xe   : > { %p822_p11 = por %p132_p7, %p102_p0  ;;  %p826_p12 = por %p138_p8, %p108_p3 }
   0xf   : > { %s591_s30 = sshll.u32 %s741_s18, 8  ;;  %s578_s5 = sshll.u32 %s173_s29, 8 }
  0x10   : > { %s182_s8 = scalar_lea.hbm %s1087_s3, %s591_s30  ;;  %s177_s10 = scalar_lea.vmem [#allocation2], %s578_s5 }
  0x11   : > { %s183_s9 = sshll.u32 %s182_s8, 4  ;;  %s185_s11 = sshll.u32 %s177_s10, 4  ;;  %s184_s9 = int_to_ptr.hbm [resolvable:$true] %s183_s9  ;;  %s186_s11 = int_to_ptr.vmem [resolvable:$true] %s185_s11 }
  0x12   : > { %p837_p13 = pnand %p605_p10, %p811_p5  ;;  %p581_p0 = scmp.ge.s32.totalorder %s741_s18, 1 }
  0x13   : > { %p193_p1 = scmp.lt.s32.totalorder %s741_s18, 3  ;;  %s174_s13 = scalar_lea.sflag [#allocation3], %s173_s29 }
  0x14   : > { %s645_s14 = sshra.s32 %s184_s9, 4  ;;  %p649_p3 = pneg %p837_p13  ;;  %s646_s14 = int_to_ptr.hbm [resolvable:$true] %s645_s14 }
  0x15   : > { %s647_s20 = scalar_lea.hbm %s646_s14, 256  ;;  %s652_s25 = scalar_lea.hbm %s1087_s3, 512 }
  0x16   : > { %p648_p2 = scmp.ne.s32.totalorder %s646_s14, %s647_s20  ;;  %p653_p5 = scmp.lt.s32.totalorder %s646_s14, %s1087_s3 }
  0x17   : > { %p654_p8 = scmp.lt.s32.totalorder %s652_s25, %s647_s20 }
  0x18   : > { %p650_p4 = pnand %p649_p3, %p648_p2 }
  0x19   : > { %p655_p10 = por %p654_p8, %p653_p5 }
  0x1a   : > { %p651_p7 = pneg %p650_p4 }
  0x1c   : > { %p656_p9 = pnand %p655_p10, %p651_p7 }
  0x1e   : > { %659 = shalt.err (!%p656_p9)
}
  0x1f   : > { %s743_s29 = smov 128   ;;  %s744_s6 = smov 8  }
  0x20   : > { %600 = dma.hbm_to_vmem [thread:$0]  (!%p837_p13), %s184_s9, 4096, %s186_s11, %s174_s13, %s743_s29, %s743_s29, %s744_s6  }
  0x21   : > { %p194_p2 = pnand %p581_p0, %p193_p1 }
  0x22   : > { %s858_s7 = sand.u32 (!%p194_p2), 1, %s733_s16  }
  0x23   : > { %197 = sbr.rel (%p194_p2) target bundleno = 91 (0x5b), region = 36  ;;  %s582_s8 = sshll.u32 (!%p194_p2), %s858_s7, 8 }
  0x24   : > { %s200_s10 = scalar_lea.sflag (!%p194_p2), [#allocation3], %s858_s7  ;;  %s864_s14 = scalar_lea.vmem (!%p194_p2), [#allocation2], %s582_s8 }
  0x28   : > { %720 = dma.done.wait (%p815_p6), %s200_s10, 4096  }
  0x29   : > { %722 = vsyncadd (%p815_p6), %s200_s10, 4294963200  ;;  %s584_s9 = sshll.u32 %s793_s19, 5  ;;  %v880_v1 = vld [vmem:[%s1085_s1] ss:$0 sm:$0xff]  ;;  %v347_v8 = vld [vmem:[%s864_s14 + $0x8] sm:$0xff]  ;;  %s923_s30 = scalar_lea.vmem [#allocation5], %s582_s8 }
  0x2a   : > { %p235_p9 = scmp.lt.s32.totalorder %s584_s9, 63  ;;  %v885_v2 = vld [vmem:[%s1086_s2] ss:$0 sm:$0xff]  ;;  %v348_v12 = vld [vmem:[%s864_s14 + $0x10] sm:$0xff]  ;;  %v349_v18 = vld [vmem:[%s864_s14 + $0x18] sm:$0xff]  ;;  %s592_s5 = sshll.u32 %s793_s19, 8 }
  0x2b   : > { %v346_v6 = vld [vmem:[%s864_s14] sm:$0xff]  ;;  %v351_v25 = vld [vmem:[%s864_s14 + $0x28] sm:$0xff]  ;;  %v352_v32 = vld [vmem:[%s864_s14 + $0x30] sm:$0xff]  ;;  %s486_s6 = scalar_lea.hbm %s1088_s4, %s592_s5  ;;  %s487_s8 = sshll.u32 %s923_s30, 4  ;;  %s488_s8 = int_to_ptr.vmem [resolvable:$true] %s487_s8 }
  0x2c   : > { %s1100_s9 = smov (!%p235_p9, %s584_s9), 63  ;;  %v350_v24 = vld [vmem:[%s864_s14 + $0x20] sm:$0xff]  ;;  %v353_v44 = vld [vmem:[%s864_s14 + $0x38] sm:$0xff]  ;;  %v355_v61 = vld [vmem:[%s864_s14 + $0x48] sm:$0xff]  ;;  %s489_s10 = sshll.u32 %s486_s6, 4  ;;  %s490_s10 = int_to_ptr.hbm [resolvable:$true] %s489_s10 }
  0x2d   : > { %s585_s11 = sshll.u32 %s1100_s9, 3  ;;  %v354_v54 = vld [vmem:[%s864_s14 + $0x40] sm:$0xff]  ;;  %v356_v62 = vld [vmem:[%s864_s14 + $0x50] sm:$0xff]  ;;  %s689_s9 = sshra.s32 %s490_s10, 4  ;;  %s690_s9 = int_to_ptr.hbm [resolvable:$true] %s689_s9 }
  0x2e   : > { %s874_s20 = scalar_lea.vmem %s1084_s0, %s585_s11  ;;  %s691_s11 = scalar_lea.hbm %s690_s9, 256 }
  0x2f   : > { %v242_v0 = vld [vmem:[%s874_s20] sm:$0xff]  ;;  %v243_v4 = vld [vmem:[%s874_s20 + $0x8] sm:$0xff]  ;;  %v244_v5 = vld [vmem:[%s874_s20 + $0x10] sm:$0xff]  ;;  %p692_p6 = scmp.ne.s32.totalorder %s690_s9, %s691_s11  ;;  %p696_p1 = scmp.lt.s32.totalorder %s690_s9, %s1088_s4 }
  0x30   : > { %v278_v3 = vmul.f32 %v880_v1, %v242_v0  ;;  %v279_v7 = vmul.f32 %v880_v1, %v243_v4  ;;  %v280_v9 = vmul.f32 %v880_v1, %v244_v5  ;;  %v245_v10 = vld [vmem:[%s874_s20 + $0x18] sm:$0xff]  ;;  %v246_v14 = vld [vmem:[%s874_s20 + $0x20] sm:$0xff]  ;;  %v247_v15 = vld [vmem:[%s874_s20 + $0x28] sm:$0xff] }
  0x31   : > { %v281_v13 = vmul.f32 %v880_v1, %v245_v10  ;;  %v282_v19 = vmul.f32 %v880_v1, %v246_v14  ;;  %v283_v20 = vmul.f32 %v880_v1, %v247_v15  ;;  %v248_v21 = vld [vmem:[%s874_s20 + $0x30] sm:$0xff]  ;;  %v249_v27 = vld [vmem:[%s874_s20 + $0x38] sm:$0xff]  ;;  %v250_v33 = vld [vmem:[%s874_s20 + $0x40] sm:$0xff]  ;;  %p693_p13 = pnand %p692_p6, %p822_p11 }
  0x32   : > { %v314_v11 = vadd.f32 %v885_v2, %v278_v3  ;;  %v315_v16 = vadd.f32 %v885_v2, %v279_v7  ;;  %v316_v17 = vadd.f32 %v885_v2, %v280_v9  ;;  %v284_v26 = vmul.f32 %v880_v1, %v248_v21  ;;  %v251_v38 = vld [vmem:[%s874_s20 + $0x48] sm:$0xff]  ;;  %v252_v39 = vld [vmem:[%s874_s20 + $0x50] sm:$0xff]  ;;  %v253_v45 = vld [vmem:[%s874_s20 + $0x58] sm:$0xff] }
  0x33   : > { %v317_v23 = vadd.f32 %v885_v2, %v281_v13  ;;  %v318_v30 = vadd.f32 %v885_v2, %v282_v19  ;;  %v319_v31 = vadd.f32 %v885_v2, %v283_v20  ;;  %v285_v37 = vmul.f32 %v880_v1, %v249_v27  ;;  %v254_v50 = vld [vmem:[%s874_s20 + $0x60] sm:$0xff]  ;;  %v255_v51 = vld [vmem:[%s874_s20 + $0x68] sm:$0xff]  ;;  %v256_v57 = vld [vmem:[%s874_s20 + $0x70] sm:$0xff]  ;;  %p694_p0 = pneg %p693_p13 }
  0x34   : > { %v378_v22 = vadd.f32 %v346_v6, %v314_v11  ;;  %v379_v28 = vadd.f32 %v347_v8, %v315_v16  ;;  %v380_v29 = vadd.f32 %v348_v12, %v316_v17  ;;  %v320_v36 = vadd.f32 %v885_v2, %v284_v26  ;;  %v357_v4 = vld [vmem:[%s864_s14 + $0x58] sm:$0xff]  ;;  %v358_v11 = vld [vmem:[%s864_s14 + $0x60] sm:$0xff]  ;;  %v359_v12 = vld [vmem:[%s864_s14 + $0x68] sm:$0xff] }
  0x35   : > { %v381_v35 = vadd.f32 %v349_v18, %v317_v23  ;;  %v382_v42 = vadd.f32 %v350_v24, %v318_v30  ;;  %v383_v43 = vadd.f32 %v351_v25, %v319_v31  ;;  %v321_v48 = vadd.f32 %v885_v2, %v285_v37  ;;  %v257_v7 = vld [vmem:[%s874_s20 + $0x78] sm:$0xff]  ;;  %v360_v18 = vld [vmem:[%s864_s14 + $0x70] sm:$0xff]  ;;  %v258_v19 = vld [vmem:[%s874_s20 + $0x80] sm:$0xff] }
  0x36   : > { %v410_v34 = vmax.f32 %v378_v22, 0.0  ;;  %v411_v40 = vmax.f32 %v379_v28, 0.0  ;;  %v412_v41 = vmax.f32 %v380_v29, 0.0  ;;  %v384_v47 = vadd.f32 %v352_v32, %v320_v36  ;;  %v259_v24 = vld [vmem:[%s874_s20 + $0x88] sm:$0xff]  ;;  %v260_v25 = vld [vmem:[%s874_s20 + $0x90] sm:$0xff]  ;;  %v361_v30 = vld [vmem:[%s864_s14 + $0x78] sm:$0xff] }
  0x37   : > { %v413_v46 = vmax.f32 %v381_v35, 0.0  ;;  %v286_v49 = vmul.f32 %v880_v1, %v250_v33  ;;  %v414_v52 = vmax.f32 %v382_v42, 0.0  ;;  %v415_v53 = vmax.f32 %v383_v43, 0.0  ;;  %v261_v31 = vld [vmem:[%s874_s20 + $0x98] sm:$0xff]  ;;  %v262_v36 = vld [vmem:[%s874_s20 + $0xa0] sm:$0xff]  ;;  %v263_v37 = vld [vmem:[%s874_s20 + $0xa8] sm:$0xff] }
  0x38   : > { %442 = vst [vmem:[%s923_s30] sm:$0xff] %v410_v34  ;;  %v287_v55 = vmul.f32 %v880_v1, %v251_v38  ;;  %v288_v56 = vmul.f32 %v880_v1, %v252_v39  ;;  %v416_v58 = vmax.f32 %v384_v47, 0.0  ;;  %v385_v59 = vadd.f32 %v353_v44, %v321_v48  ;;  %v264_v43 = vld [vmem:[%s874_s20 + $0xb0] sm:$0xff]  ;;  %v363_v47 = vld [vmem:[%s864_s14 + $0x88] sm:$0xff] }
  0x39   : > { %443 = vst [vmem:[%s923_s30 + $0x8] sm:$0xff] %v411_v40  ;;  %v322_v60 = vadd.f32 %v885_v2, %v286_v49  ;;  %v289_v63 = vmul.f32 %v880_v1, %v253_v45  ;;  %v290_v5 = vmul.f32 %v880_v1, %v254_v50  ;;  %v291_v6 = vmul.f32 %v880_v1, %v255_v51  ;;  %v362_v40 = vld [vmem:[%s864_s14 + $0x80] sm:$0xff]  ;;  %v364_v48 = vld [vmem:[%s864_s14 + $0x90] sm:$0xff] }
  0x3a   : > { %444 = vst [vmem:[%s923_s30 + $0x10] sm:$0xff] %v412_v41  ;;  %v323_v0 = vadd.f32 %v885_v2, %v287_v55  ;;  %v324_v3 = vadd.f32 %v885_v2, %v288_v56  ;;  %v417_v8 = vmax.f32 %v385_v59, 0.0  ;;  %v292_v13 = vmul.f32 %v880_v1, %v256_v57  ;;  %v265_v55 = vld [vmem:[%s874_s20 + $0xb8] sm:$0xff]  ;;  %v366_v59 = vld [vmem:[%s864_s14 + $0xa0] sm:$0xff] }
  0x3b   : > { %445 = vst [vmem:[%s923_s30 + $0x18] sm:$0xff] %v413_v46  ;;  %v386_v9 = vadd.f32 %v354_v54, %v322_v60  ;;  %v325_v10 = vadd.f32 %v885_v2, %v289_v63  ;;  %v326_v16 = vadd.f32 %v885_v2, %v290_v5  ;;  %v327_v17 = vadd.f32 %v885_v2, %v291_v6  ;;  %v367_v60 = vld [vmem:[%s864_s14 + $0xa8] sm:$0xff]  ;;  %v266_v5 = vld [vmem:[%s874_s20 + $0xc0] sm:$0xff] }
  0x3c   : > { %446 = vst [vmem:[%s923_s30 + $0x20] sm:$0xff] %v414_v52  ;;  %v387_v14 = vadd.f32 %v355_v61, %v323_v0  ;;  %v388_v15 = vadd.f32 %v356_v62, %v324_v3  ;;  %v328_v22 = vadd.f32 %v885_v2, %v292_v13  ;;  %v293_v23 = vmul.f32 %v880_v1, %v257_v7  ;;  %v365_v52 = vld [vmem:[%s864_s14 + $0x98] sm:$0xff] }
  0x3d   : > { %447 = vst [vmem:[%s923_s30 + $0x28] sm:$0xff] %v415_v53  ;;  %v418_v20 = vmax.f32 %v386_v9, 0.0  ;;  %v389_v21 = vadd.f32 %v357_v4, %v325_v10  ;;  %v390_v28 = vadd.f32 %v358_v11, %v326_v16  ;;  %v391_v29 = vadd.f32 %v359_v12, %v327_v17  ;;  %v368_v4 = vld [vmem:[%s864_s14 + $0xb0] sm:$0xff]  ;;  %v267_v10 = vld [vmem:[%s874_s20 + $0xc8] sm:$0xff]  ;;  %v369_v16 = vld [vmem:[%s864_s14 + $0xb8] sm:$0xff] }
  0x3e   : > { %448 = vst [vmem:[%s923_s30 + $0x30] sm:$0xff] %v416_v58  ;;  %v419_v26 = vmax.f32 %v387_v14, 0.0  ;;  %v420_v27 = vmax.f32 %v388_v15, 0.0  ;;  %v392_v33 = vadd.f32 %v360_v18, %v328_v22  ;;  %v329_v34 = vadd.f32 %v885_v2, %v293_v23  ;;  %v268_v11 = vld [vmem:[%s874_s20 + $0xd0] sm:$0xff]  ;;  %v269_v17 = vld [vmem:[%s874_s20 + $0xd8] sm:$0xff]  ;;  %v270_v22 = vld [vmem:[%s874_s20 + $0xe0] sm:$0xff] }
  0x3f   : > { %449 = vst [vmem:[%s923_s30 + $0x38] sm:$0xff] %v417_v8  ;;  %v421_v32 = vmax.f32 %v389_v21, 0.0  ;;  %v294_v35 = vmul.f32 %v880_v1, %v258_v19  ;;  %v422_v38 = vmax.f32 %v390_v28, 0.0  ;;  %v423_v39 = vmax.f32 %v391_v29, 0.0  ;;  %v271_v23 = vld [vmem:[%s874_s20 + $0xe8] sm:$0xff]  ;;  %v272_v29 = vld [vmem:[%s874_s20 + $0xf0] sm:$0xff] }
  0x40   : > { %450 = vst [vmem:[%s923_s30 + $0x40] sm:$0xff] %v418_v20  ;;  %v295_v41 = vmul.f32 %v880_v1, %v259_v24  ;;  %v296_v42 = vmul.f32 %v880_v1, %v260_v25  ;;  %v424_v44 = vmax.f32 %v392_v33, 0.0  ;;  %v393_v45 = vadd.f32 %v361_v30, %v329_v34  ;;  %v371_v33 = vld [vmem:[%s864_s14 + $0xc8] sm:$0xff]  ;;  %v372_v34 = vld [vmem:[%s864_s14 + $0xd0] sm:$0xff] }
  0x41   : > { %451 = vst [vmem:[%s923_s30 + $0x48] sm:$0xff] %v419_v26  ;;  %v330_v46 = vadd.f32 %v885_v2, %v294_v35  ;;  %v297_v49 = vmul.f32 %v880_v1, %v261_v31  ;;  %v298_v53 = vmul.f32 %v880_v1, %v262_v36  ;;  %v299_v54 = vmul.f32 %v880_v1, %v263_v37  ;;  %v370_v26 = vld [vmem:[%s864_s14 + $0xc0] sm:$0xff] }
  0x42   : > { %452 = vst [vmem:[%s923_s30 + $0x50] sm:$0xff] %v420_v27  ;;  %v331_v50 = vadd.f32 %v885_v2, %v295_v41  ;;  %v332_v51 = vadd.f32 %v885_v2, %v296_v42  ;;  %v425_v56 = vmax.f32 %v393_v45, 0.0  ;;  %v300_v61 = vmul.f32 %v880_v1, %v264_v43  ;;  %v273_v41 = vld [vmem:[%s874_s20 + $0xf8] sm:$0xff]  ;;  %v374_v45 = vld [vmem:[%s864_s14 + $0xe0] sm:$0xff]  ;;  %s695_s20 = scalar_lea.hbm %s1088_s4, 512 }
  0x43   : > { %453 = vst [vmem:[%s923_s30 + $0x58] sm:$0xff] %v421_v32  ;;  %v394_v57 = vadd.f32 %v362_v40, %v330_v46  ;;  %v333_v58 = vadd.f32 %v885_v2, %v297_v49  ;;  %v334_v0 = vadd.f32 %v885_v2, %v298_v53  ;;  %v335_v3 = vadd.f32 %v885_v2, %v299_v54  ;;  %v375_v46 = vld [vmem:[%s864_s14 + $0xe8] sm:$0xff]  ;;  %p697_p3 = scmp.lt.s32.totalorder %s695_s20, %s691_s11 }
  0x44   : > { %454 = vst [vmem:[%s923_s30 + $0x60] sm:$0xff] %v422_v38  ;;  %v395_v62 = vadd.f32 %v363_v47, %v331_v50  ;;  %v396_v63 = vadd.f32 %v364_v48, %v332_v51  ;;  %v336_v8 = vadd.f32 %v885_v2, %v300_v61  ;;  %v301_v9 = vmul.f32 %v880_v1, %v265_v55  ;;  %v373_v38 = vld [vmem:[%s864_s14 + $0xd8] sm:$0xff] }
  0x45   : > { %455 = vst [vmem:[%s923_s30 + $0x68] sm:$0xff] %v423_v39  ;;  %v426_v6 = vmax.f32 %v394_v57, 0.0  ;;  %v397_v7 = vadd.f32 %v365_v52, %v333_v58  ;;  %v398_v14 = vadd.f32 %v366_v59, %v334_v0  ;;  %v399_v15 = vadd.f32 %v367_v60, %v335_v3  ;;  %v376_v52 = vld [vmem:[%s864_s14 + $0xf0] sm:$0xff]  ;;  %v377_v61 = vld [vmem:[%s864_s14 + $0xf8] sm:$0xff]  ;;  %s475_s14 = scalar_lea.sflag [#allocation4], %s858_s7  ;;  %p698_p4 = por %p697_p3, %p696_p1 }
  0x46   : > { %456 = vst [vmem:[%s923_s30 + $0x70] sm:$0xff] %v424_v44  ;;  %v427_v12 = vmax.f32 %v395_v62, 0.0  ;;  %v428_v13 = vmax.f32 %v396_v63, 0.0  ;;  %v400_v19 = vadd.f32 %v368_v4, %v336_v8  ;;  %v337_v20 = vadd.f32 %v885_v2, %v301_v9 }
  0x47   : > { %457 = vst [vmem:[%s923_s30 + $0x78] sm:$0xff] %v425_v56  ;;  %v429_v18 = vmax.f32 %v397_v7, 0.0  ;;  %v302_v21 = vmul.f32 %v880_v1, %v266_v5  ;;  %v430_v24 = vmax.f32 %v398_v14, 0.0  ;;  %v431_v25 = vmax.f32 %v399_v15, 0.0  ;;  %p699_p7 = pnand %p698_p4, %p694_p0 }
  0x48   : > { %458 = vst [vmem:[%s923_s30 + $0x80] sm:$0xff] %v426_v6  ;;  %v303_v27 = vmul.f32 %v880_v1, %v267_v10  ;;  %v304_v28 = vmul.f32 %v880_v1, %v268_v11  ;;  %v432_v30 = vmax.f32 %v400_v19, 0.0  ;;  %v401_v31 = vadd.f32 %v369_v16, %v337_v20 }
  0x49   : > { %459 = vst [vmem:[%s923_s30 + $0x88] sm:$0xff] %v427_v12  ;;  %v338_v32 = vadd.f32 %v885_v2, %v302_v21  ;;  %v305_v35 = vmul.f32 %v880_v1, %v269_v17  ;;  %v306_v39 = vmul.f32 %v880_v1, %v270_v22  ;;  %v307_v40 = vmul.f32 %v880_v1, %v271_v23 }
  0x4a   : > { %460 = vst [vmem:[%s923_s30 + $0x90] sm:$0xff] %v428_v13  ;;  %v339_v36 = vadd.f32 %v885_v2, %v303_v27  ;;  %v340_v37 = vadd.f32 %v885_v2, %v304_v28  ;;  %v433_v42 = vmax.f32 %v401_v31, 0.0  ;;  %v308_v47 = vmul.f32 %v880_v1, %v272_v29 }
  0x4b   : > { %461 = vst [vmem:[%s923_s30 + $0x98] sm:$0xff] %v429_v18  ;;  %v402_v43 = vadd.f32 %v370_v26, %v338_v32  ;;  %v341_v44 = vadd.f32 %v885_v2, %v305_v35  ;;  %v342_v50 = vadd.f32 %v885_v2, %v306_v39  ;;  %v343_v51 = vadd.f32 %v885_v2, %v307_v40 }
  0x4c   : > { %462 = vst [vmem:[%s923_s30 + $0xa0] sm:$0xff] %v430_v24  ;;  %v403_v48 = vadd.f32 %v371_v33, %v339_v36  ;;  %v404_v49 = vadd.f32 %v372_v34, %v340_v37  ;;  %v344_v55 = vadd.f32 %v885_v2, %v308_v47  ;;  %v309_v56 = vmul.f32 %v880_v1, %v273_v41 }
  0x4d   : > { %463 = vst [vmem:[%s923_s30 + $0xa8] sm:$0xff] %v431_v25  ;;  %v434_v53 = vmax.f32 %v402_v43, 0.0  ;;  %v405_v54 = vadd.f32 %v373_v38, %v341_v44  ;;  %v406_v59 = vadd.f32 %v374_v45, %v342_v50  ;;  %v407_v60 = vadd.f32 %v375_v46, %v343_v51 }
  0x4e   : > { %464 = vst [vmem:[%s923_s30 + $0xb0] sm:$0xff] %v432_v30  ;;  %v435_v57 = vmax.f32 %v403_v48, 0.0  ;;  %v436_v58 = vmax.f32 %v404_v49, 0.0  ;;  %v408_v63 = vadd.f32 %v376_v52, %v344_v55  ;;  %v345_v1 = vadd.f32 %v885_v2, %v309_v56 }
  0x4f   : > { %465 = vst [vmem:[%s923_s30 + $0xb8] sm:$0xff] %v433_v42  ;;  %v437_v62 = vmax.f32 %v405_v54, 0.0  ;;  %v438_v0 = vmax.f32 %v406_v59, 0.0  ;;  %v439_v3 = vmax.f32 %v407_v60, 0.0 }
  0x50   : > { %466 = vst [vmem:[%s923_s30 + $0xc0] sm:$0xff] %v434_v53  ;;  %v440_v4 = vmax.f32 %v408_v63, 0.0  ;;  %v409_v5 = vadd.f32 %v377_v61, %v345_v1 }
  0x51   : > { %467 = vst [vmem:[%s923_s30 + $0xc8] sm:$0xff] %v435_v57 }
  0x52   : > { %468 = vst [vmem:[%s923_s30 + $0xd0] sm:$0xff] %v436_v58  ;;  %v441_v6 = vmax.f32 %v409_v5, 0.0 }
  0x53   : > { %469 = vst [vmem:[%s923_s30 + $0xd8] sm:$0xff] %v437_v62 }
  0x54   : > { %470 = vst [vmem:[%s923_s30 + $0xe0] sm:$0xff] %v438_v0 }
  0x55   : > { %471 = vst [vmem:[%s923_s30 + $0xe8] sm:$0xff] %v439_v3 }
  0x56   : > { %472 = vst [vmem:[%s923_s30 + $0xf0] sm:$0xff] %v440_v4 }
  0x57   : > { %473 = vst [vmem:[%s923_s30 + $0xf8] sm:$0xff] %v441_v6 }
  0x58   : > { %702 = shalt.err (!%p699_p7)
}
  0x59   : > { %s745_s7 = smov 128   ;;  %s746_s23 = smov 8  }
  0x5a   : > { %595 = dma.vmem_to_hbm [thread:$0]  (%p822_p11), %s488_s8, 4096, %s490_s10, %s475_s14, %s745_s7, %s745_s7, %s746_s23  }
  0x5b PF: > { %s504_s25 = sand.u32 1, %s729_s15   ;;  %p1094_p5 = scmp.ge.s32.totalorder %s741_s18, 2 }
  0x5c   : > { %s505_s30 = scalar_lea.sflag [#allocation4], %s504_s25 }
  0x5d   : > { %p602_p8 = pnand %p1094_p5, %p826_p12 }
  0x5f   : > { %p603_p10 = pneg %p602_p8 }
  0x61   : > { %724 = dma.done.wait (%p603_p10), %s505_s30, 4096  }
  0x62   : > { %726 = vsyncadd (%p603_p10), %s505_s30, 4294963200  ;;  %p17_p2 = scmp.ge.s32.totalorder %s797_s21, 4   ;;  %s1095_s15 = smov %s733_s16 }
  0x63   : > { %s1096_s16 = smov %s737_s17  ;;  %s1097_s17 = smov %s809_s24 }
  0x64   : > { %s1098_s18 = smov %s797_s21  ;;  %19 = sbr.rel (!%p17_p2) target bundleno = 5 (0x5), region = 84 }
  0x69   :  { %511 = vsyncpa [#allocation3], 1 }
  0x6a   :  { %513 = vsyncpa [#allocation3 + $0x1], 1 }
  0x6b   :  { %514 = vsyncpa [#allocation4], 1 }
  0x6c   :  { %516 = vsyncpa [#allocation4 + $0x1], 1 }

// kernel: bottleneck_forward.4
= control target key start
LH: loop header
LB: loop body
LE: loop exit
PB: predicated region body
PF: predicated region fallthrough
CT: control target
= control target key end

     0   :  { %9 = vsyncpa [#allocation3], 0  ;;  %s1226_s0 = inlined_call_operand.hbm [shape: f32[512,128], index: 0, kind: input, shape index: {}]   ;;  %s1227_s1 = inlined_call_operand.hbm [shape: bf16[128,128], index: 1, kind: input, shape index: {}]   ;;  %s1228_s2 = inlined_call_operand.vmem [shape: f32[512,128], index: 2, kind: output, shape index: {0}]   ;;  %s1229_s3 = inlined_call_operand.vmem [shape: f32[16,128], index: 3, kind: output, shape index: {1}]  }
   0x1   :  { %11 = vsyncpa [#allocation3 + $0x1], 0 }
   0x2   :  { %12 = vsyncpa [#allocation5], 0  ;;  %s937_s12 = smov 0   ;;  %s939_s13 = smov 0  }
   0x3   :  { %s941_s14 = smov 0   ;;  %s943_s15 = smov 0  }
   0x4 LB: > { %s956_s16 = sadd.s32 4294967295, %s910_s15   ;;  %p38_p0 = scmp.ne.s32.totalorder %s902_s13, %s898_s12  ;;  %s910_s15 = sphi %s943_s15, %s1236_s15   ;;  %s906_s14 = sphi %s941_s14, %s1235_s14   ;;  %s902_s13 = sphi %s939_s13, %s1234_s13   ;;  %s898_s12 = sphi %s937_s12, %s1233_s12  }
   0x5   : > { %p39_p1 = scmp.eq.s32.totalorder %s956_s16, 0  ;;  %p679_p2 = scmp.ge.s32.totalorder %s910_s15, 1 }
   0x6   : > { %p122_p3 = scmp.lt.s32.totalorder %s910_s15, 3  ;;  %s133_s20 = sshll.u32 %s1227_s1, 4  ;;  %s134_s20 = int_to_ptr.hbm [resolvable:$true] %s133_s20 }
   0x7   : > { %p964_p4 = por %p39_p1, %p38_p0  ;;  %s912_s22 = smov [#allocation4]  }
   0x8   : > { %p971_p5 = pnand %p679_p2, %p122_p3  ;;  %s135_s23 = sshll.u32 %s912_s22, 4  ;;  %s136_s23 = int_to_ptr.vmem [resolvable:$true] %s135_s23 }
   0x9   : > { %s980_s24 = sadd.s32 1, %s910_s15   ;;  %s913_s25 = smov 64  }
   0xa   : > { %p764_p6 = pneg %p971_p5  ;;  %s914_s26 = smov 4  }
   0xb   : > { %s22_s27 = ssub.s32 %s910_s15, %s980_s24  ;;  %s25_s28 = sadd.s32 1, %s906_s14 }
   0xc   : > { %p765_p7 = pnand %p764_p6, %p39_p1  ;;  %p23_p8 = scmp.eq.s32.totalorder %s22_s27, 0 }
   0xd   : > { %p32_p9 = scmp.ne.s32.totalorder %s906_s14, %s902_s13  ;;  %p33_p10 = scmp.eq.s32.totalorder %s910_s15, 0 }
   0xe   : > { %767 = dma.hbm_to_vmem [thread:$0]  (!%p765_p7), %s134_s20, 1024, %s136_s23, [#allocation5], %s913_s25, %s913_s25, %s914_s26  }
   0xf   : > { %p773_p11 = scmp.lt.s32.totalorder %s910_s15, 2  ;;  %p34_p12 = por %p33_p10, %p32_p9 }
  0x10   : > { %s990_s29 = scalar_select %p23_p8, %s906_s14, %s25_s28  }
  0x11   : > { %s149_s30 = sand.u32 1, %s906_s14   ;;  %s725_s5 = sshll.u32 %s910_s15, 8 }
  0x12   : > { %s682_s4 = sshll.u32 %s149_s30, 8  ;;  %s158_s8 = scalar_lea.hbm %s1226_s0, %s725_s5 }
  0x13   : > { %s153_s9 = scalar_lea.vmem [#allocation2], %s682_s4  ;;  %s159_s11 = sshll.u32 %s158_s8, 4  ;;  %s160_s11 = int_to_ptr.hbm [resolvable:$true] %s159_s11 }
  0x14   : > { %s161_s10 = sshll.u32 %s153_s9, 4  ;;  %p997_p13 = pnand %p773_p11, %p34_p12  ;;  %s162_s10 = int_to_ptr.vmem [resolvable:$true] %s161_s10 }
  0x15   : > { %s150_s18 = scalar_lea.sflag [#allocation3], %s149_s30  ;;  %s842_s19 = sshra.s32 %s160_s11, 4  ;;  %s843_s19 = int_to_ptr.hbm [resolvable:$true] %s842_s19 }
  0x16   : > { %s844_s20 = scalar_lea.hbm %s843_s19, 256  ;;  %p846_p2 = pneg %p997_p13 }
  0x17   : > { %p845_p0 = scmp.ne.s32.totalorder %s843_s19, %s844_s20  ;;  %s849_s23 = scalar_lea.hbm %s1226_s0, 512 }
  0x18   : > { %p850_p7 = scmp.lt.s32.totalorder %s843_s19, %s1226_s0  ;;  %p851_p8 = scmp.lt.s32.totalorder %s849_s23, %s844_s20 }
  0x19   : > { %p847_p3 = pnand %p846_p2, %p845_p0 }
  0x1a   : > { %p852_p9 = por %p851_p8, %p850_p7 }
  0x1b   : > { %p848_p6 = pneg %p847_p3 }
  0x1d   : > { %p853_p10 = pnand %p852_p9, %p848_p6 }
  0x1f   : > { %856 = shalt.err (!%p853_p10)
}
  0x20   : > { %s915_s27 = smov 128   ;;  %s916_s28 = smov 8  }
  0x21   : > { %771 = dma.hbm_to_vmem [thread:$0]  (!%p997_p13), %s160_s11, 4096, %s162_s10, %s150_s18, %s915_s27, %s915_s27, %s916_s28  }
  0x22   : > { %173 = sbr.rel (%p971_p5) target bundleno = 323 (0x143), region = 28  ;;  %s175_s30 = sand.u32 (!%p971_p5), 1, %s902_s13  }
  0x23   : > { %s686_s4 = sshll.u32 (!%p971_p5), %s175_s30, 8  ;;  %s176_s5 = scalar_lea.sflag (!%p971_p5), [#allocation3], %s175_s30 }
  0x24   : > { %s1014_s6 = scalar_lea.vmem (!%p971_p5), [#allocation2], %s686_s4 }
  0x27   : > { %889 = dma.done.wait (%p964_p4), %s176_s5, 4096  }
  0x28   : > { %891 = vsyncadd (%p964_p4), %s176_s5, 4294963200 }
  0x29   : > { %893 = dma.done.wait (%p39_p1), [#allocation5], 1024  }
  0x2a   : > { %895 = vsyncadd (%p39_p1), [#allocation5], 4294966272  ;;  %v733_v0 = vld [vmem:[#allocation4 + $0x38] sm:$0xff]  ;;  %v732_v1 = vld [vmem:[#allocation4 + $0x30] sm:$0xff]  ;;  %s688_s17 = sshll.u32 %s956_s16, 5  ;;  %p219_p4 = scmp.lt.s32.totalorder %s956_s16, 1 }
  0x2b   : > { %335 = vmatpush.bf16.msra.mxu0 %v733_v0  ;;  %734 = vmatpush.bf16.msra.mxu1 %v733_v0  ;;  %v731_v2 = vld [vmem:[#allocation4 + $0x28] sm:$0xff]  ;;  %v730_v3 = vld [vmem:[#allocation4 + $0x20] sm:$0xff]  ;;  %v729_v4 = vld [vmem:[#allocation4 + $0x18] sm:$0xff]  ;;  %p214_p1 = scmp.lt.s32.totalorder %s688_s17, 63 }
  0x2c   : > { %735 = vmatpush.bf16.msra.mxu2 %v733_v0  ;;  %736 = vmatpush.bf16.msra.mxu3 %v733_v0  ;;  %v728_v5 = vld [vmem:[#allocation4 + $0x10] sm:$0xff]  ;;  %v727_v6 = vld [vmem:[#allocation4 + $0x8] sm:$0xff]  ;;  %v726_v7 = vld [vmem:[#allocation4] sm:$0xff]  ;;  %s1240_s16 = smov (!%p219_p4, %s956_s16), 1 }
  0x2d   : > { %v223_v8 = vld [vmem:[%s1014_s6] sm:$0xff]  ;;  %v224_v9 = vld [vmem:[%s1014_s6 + $0x8] sm:$0xff]  ;;  %v225_v20 = vld [vmem:[%s1014_s6 + $0x10] sm:$0xff]  ;;  %s1238_s17 = smov (!%p214_p1, %s688_s17), 63  ;;  %s690_s10 = sshll.u32 %s1240_s16, 3 }
  0x2e   : > { %v231_v10 = vld [vmem:[%s1014_s6 + $0x40] sm:$0xff]  ;;  %v232_v11 = vld [vmem:[%s1014_s6 + $0x48] sm:$0xff]  ;;  %v255_v14 = vpack.c.bf16 %v224_v9, %v223_v8  ;;  %v226_v21 = vld [vmem:[%s1014_s6 + $0x18] sm:$0xff]  ;;  %s689_s21 = sshll.u32 %s1238_s17, 3  ;;  %s222_s18 = scalar_lea.vmem %s1229_s3, %s690_s10 }
  0x2f   : > { %336 = vmatpush.bf16.msra.mxu0 %v732_v1  ;;  %737 = vmatpush.bf16.msra.mxu1 %v732_v1  ;;  %v239_v12 = vld [vmem:[%s1014_s6 + $0x80] sm:$0xff]  ;;  %v240_v13 = vld [vmem:[%s1014_s6 + $0x88] sm:$0xff]  ;;  %v259_v15 = vpack.c.bf16 %v232_v11, %v231_v10  ;;  %v233_v22 = vld [vmem:[%s1014_s6 + $0x50] sm:$0xff]  ;;  %v256_v26 = vpack.c.bf16 %v226_v21, %v225_v20  ;;  %s1060_s9 = scalar_lea.vmem %s1228_s2, %s689_s21 }
  0x30   : > { %738 = vmatpush.bf16.msra.mxu2 %v732_v1  ;;  %739 = vmatpush.bf16.msra.mxu3 %v732_v1  ;;  %v263_v16 = vpack.c.bf16 %v240_v13, %v239_v12  ;;  %v247_v17 = vld [vmem:[%s1014_s6 + $0xc0] sm:$0xff]  ;;  %v248_v18 = vld [vmem:[%s1014_s6 + $0xc8] sm:$0xff]  ;;  %v234_v23 = vld [vmem:[%s1014_s6 + $0x58] sm:$0xff] }
  0x31   : > { %v267_v19 = vpack.c.bf16 %v248_v18, %v247_v17  ;;  %v241_v24 = vld [vmem:[%s1014_s6 + $0x90] sm:$0xff]  ;;  %v242_v25 = vld [vmem:[%s1014_s6 + $0x98] sm:$0xff]  ;;  %v260_v27 = vpack.c.bf16 %v234_v23, %v233_v22  ;;  %v227_v32 = vld [vmem:[%s1014_s6 + $0x20] sm:$0xff] }
  0x32   : > { %v264_v28 = vpack.c.bf16 %v242_v25, %v241_v24  ;;  %v249_v29 = vld [vmem:[%s1014_s6 + $0xd0] sm:$0xff]  ;;  %v250_v30 = vld [vmem:[%s1014_s6 + $0xd8] sm:$0xff]  ;;  %v228_v33 = vld [vmem:[%s1014_s6 + $0x28] sm:$0xff] }
  0x33   : > { %337 = vmatpush.bf16.msra.mxu0 %v731_v2  ;;  %740 = vmatpush.bf16.msra.mxu1 %v731_v2  ;;  %v268_v31 = vpack.c.bf16 %v250_v30, %v249_v29  ;;  %v235_v34 = vld [vmem:[%s1014_s6 + $0x60] sm:$0xff]  ;;  %v236_v35 = vld [vmem:[%s1014_s6 + $0x68] sm:$0xff]  ;;  %v257_v38 = vpack.c.bf16 %v228_v33, %v227_v32  ;;  %v229_v44 = vld [vmem:[%s1014_s6 + $0x30] sm:$0xff] }
  0x34   : > { %741 = vmatpush.bf16.msra.mxu2 %v731_v2  ;;  %742 = vmatpush.bf16.msra.mxu3 %v731_v2  ;;  %v243_v36 = vld [vmem:[%s1014_s6 + $0xa0] sm:$0xff]  ;;  %v244_v37 = vld [vmem:[%s1014_s6 + $0xa8] sm:$0xff]  ;;  %v261_v39 = vpack.c.bf16 %v236_v35, %v235_v34  ;;  %v230_v45 = vld [vmem:[%s1014_s6 + $0x38] sm:$0xff] }
  0x35   : > { %v251_v40 = vld [vmem:[%s1014_s6 + $0xe0] sm:$0xff]  ;;  %v252_v41 = vld [vmem:[%s1014_s6 + $0xe8] sm:$0xff]  ;;  %v265_v42 = vpack.c.bf16 %v244_v37, %v243_v36  ;;  %v237_v46 = vld [vmem:[%s1014_s6 + $0x70] sm:$0xff]  ;;  %v258_v50 = vpack.c.bf16 %v230_v45, %v229_v44 }
  0x36   : > { %v269_v43 = vpack.c.bf16 %v252_v41, %v251_v40  ;;  %v238_v47 = vld [vmem:[%s1014_s6 + $0x78] sm:$0xff]  ;;  %v245_v48 = vld [vmem:[%s1014_s6 + $0xb0] sm:$0xff] }
  0x37   : > { %338 = vmatpush.bf16.msra.mxu0 %v730_v3  ;;  %743 = vmatpush.bf16.msra.mxu1 %v730_v3  ;;  %v246_v49 = vld [vmem:[%s1014_s6 + $0xb8] sm:$0xff]  ;;  %v262_v51 = vpack.c.bf16 %v238_v47, %v237_v46  ;;  %v253_v52 = vld [vmem:[%s1014_s6 + $0xf0] sm:$0xff] }
  0x38   : > { %744 = vmatpush.bf16.msra.mxu2 %v730_v3  ;;  %745 = vmatpush.bf16.msra.mxu3 %v730_v3  ;;  %v254_v53 = vld [vmem:[%s1014_s6 + $0xf8] sm:$0xff]  ;;  %v266_v54 = vpack.c.bf16 %v246_v49, %v245_v48 }
  0x39   : > { %v270_v55 = vpack.c.bf16 %v254_v53, %v253_v52 }
  0x3b   : > { %339 = vmatpush.bf16.msra.mxu0 %v729_v4  ;;  %746 = vmatpush.bf16.msra.mxu1 %v729_v4 }
  0x3c   : > { %747 = vmatpush.bf16.msra.mxu2 %v729_v4  ;;  %748 = vmatpush.bf16.msra.mxu3 %v729_v4 }
  0x3f   : > { %340 = vmatpush.bf16.msra.mxu0 %v728_v5  ;;  %749 = vmatpush.bf16.msra.mxu1 %v728_v5 }
  0x40   : > { %750 = vmatpush.bf16.msra.mxu2 %v728_v5  ;;  %751 = vmatpush.bf16.msra.mxu3 %v728_v5 }
  0x43   : > { %341 = vmatpush.bf16.msra.mxu0 %v727_v6  ;;  %752 = vmatpush.bf16.msra.mxu1 %v727_v6 }
  0x44   : > { %753 = vmatpush.bf16.msra.mxu2 %v727_v6  ;;  %754 = vmatpush.bf16.msra.mxu3 %v727_v6 }
  0x47   : > { %342 = vmatpush.bf16.msra.mxu0 %v726_v7  ;;  %755 = vmatpush.bf16.msra.mxu1 %v726_v7 }
  0x48   : > { %756 = vmatpush.bf16.msra.mxu2 %v726_v7  ;;  %757 = vmatpush.bf16.msra.mxu3 %v726_v7 }
  0x4a   : > { %343 = vmatmul.bf16.vlgmr.msra.gmra.mxu0 %v255_v14  ;;  %363 = vmatmul.bf16.vlgmr.msra.gmra.mxu1 %v259_v15 }
  0x4b   : > { %383 = vmatmul.bf16.vlgmr.msra.gmra.mxu2 %v263_v16  ;;  %403 = vmatmul.bf16.vlgmr.msra.gmra.mxu3 %v267_v19 }
  0x5a   : > { %348 = vmatmul.bf16.gmra.mxu0 %v256_v26  ;;  %368 = vmatmul.bf16.gmra.mxu1 %v260_v27 }
  0x5b   : > { %388 = vmatmul.bf16.gmra.mxu2 %v264_v28  ;;  %408 = vmatmul.bf16.gmra.mxu3 %v268_v31 }
  0x6a   : > { %353 = vmatmul.bf16.gmra.mxu0 %v257_v38  ;;  %373 = vmatmul.bf16.gmra.mxu1 %v261_v39 }
  0x6b   : > { %393 = vmatmul.bf16.gmra.mxu2 %v265_v42  ;;  %413 = vmatmul.bf16.gmra.mxu3 %v269_v43 }
  0x7a   : > { %358 = vmatmul.bf16.gmra.mxu0 %v258_v50  ;;  %378 = vmatmul.bf16.gmra.mxu1 %v262_v51 }
  0x7b   : > { %398 = vmatmul.bf16.gmra.mxu2 %v266_v54  ;;  %418 = vmatmul.bf16.gmra.mxu3 %v270_v55 }
  0xc7   : > { %v344_v56 = vpop.f32.mrf.mxu0  ;;  %v1062_v57 = vpop.f32.mrf.mxu1 }
  0xc8   : > { %424 = vst [vmem:[%s1060_s9] sm:$0xff] %v344_v56  ;;  %v493_v15 = vmul.f32 %v344_v56, %v344_v56  ;;  %v501_v43 = vmul.f32 %v1062_v57, %v1062_v57 }
  0xc9   : > { %432 = vst [vmem:[%s1060_s9 + $0x40] sm:$0xff] %v1062_v57 }
  0xce   : > { %v1067_v58 = vpop.f32.mrf.mxu2  ;;  %v1074_v61 = vpop.f32.mrf.mxu3 }
  0xcf   : > { %v346_v59 = vpop.f32.mrf.mxu0  ;;  %v1069_v60 = vpop.f32.mrf.mxu1  ;;  %440 = vst [vmem:[%s1060_s9 + $0x80] sm:$0xff] %v1067_v58 }
  0xd0   : > { %425 = vst [vmem:[%s1060_s9 + $0x8] sm:$0xff] %v346_v59  ;;  %v494_v14 = vmul.f32 %v346_v59, %v346_v59  ;;  %v456_v16 = vadd.f32 %v346_v59, %v344_v56  ;;  %v502_v46 = vmul.f32 %v1069_v60, %v1069_v60 }
  0xd1   : > { %433 = vst [vmem:[%s1060_s9 + $0x48] sm:$0xff] %v1069_v60 }
  0xd2   : > { %448 = vst [vmem:[%s1060_s9 + $0xc0] sm:$0xff] %v1074_v61  ;;  %v525_v18 = vadd.f32 %v494_v14, %v493_v15 }
  0xd6   : > { %v1080_v62 = vpop.f32.mrf.mxu2  ;;  %v1087_v1 = vpop.f32.mrf.mxu3 }
  0xd7   : > { %v349_v63 = vpop.f32.mrf.mxu0  ;;  %v1082_v0 = vpop.f32.mrf.mxu1  ;;  %441 = vst [vmem:[%s1060_s9 + $0x88] sm:$0xff] %v1080_v62 }
  0xd8   : > { %426 = vst [vmem:[%s1060_s9 + $0x10] sm:$0xff] %v349_v63  ;;  %v495_v17 = vmul.f32 %v349_v63, %v349_v63  ;;  %v457_v19 = vadd.f32 %v456_v16, %v349_v63  ;;  %v503_v49 = vmul.f32 %v1082_v0, %v1082_v0 }
  0xd9   : > { %434 = vst [vmem:[%s1060_s9 + $0x50] sm:$0xff] %v1082_v0 }
  0xda   : > { %449 = vst [vmem:[%s1060_s9 + $0xc8] sm:$0xff] %v1087_v1  ;;  %v526_v24 = vadd.f32 %v525_v18, %v495_v17  ;;  %v509_v17 = vmul.f32 %v1067_v58, %v1067_v58 }
  0xde   : > { %v1093_v2 = vpop.f32.mrf.mxu2  ;;  %v1100_v5 = vpop.f32.mrf.mxu3 }
  0xdf   : > { %v351_v3 = vpop.f32.mrf.mxu0  ;;  %v1095_v4 = vpop.f32.mrf.mxu1  ;;  %442 = vst [vmem:[%s1060_s9 + $0x90] sm:$0xff] %v1093_v2 }
  0xe0   : > { %427 = vst [vmem:[%s1060_s9 + $0x18] sm:$0xff] %v351_v3  ;;  %v496_v20 = vmul.f32 %v351_v3, %v351_v3  ;;  %v458_v25 = vadd.f32 %v457_v19, %v351_v3  ;;  %v504_v53 = vmul.f32 %v1095_v4, %v1095_v4 }
  0xe1   : > { %435 = vst [vmem:[%s1060_s9 + $0x58] sm:$0xff] %v1095_v4 }
  0xe2   : > { %450 = vst [vmem:[%s1060_s9 + $0xd0] sm:$0xff] %v1100_v5  ;;  %v527_v28 = vadd.f32 %v526_v24, %v496_v20 }
  0xe6   : > { %v1106_v6 = vpop.f32.mrf.mxu2  ;;  %v1113_v9 = vpop.f32.mrf.mxu3 }
  0xe7   : > { %v354_v7 = vpop.f32.mrf.mxu0  ;;  %v1108_v8 = vpop.f32.mrf.mxu1  ;;  %443 = vst [vmem:[%s1060_s9 + $0x98] sm:$0xff] %v1106_v6 }
  0xe8   : > { %428 = vst [vmem:[%s1060_s9 + $0x20] sm:$0xff] %v354_v7  ;;  %v497_v26 = vmul.f32 %v354_v7, %v354_v7  ;;  %v459_v29 = vadd.f32 %v458_v25, %v354_v7  ;;  %v512_v25 = vmul.f32 %v1106_v6, %v1106_v6 }
  0xe9   : > { %436 = vst [vmem:[%s1060_s9 + $0x60] sm:$0xff] %v1108_v8 }
  0xea   : > { %451 = vst [vmem:[%s1060_s9 + $0xd8] sm:$0xff] %v1113_v9  ;;  %v528_v31 = vadd.f32 %v527_v28, %v497_v26 }
  0xee   : > { %v1119_v10 = vpop.f32.mrf.mxu2  ;;  %v1126_v13 = vpop.f32.mrf.mxu3 }
  0xef   : > { %v356_v11 = vpop.f32.mrf.mxu0  ;;  %v1121_v12 = vpop.f32.mrf.mxu1  ;;  %444 = vst [vmem:[%s1060_s9 + $0xa0] sm:$0xff] %v1119_v10 }
  0xf0   : > { %429 = vst [vmem:[%s1060_s9 + $0x28] sm:$0xff] %v356_v11  ;;  %v498_v30 = vmul.f32 %v356_v11, %v356_v11  ;;  %v460_v32 = vadd.f32 %v459_v29, %v356_v11  ;;  %v506_v63 = vmul.f32 %v1121_v12, %v1121_v12 }
  0xf1   : > { %437 = vst [vmem:[%s1060_s9 + $0x68] sm:$0xff] %v1121_v12 }
  0xf2   : > { %452 = vst [vmem:[%s1060_s9 + $0xe0] sm:$0xff] %v1126_v13  ;;  %v529_v34 = vadd.f32 %v528_v31, %v498_v30 }
  0xf6   : > { %v1132_v21 = vpop.f32.mrf.mxu2  ;;  %v1137_v27 = vpop.f32.mrf.mxu3 }
  0xf7   : > { %v359_v22 = vpop.f32.mrf.mxu0  ;;  %v379_v23 = vpop.f32.mrf.mxu1  ;;  %445 = vst [vmem:[%s1060_s9 + $0xa8] sm:$0xff] %v1132_v21  ;;  %v514_v31 = vmul.f32 %v1132_v21, %v1132_v21 }
  0xf8   : > { %430 = vst [vmem:[%s1060_s9 + $0x30] sm:$0xff] %v359_v22  ;;  %v499_v33 = vmul.f32 %v359_v22, %v359_v22  ;;  %v461_v35 = vadd.f32 %v460_v32, %v359_v22  ;;  %v507_v11 = vmul.f32 %v379_v23, %v379_v23 }
  0xf9   : > { %438 = vst [vmem:[%s1060_s9 + $0x70] sm:$0xff] %v379_v23 }
  0xfa   : > { %453 = vst [vmem:[%s1060_s9 + $0xe8] sm:$0xff] %v1137_v27  ;;  %v530_v39 = vadd.f32 %v529_v34, %v499_v33 }
  0xfe   : > { %v399_v36 = vpop.f32.mrf.mxu2  ;;  %v1144_v42 = vpop.f32.mrf.mxu3 }
  0xff   : > { %v361_v37 = vpop.f32.mrf.mxu0  ;;  %v381_v38 = vpop.f32.mrf.mxu1  ;;  %446 = vst [vmem:[%s1060_s9 + $0xb0] sm:$0xff] %v399_v36  ;;  %v515_v34 = vmul.f32 %v399_v36, %v399_v36 }
 0x100   : > { %431 = vst [vmem:[%s1060_s9 + $0x38] sm:$0xff] %v361_v37  ;;  %v462_v40 = vadd.f32 %v461_v35, %v361_v37  ;;  %v500_v41 = vmul.f32 %v361_v37, %v361_v37 }
 0x101   : > { %439 = vst [vmem:[%s1060_s9 + $0x78] sm:$0xff] %v381_v38 }
 0x102   : > { %v463_v44 = vadd.f32 %v462_v40, %v1062_v57  ;;  %v531_v45 = vadd.f32 %v530_v39, %v500_v41  ;;  %454 = vst [vmem:[%s1060_s9 + $0xf0] sm:$0xff] %v1144_v42  ;;  %v505_v57 = vmul.f32 %v1108_v8, %v1108_v8 }
 0x104   : > { %v464_v47 = vadd.f32 %v463_v44, %v1069_v60  ;;  %v532_v48 = vadd.f32 %v531_v45, %v501_v43  ;;  %v520_v45 = vmul.f32 %v1113_v9, %v1113_v9 }
 0x106   : > { %v465_v50 = vadd.f32 %v464_v47, %v1082_v0  ;;  %v533_v51 = vadd.f32 %v532_v48, %v502_v46  ;;  %v401_v52 = vpop.f32.mrf.mxu2  ;;  %v421_v56 = vpop.f32.mrf.mxu3  ;;  %v521_v47 = vmul.f32 %v1126_v13, %v1126_v13 }
 0x107   : > { %447 = vst [vmem:[%s1060_s9 + $0xb8] sm:$0xff] %v401_v52 }
 0x108   : > { %v534_v54 = vadd.f32 %v533_v51, %v503_v49  ;;  %v466_v55 = vadd.f32 %v465_v50, %v1095_v4  ;;  %455 = vst [vmem:[%s1060_s9 + $0xf8] sm:$0xff] %v421_v56  ;;  %v508_v4 = vmul.f32 %v381_v38, %v381_v38  ;;  %v522_v50 = vmul.f32 %v1137_v27, %v1137_v27 }
 0x10a   : > { %v467_v59 = vadd.f32 %v466_v55, %v1108_v8  ;;  %v535_v60 = vadd.f32 %v534_v54, %v504_v53  ;;  %v510_v8 = vmul.f32 %v1080_v62, %v1080_v62  ;;  %v523_v53 = vmul.f32 %v1144_v42, %v1144_v42 }
 0x10b   : > { %v524_v55 = vmul.f32 %v421_v56, %v421_v56 }
 0x10c   : > { %v468_v0 = vadd.f32 %v467_v59, %v1121_v12  ;;  %v536_v3 = vadd.f32 %v535_v60, %v505_v57  ;;  %v511_v12 = vmul.f32 %v1093_v2, %v1093_v2 }
 0x10e   : > { %v469_v7 = vadd.f32 %v468_v0, %v379_v23  ;;  %v537_v14 = vadd.f32 %v536_v3, %v506_v63  ;;  %v562_v63 = vlaneseq }
 0x110   : > { %v538_v15 = vadd.f32 %v537_v14, %v507_v11  ;;  %v470_v16 = vadd.f32 %v469_v7, %v381_v38  ;;  %v516_v38 = vmul.f32 %v401_v52, %v401_v52  ;;  %v563_v11 = vshrl.u32 %v562_v63, 7 }
 0x112   : > { %v471_v18 = vadd.f32 %v470_v16, %v1067_v58  ;;  %v539_v19 = vadd.f32 %v538_v15, %v508_v4  ;;  %v513_v58 = vmul.f32 %v1119_v10, %v1119_v10  ;;  %vm565_vm0 = vcmp.eq.s32.totalorder %v563_v11, 1 }
 0x113   : > { %vm564_vm1 = vcmp.eq.s32.totalorder %v563_v11, 0 }
 0x114   : > { %v472_v20 = vadd.f32 %v471_v18, %v1080_v62  ;;  %v540_v22 = vadd.f32 %v539_v19, %v509_v17 }
 0x116   : > { %v473_v23 = vadd.f32 %v472_v20, %v1093_v2  ;;  %v541_v24 = vadd.f32 %v540_v22, %v510_v8 }
 0x118   : > { %v542_v26 = vadd.f32 %v541_v24, %v511_v12  ;;  %v474_v28 = vadd.f32 %v473_v23, %v1106_v6  ;;  %v517_v6 = vmul.f32 %v1074_v61, %v1074_v61 }
 0x11a   : > { %v475_v29 = vadd.f32 %v474_v28, %v1119_v10  ;;  %v543_v30 = vadd.f32 %v542_v26, %v512_v25  ;;  %v518_v10 = vmul.f32 %v1087_v1, %v1087_v1 }
 0x11c   : > { %v476_v62 = vadd.f32 %v475_v29, %v1132_v21  ;;  %v544_v32 = vadd.f32 %v543_v30, %v513_v58  ;;  %v519_v21 = vmul.f32 %v1100_v5, %v1100_v5 }
 0x11e   : > { %v545_v2 = vadd.f32 %v544_v32, %v514_v31  ;;  %v477_v33 = vadd.f32 %v476_v62, %v399_v36 }
 0x120   : > { %v546_v35 = vadd.f32 %v545_v2, %v515_v34  ;;  %v478_v37 = vadd.f32 %v477_v33, %v401_v52 }
 0x122   : > { %v479_v39 = vadd.f32 %v478_v37, %v1074_v61  ;;  %v547_v40 = vadd.f32 %v546_v35, %v516_v38 }
 0x124   : > { %v480_v41 = vadd.f32 %v479_v39, %v1087_v1  ;;  %v548_v43 = vadd.f32 %v547_v40, %v517_v6 }
 0x126   : > { %v481_v36 = vadd.f32 %v480_v41, %v1100_v5  ;;  %v549_v44 = vadd.f32 %v548_v43, %v518_v10 }
 0x128   : > { %v550_v46 = vadd.f32 %v549_v44, %v519_v21  ;;  %v482_v61 = vadd.f32 %v481_v36, %v1113_v9 }
 0x12a   : > { %v483_v48 = vadd.f32 %v482_v61, %v1126_v13  ;;  %v551_v1 = vadd.f32 %v550_v46, %v520_v45 }
 0x12c   : > { %v484_v49 = vadd.f32 %v483_v48, %v1137_v27  ;;  %v552_v5 = vadd.f32 %v551_v1, %v521_v47 }
 0x12e   : > { %v553_v51 = vadd.f32 %v552_v5, %v522_v50  ;;  %v485_v52 = vadd.f32 %v484_v49, %v1144_v42 }
 0x130   : > { %v554_v9 = vadd.f32 %v553_v51, %v523_v53  ;;  %v486_v54 = vadd.f32 %v485_v52, %v421_v56 }
 0x132   : > { %v487_v57 = vrot.slane %v486_v54, 4  ;;  %v555_v59 = vadd.f32 %v554_v9, %v524_v55 }
 0x134   : > { %v488_v13 = vadd.f32 %v487_v57, %v486_v54  ;;  %v556_v60 = vrot.slane %v555_v59, 4 }
 0x136   : > { %v489_v0 = vrot.slane %v488_v13, 2  ;;  %v557_v3 = vadd.f32 %v556_v60, %v555_v59 }
 0x138   : > { %v490_v27 = vadd.f32 %v489_v0, %v488_v13  ;;  %v558_v7 = vrot.slane %v557_v3, 2 }
 0x13a   : > { %v559_v14 = vadd.f32 %v558_v7, %v557_v3  ;;  %v491_v15 = vrot.slane %v490_v27, 1 }
 0x13c   : > { %v560_v16 = vrot.slane %v559_v14, 1  ;;  %v492_v56 = vadd.f32 %v491_v15, %v490_v27 }
 0x13e   : > { %v561_v42 = vadd.f32 %v560_v16, %v559_v14 }
 0x140   : > { %v566_v4 = vsel %vm565_vm0, %v561_v42, 0.0 }
 0x141   : > { %v567_v17 = vsel %vm564_vm1, %v492_v56, %v566_v4 }
 0x142   : > { %568 = vst [vmem:[%s222_s18] sm:$0xff] %v567_v17 }
 0x143 PF: > { %p15_p5 = scmp.ge.s32.totalorder %s980_s24, 4   ;;  %s1233_s12 = smov %s902_s13 }
 0x144   : > { %s1234_s13 = smov %s906_s14  ;;  %s1235_s14 = smov %s990_s29 }
 0x145   : > { %s1236_s15 = smov %s980_s24  ;;  %17 = sbr.rel (!%p15_p5) target bundleno = 4 (0x4), region = 84 }
 0x14a   :  { %605 = vsyncpa [#allocation3], 1 }
 0x14b   :  { %607 = vsyncpa [#allocation3 + $0x1], 1 }
 0x14c   :  { %608 = vsyncpa [#allocation5], 1 }

// kernel: bottleneck_forward.6
= control target key start
LH: loop header
LB: loop body
LE: loop exit
PB: predicated region body
PF: predicated region fallthrough
CT: control target
= control target key end

     0   :  { %11 = vsyncpa [#allocation3], 0  ;;  %s981_s18 = smov 0   ;;  %s1273_s0 = inlined_call_operand.vmem [shape: f32[512,128], index: 0, kind: input, shape index: {}]   ;;  %s1274_s1 = inlined_call_operand.vmem [shape: f32[1,128], index: 1, kind: input, shape index: {}]   ;;  %s1275_s2 = inlined_call_operand.vmem [shape: f32[1,128], index: 2, kind: input, shape index: {}]   ;;  %s1276_s3 = inlined_call_operand.hbm [shape: bf16[128,128], index: 3, kind: input, shape index: {}]   ;;  %s1277_s4 = inlined_call_operand.vmem [shape: f32[512,128], index: 4, kind: output, shape index: {0}]   ;;  %s1278_s5 = inlined_call_operand.vmem [shape: f32[16,128], index: 5, kind: output, shape index: {1}]  }
   0x1 LB: > { %s180_s21 = sshll.u32 %s1276_s3, 4  ;;  %s990_s22 = sadd.s32 4294967295, %s946_s18   ;;  %s946_s18 = sphi %s981_s18, %s17_s18   ;;  %s181_s21 = int_to_ptr.hbm [resolvable:$true] %s180_s21 }
   0x2   : > { %p807_p0 = scmp.ge.s32.totalorder %s946_s18, 1  ;;  %p163_p1 = scmp.lt.s32.totalorder %s946_s18, 3 }
   0x3   : > { %p891_p2 = scmp.eq.s32.totalorder %s990_s22, 0  ;;  %s948_s23 = smov [#allocation2]  }
   0x4   : > { %p164_p3 = pnand %p807_p0, %p163_p1  ;;  %s182_s24 = sshll.u32 %s948_s23, 4  ;;  %s183_s24 = int_to_ptr.vmem [resolvable:$true] %s182_s24 }
   0x5   : > { %s949_s25 = smov 64   ;;  %s950_s26 = smov 4  }
   0x6   : > { %p887_p4 = pneg %p164_p3  ;;  %207 = sbr.rel (%p164_p3) target bundleno = 293 (0x125), region = 36 }
   0x8   : > { %p888_p5 = pnand %p891_p2, %p887_p4 }
   0xa   : > { %890 = dma.hbm_to_vmem [thread:$0]  (!%p888_p5), %s181_s21, 1024, %s183_s24, [#allocation3], %s949_s25, %s949_s25, %s950_s26  }
   0xb   : > { %941 = dma.done.wait (%p891_p2), [#allocation3], 1024  }
   0xc   : > { %943 = vsyncadd (%p891_p2), [#allocation3], 4294966272  ;;  %s812_s27 = sshll.u32 %s990_s22, 5  ;;  %v858_v0 = vld [vmem:[#allocation2 + $0x38] sm:$0xff]  ;;  %v857_v1 = vld [vmem:[#allocation2 + $0x30] sm:$0xff]  ;;  %p252_p7 = scmp.lt.s32.totalorder %s990_s22, 1 }
   0xd   : > { %p241_p6 = scmp.lt.s32.totalorder %s812_s27, 63  ;;  %472 = vmatpush.bf16.msra.mxu0 %v858_v0  ;;  %859 = vmatpush.bf16.msra.mxu1 %v858_v0  ;;  %v856_v2 = vld [vmem:[#allocation2 + $0x28] sm:$0xff]  ;;  %v855_v3 = vld [vmem:[#allocation2 + $0x20] sm:$0xff]  ;;  %v854_v4 = vld [vmem:[#allocation2 + $0x18] sm:$0xff] }
   0xe   : > { %860 = vmatpush.bf16.msra.mxu2 %v858_v0  ;;  %861 = vmatpush.bf16.msra.mxu3 %v858_v0  ;;  %v1010_v6 = vld [vmem:[%s1274_s1] ss:$0 sm:$0xff]  ;;  %v853_v17 = vld [vmem:[#allocation2 + $0x10] sm:$0xff]  ;;  %v852_v24 = vld [vmem:[#allocation2 + $0x8] sm:$0xff]  ;;  %s1282_s22 = smov (!%p252_p7, %s990_s22), 1 }
   0xf   : > { %s1280_s27 = smov (!%p241_p6, %s812_s27), 63  ;;  %v1022_v14 = vld [vmem:[%s1275_s2] ss:$0 sm:$0xff]  ;;  %s816_s14 = sshll.u32 %s1282_s22, 3 }
  0x10   : > { %s813_s28 = sshll.u32 %s1280_s27, 3  ;;  %v851_v31 = vld [vmem:[#allocation2] sm:$0xff]  ;;  %s255_s17 = scalar_lea.vmem %s1278_s5, %s816_s14 }
  0x11   : > { %473 = vmatpush.bf16.msra.mxu0 %v857_v1  ;;  %862 = vmatpush.bf16.msra.mxu1 %v857_v1  ;;  %s1004_s6 = scalar_lea.vmem %s1273_s0, %s813_s28  ;;  %s1117_s13 = scalar_lea.vmem %s1277_s4, %s813_s28 }
  0x12   : > { %863 = vmatpush.bf16.msra.mxu2 %v857_v1  ;;  %864 = vmatpush.bf16.msra.mxu3 %v857_v1  ;;  %v256_v5 = vld [vmem:[%s1004_s6] sm:$0xff]  ;;  %v257_v7 = vld [vmem:[%s1004_s6 + $0x8] sm:$0xff]  ;;  %v258_v40 = vld [vmem:[%s1004_s6 + $0x10] sm:$0xff] }
  0x13   : > { %v264_v8 = vld [vmem:[%s1004_s6 + $0x40] sm:$0xff]  ;;  %v265_v9 = vld [vmem:[%s1004_s6 + $0x48] sm:$0xff]  ;;  %v292_v12 = vmul.f32 %v1010_v6, %v256_v5  ;;  %v293_v13 = vmul.f32 %v1010_v6, %v257_v7  ;;  %v259_v42 = vld [vmem:[%s1004_s6 + $0x18] sm:$0xff]  ;;  %v294_v50 = vmul.f32 %v1010_v6, %v258_v40 }
  0x14   : > { %v272_v10 = vld [vmem:[%s1004_s6 + $0x80] sm:$0xff]  ;;  %v273_v11 = vld [vmem:[%s1004_s6 + $0x88] sm:$0xff]  ;;  %v300_v15 = vmul.f32 %v1010_v6, %v264_v8  ;;  %v301_v16 = vmul.f32 %v1010_v6, %v265_v9  ;;  %v266_v44 = vld [vmem:[%s1004_s6 + $0x50] sm:$0xff]  ;;  %v295_v52 = vmul.f32 %v1010_v6, %v259_v42 }
  0x15   : > { %474 = vmatpush.bf16.msra.mxu0 %v856_v2  ;;  %865 = vmatpush.bf16.msra.mxu1 %v856_v2  ;;  %v308_v18 = vmul.f32 %v1010_v6, %v272_v10  ;;  %v309_v19 = vmul.f32 %v1010_v6, %v273_v11  ;;  %v328_v20 = vadd.f32 %v1022_v14, %v292_v12  ;;  %v280_v34 = vld [vmem:[%s1004_s6 + $0xc0] sm:$0xff]  ;;  %v281_v35 = vld [vmem:[%s1004_s6 + $0xc8] sm:$0xff]  ;;  %v267_v45 = vld [vmem:[%s1004_s6 + $0x58] sm:$0xff] }
  0x16   : > { %866 = vmatpush.bf16.msra.mxu2 %v856_v2  ;;  %867 = vmatpush.bf16.msra.mxu3 %v856_v2  ;;  %v329_v21 = vadd.f32 %v1022_v14, %v293_v13  ;;  %v336_v22 = vadd.f32 %v1022_v14, %v300_v15  ;;  %v337_v23 = vadd.f32 %v1022_v14, %v301_v16  ;;  %v274_v47 = vld [vmem:[%s1004_s6 + $0x90] sm:$0xff]  ;;  %v275_v48 = vld [vmem:[%s1004_s6 + $0x98] sm:$0xff]  ;;  %v260_v13 = vld [vmem:[%s1004_s6 + $0x20] sm:$0xff] }
  0x17   : > { %v344_v25 = vadd.f32 %v1022_v14, %v308_v18  ;;  %v345_v26 = vadd.f32 %v1022_v14, %v309_v19  ;;  %v360_v27 = vmax.f32 %v328_v20, 0.0  ;;  %v316_v36 = vmul.f32 %v1010_v6, %v280_v34  ;;  %v282_v7 = vld [vmem:[%s1004_s6 + $0xd0] sm:$0xff]  ;;  %v283_v8 = vld [vmem:[%s1004_s6 + $0xd8] sm:$0xff]  ;;  %v261_v16 = vld [vmem:[%s1004_s6 + $0x28] sm:$0xff] }
  0x18   : > { %v361_v28 = vmax.f32 %v329_v21, 0.0  ;;  %v368_v29 = vmax.f32 %v336_v22, 0.0  ;;  %v369_v30 = vmax.f32 %v337_v23, 0.0  ;;  %v317_v37 = vmul.f32 %v1010_v6, %v281_v35  ;;  %v268_v18 = vld [vmem:[%s1004_s6 + $0x60] sm:$0xff]  ;;  %v269_v19 = vld [vmem:[%s1004_s6 + $0x68] sm:$0xff] }
  0x19   : > { %475 = vmatpush.bf16.msra.mxu0 %v855_v3  ;;  %868 = vmatpush.bf16.msra.mxu1 %v855_v3  ;;  %v376_v32 = vmax.f32 %v344_v25, 0.0  ;;  %v377_v33 = vmax.f32 %v345_v26, 0.0  ;;  %v352_v41 = vadd.f32 %v1022_v14, %v316_v36  ;;  %v302_v53 = vmul.f32 %v1010_v6, %v266_v44  ;;  %v276_v21 = vld [vmem:[%s1004_s6 + $0xa0] sm:$0xff]  ;;  %v277_v22 = vld [vmem:[%s1004_s6 + $0xa8] sm:$0xff] }
  0x1a   : > { %869 = vmatpush.bf16.msra.mxu2 %v855_v3  ;;  %870 = vmatpush.bf16.msra.mxu3 %v855_v3  ;;  %v392_v38 = vpack.c.bf16 %v361_v28, %v360_v27  ;;  %v396_v39 = vpack.c.bf16 %v369_v30, %v368_v29  ;;  %v353_v46 = vadd.f32 %v1022_v14, %v317_v37 }
  0x1b   : > { %v400_v43 = vpack.c.bf16 %v377_v33, %v376_v32  ;;  %v384_v49 = vmax.f32 %v352_v41, 0.0  ;;  %v303_v54 = vmul.f32 %v1010_v6, %v267_v45  ;;  %v310_v55 = vmul.f32 %v1010_v6, %v274_v47  ;;  %v284_v32 = vld [vmem:[%s1004_s6 + $0xe0] sm:$0xff]  ;;  %v285_v33 = vld [vmem:[%s1004_s6 + $0xe8] sm:$0xff] }
  0x1c   : > { %v385_v51 = vmax.f32 %v353_v46, 0.0  ;;  %v311_v56 = vmul.f32 %v1010_v6, %v275_v48  ;;  %v330_v58 = vadd.f32 %v1022_v14, %v294_v50  ;;  %v331_v59 = vadd.f32 %v1022_v14, %v295_v52 }
  0x1d   : > { %476 = vmatpush.bf16.msra.mxu0 %v854_v4  ;;  %871 = vmatpush.bf16.msra.mxu1 %v854_v4  ;;  %v338_v60 = vadd.f32 %v1022_v14, %v302_v53  ;;  %v339_v61 = vadd.f32 %v1022_v14, %v303_v54  ;;  %v346_v62 = vadd.f32 %v1022_v14, %v310_v55  ;;  %v262_v54 = vld [vmem:[%s1004_s6 + $0x30] sm:$0xff]  ;;  %v263_v55 = vld [vmem:[%s1004_s6 + $0x38] sm:$0xff] }
  0x1e   : > { %872 = vmatpush.bf16.msra.mxu2 %v854_v4  ;;  %873 = vmatpush.bf16.msra.mxu3 %v854_v4  ;;  %v404_v57 = vpack.c.bf16 %v385_v51, %v384_v49  ;;  %v347_v63 = vadd.f32 %v1022_v14, %v311_v56  ;;  %v362_v0 = vmax.f32 %v330_v58, 0.0  ;;  %v363_v1 = vmax.f32 %v331_v59, 0.0  ;;  %v271_v58 = vld [vmem:[%s1004_s6 + $0x78] sm:$0xff]  ;;  %v278_v59 = vld [vmem:[%s1004_s6 + $0xb0] sm:$0xff] }
  0x1f   : > { %v370_v2 = vmax.f32 %v338_v60, 0.0  ;;  %v371_v3 = vmax.f32 %v339_v61, 0.0  ;;  %v378_v4 = vmax.f32 %v346_v62, 0.0  ;;  %v318_v9 = vmul.f32 %v1010_v6, %v282_v7  ;;  %v279_v60 = vld [vmem:[%s1004_s6 + $0xb8] sm:$0xff] }
  0x20   : > { %v379_v5 = vmax.f32 %v347_v63, 0.0  ;;  %v319_v10 = vmul.f32 %v1010_v6, %v283_v8  ;;  %v393_v11 = vpack.c.bf16 %v363_v1, %v362_v0  ;;  %v297_v26 = vmul.f32 %v1010_v6, %v261_v16 }
  0x21   : > { %477 = vmatpush.bf16.msra.mxu0 %v853_v17  ;;  %874 = vmatpush.bf16.msra.mxu1 %v853_v17  ;;  %v397_v12 = vpack.c.bf16 %v371_v3, %v370_v2  ;;  %v354_v15 = vadd.f32 %v1022_v14, %v318_v9  ;;  %v304_v27 = vmul.f32 %v1010_v6, %v268_v18  ;;  %v286_v2 = vld [vmem:[%s1004_s6 + $0xf0] sm:$0xff]  ;;  %v287_v3 = vld [vmem:[%s1004_s6 + $0xf8] sm:$0xff] }
  0x22   : > { %875 = vmatpush.bf16.msra.mxu2 %v853_v17  ;;  %876 = vmatpush.bf16.msra.mxu3 %v853_v17  ;;  %v401_v17 = vpack.c.bf16 %v379_v5, %v378_v4  ;;  %v355_v20 = vadd.f32 %v1022_v14, %v319_v10  ;;  %v305_v28 = vmul.f32 %v1010_v6, %v269_v19 }
  0x23   : > { %v386_v23 = vmax.f32 %v354_v15, 0.0  ;;  %v312_v29 = vmul.f32 %v1010_v6, %v276_v21  ;;  %v313_v30 = vmul.f32 %v1010_v6, %v277_v22  ;;  %v320_v34 = vmul.f32 %v1010_v6, %v284_v32 }
  0x24   : > { %v387_v25 = vmax.f32 %v355_v20, 0.0  ;;  %v321_v35 = vmul.f32 %v1010_v6, %v285_v33  ;;  %v333_v37 = vadd.f32 %v1022_v14, %v297_v26  ;;  %v298_v61 = vmul.f32 %v1010_v6, %v262_v54 }
  0x25   : > { %478 = vmatpush.bf16.msra.mxu0 %v852_v24  ;;  %877 = vmatpush.bf16.msra.mxu1 %v852_v24  ;;  %v348_v40 = vadd.f32 %v1022_v14, %v312_v29  ;;  %v349_v41 = vadd.f32 %v1022_v14, %v313_v30  ;;  %v356_v42 = vadd.f32 %v1022_v14, %v320_v34 }
  0x26   : > { %878 = vmatpush.bf16.msra.mxu2 %v852_v24  ;;  %879 = vmatpush.bf16.msra.mxu3 %v852_v24  ;;  %v296_v24 = vmul.f32 %v1010_v6, %v260_v13  ;;  %v365_v45 = vmax.f32 %v333_v37, 0.0  ;;  %v299_v63 = vmul.f32 %v1010_v6, %v263_v55  ;;  %v307_v1 = vmul.f32 %v1010_v6, %v271_v58 }
  0x27   : > { %v380_v48 = vmax.f32 %v348_v40, 0.0  ;;  %v381_v49 = vmax.f32 %v349_v41, 0.0  ;;  %v388_v50 = vmax.f32 %v356_v42, 0.0  ;;  %v314_v4 = vmul.f32 %v1010_v6, %v278_v59 }
  0x28   : > { %v332_v36 = vadd.f32 %v1022_v14, %v296_v24  ;;  %v315_v5 = vmul.f32 %v1010_v6, %v279_v60  ;;  %v322_v7 = vmul.f32 %v1010_v6, %v286_v2  ;;  %v323_v8 = vmul.f32 %v1010_v6, %v287_v3 }
  0x29   : > { %479 = vmatpush.bf16.msra.mxu0 %v851_v31  ;;  %880 = vmatpush.bf16.msra.mxu1 %v851_v31  ;;  %v402_v56 = vpack.c.bf16 %v381_v49, %v380_v48  ;;  %v334_v9 = vadd.f32 %v1022_v14, %v298_v61  ;;  %v335_v10 = vadd.f32 %v1022_v14, %v299_v63 }
  0x2a   : > { %881 = vmatpush.bf16.msra.mxu2 %v851_v31  ;;  %882 = vmatpush.bf16.msra.mxu3 %v851_v31  ;;  %v405_v31 = vpack.c.bf16 %v387_v25, %v386_v23  ;;  %v364_v44 = vmax.f32 %v332_v36, 0.0  ;;  %v350_v13 = vadd.f32 %v1022_v14, %v314_v4  ;;  %v351_v15 = vadd.f32 %v1022_v14, %v315_v5 }
  0x2b   : > { %v358_v16 = vadd.f32 %v1022_v14, %v322_v7  ;;  %v366_v18 = vmax.f32 %v334_v9, 0.0  ;;  %v367_v19 = vmax.f32 %v335_v10, 0.0 }
  0x2c   : > { %480 = vmatmul.bf16.vlgmr.msra.gmra.mxu0 %v392_v38  ;;  %500 = vmatmul.bf16.vlgmr.msra.gmra.mxu1 %v396_v39  ;;  %v340_v38 = vadd.f32 %v1022_v14, %v304_v27  ;;  %v341_v39 = vadd.f32 %v1022_v14, %v305_v28  ;;  %v394_v52 = vpack.c.bf16 %v365_v45, %v364_v44  ;;  %v382_v21 = vmax.f32 %v350_v13, 0.0 }
  0x2d   : > { %520 = vmatmul.bf16.vlgmr.msra.gmra.mxu2 %v400_v43  ;;  %540 = vmatmul.bf16.vlgmr.msra.gmra.mxu3 %v404_v57  ;;  %v357_v43 = vadd.f32 %v1022_v14, %v321_v35  ;;  %v270_v57 = vld [vmem:[%s1004_s6 + $0x70] sm:$0xff]  ;;  %v383_v22 = vmax.f32 %v351_v15, 0.0  ;;  %v390_v23 = vmax.f32 %v358_v16, 0.0  ;;  %v395_v25 = vpack.c.bf16 %v367_v19, %v366_v18 }
  0x2e   : > { %v372_v46 = vmax.f32 %v340_v38, 0.0  ;;  %v373_v47 = vmax.f32 %v341_v39, 0.0  ;;  %v306_v0 = vmul.f32 %v1010_v6, %v270_v57 }
  0x2f   : > { %v389_v51 = vmax.f32 %v357_v43, 0.0  ;;  %v403_v27 = vpack.c.bf16 %v383_v22, %v382_v21 }
  0x30   : > { %v398_v53 = vpack.c.bf16 %v373_v47, %v372_v46 }
  0x31   : > { %v406_v62 = vpack.c.bf16 %v389_v51, %v388_v50 }
  0x3c   : > { %485 = vmatmul.bf16.gmra.mxu0 %v393_v11  ;;  %505 = vmatmul.bf16.gmra.mxu1 %v397_v12  ;;  %v342_v11 = vadd.f32 %v1022_v14, %v306_v0  ;;  %v343_v12 = vadd.f32 %v1022_v14, %v307_v1 }
  0x3d   : > { %525 = vmatmul.bf16.gmra.mxu2 %v401_v17  ;;  %545 = vmatmul.bf16.gmra.mxu3 %v405_v31  ;;  %v359_v17 = vadd.f32 %v1022_v14, %v323_v8 }
  0x3e   : > { %v374_v6 = vmax.f32 %v342_v11, 0.0  ;;  %v375_v20 = vmax.f32 %v343_v12, 0.0 }
  0x3f   : > { %v391_v24 = vmax.f32 %v359_v17, 0.0 }
  0x40   : > { %v399_v26 = vpack.c.bf16 %v375_v20, %v374_v6 }
  0x41   : > { %v407_v28 = vpack.c.bf16 %v391_v24, %v390_v23 }
  0x4c   : > { %490 = vmatmul.bf16.gmra.mxu0 %v394_v52  ;;  %510 = vmatmul.bf16.gmra.mxu1 %v398_v53 }
  0x4d   : > { %530 = vmatmul.bf16.gmra.mxu2 %v402_v56  ;;  %550 = vmatmul.bf16.gmra.mxu3 %v406_v62 }
  0x5c   : > { %495 = vmatmul.bf16.gmra.mxu0 %v395_v25  ;;  %515 = vmatmul.bf16.gmra.mxu1 %v399_v26 }
  0x5d   : > { %535 = vmatmul.bf16.gmra.mxu2 %v403_v27  ;;  %555 = vmatmul.bf16.gmra.mxu3 %v407_v28 }
  0xa9   : > { %v481_v14 = vpop.f32.mrf.mxu0  ;;  %v1119_v29 = vpop.f32.mrf.mxu1 }
  0xaa   : > { %561 = vst [vmem:[%s1117_s13] sm:$0xff] %v481_v14  ;;  %v630_v51 = vmul.f32 %v481_v14, %v481_v14  ;;  %v638_v17 = vmul.f32 %v1119_v29, %v1119_v29 }
  0xab   : > { %569 = vst [vmem:[%s1117_s13 + $0x40] sm:$0xff] %v1119_v29 }
  0xb0   : > { %v1124_v30 = vpop.f32.mrf.mxu2  ;;  %v1131_v33 = vpop.f32.mrf.mxu3 }
  0xb1   : > { %v483_v31 = vpop.f32.mrf.mxu0  ;;  %v1126_v32 = vpop.f32.mrf.mxu1  ;;  %577 = vst [vmem:[%s1117_s13 + $0x80] sm:$0xff] %v1124_v30 }
  0xb2   : > { %562 = vst [vmem:[%s1117_s13 + $0x8] sm:$0xff] %v483_v31  ;;  %v631_v50 = vmul.f32 %v483_v31, %v483_v31  ;;  %v593_v52 = vadd.f32 %v483_v31, %v481_v14  ;;  %v639_v6 = vmul.f32 %v1126_v32, %v1126_v32 }
  0xb3   : > { %570 = vst [vmem:[%s1117_s13 + $0x48] sm:$0xff] %v1126_v32 }
  0xb4   : > { %585 = vst [vmem:[%s1117_s13 + $0xc0] sm:$0xff] %v1131_v33  ;;  %v662_v54 = vadd.f32 %v631_v50, %v630_v51 }
  0xb8   : > { %v1137_v34 = vpop.f32.mrf.mxu2  ;;  %v1144_v37 = vpop.f32.mrf.mxu3 }
  0xb9   : > { %v486_v35 = vpop.f32.mrf.mxu0  ;;  %v1139_v36 = vpop.f32.mrf.mxu1  ;;  %578 = vst [vmem:[%s1117_s13 + $0x88] sm:$0xff] %v1137_v34 }
  0xba   : > { %563 = vst [vmem:[%s1117_s13 + $0x10] sm:$0xff] %v486_v35  ;;  %v632_v53 = vmul.f32 %v486_v35, %v486_v35  ;;  %v594_v55 = vadd.f32 %v593_v52, %v486_v35  ;;  %v640_v22 = vmul.f32 %v1139_v36, %v1139_v36 }
  0xbb   : > { %571 = vst [vmem:[%s1117_s13 + $0x50] sm:$0xff] %v1139_v36 }
  0xbc   : > { %586 = vst [vmem:[%s1117_s13 + $0xc8] sm:$0xff] %v1144_v37  ;;  %v663_v60 = vadd.f32 %v662_v54, %v632_v53  ;;  %v646_v53 = vmul.f32 %v1124_v30, %v1124_v30 }
  0xc0   : > { %v1150_v38 = vpop.f32.mrf.mxu2  ;;  %v1157_v41 = vpop.f32.mrf.mxu3 }
  0xc1   : > { %v488_v39 = vpop.f32.mrf.mxu0  ;;  %v1152_v40 = vpop.f32.mrf.mxu1  ;;  %579 = vst [vmem:[%s1117_s13 + $0x90] sm:$0xff] %v1150_v38 }
  0xc2   : > { %564 = vst [vmem:[%s1117_s13 + $0x18] sm:$0xff] %v488_v39  ;;  %v633_v56 = vmul.f32 %v488_v39, %v488_v39  ;;  %v595_v61 = vadd.f32 %v594_v55, %v488_v39  ;;  %v641_v26 = vmul.f32 %v1152_v40, %v1152_v40 }
  0xc3   : > { %572 = vst [vmem:[%s1117_s13 + $0x58] sm:$0xff] %v1152_v40 }
  0xc4   : > { %587 = vst [vmem:[%s1117_s13 + $0xd0] sm:$0xff] %v1157_v41  ;;  %v664_v0 = vadd.f32 %v663_v60, %v633_v56 }
  0xc8   : > { %v1163_v42 = vpop.f32.mrf.mxu2  ;;  %v1170_v45 = vpop.f32.mrf.mxu3 }
  0xc9   : > { %v491_v43 = vpop.f32.mrf.mxu0  ;;  %v1165_v44 = vpop.f32.mrf.mxu1  ;;  %580 = vst [vmem:[%s1117_s13 + $0x98] sm:$0xff] %v1163_v42 }
  0xca   : > { %565 = vst [vmem:[%s1117_s13 + $0x20] sm:$0xff] %v491_v43  ;;  %v634_v62 = vmul.f32 %v491_v43, %v491_v43  ;;  %v596_v1 = vadd.f32 %v595_v61, %v491_v43  ;;  %v649_v61 = vmul.f32 %v1163_v42, %v1163_v42 }
  0xcb   : > { %573 = vst [vmem:[%s1117_s13 + $0x60] sm:$0xff] %v1165_v44 }
  0xcc   : > { %588 = vst [vmem:[%s1117_s13 + $0xd8] sm:$0xff] %v1170_v45  ;;  %v665_v3 = vadd.f32 %v664_v0, %v634_v62 }
  0xd0   : > { %v1176_v46 = vpop.f32.mrf.mxu2  ;;  %v1183_v49 = vpop.f32.mrf.mxu3 }
  0xd1   : > { %v493_v47 = vpop.f32.mrf.mxu0  ;;  %v1178_v48 = vpop.f32.mrf.mxu1  ;;  %581 = vst [vmem:[%s1117_s13 + $0xa0] sm:$0xff] %v1176_v46 }
  0xd2   : > { %566 = vst [vmem:[%s1117_s13 + $0x28] sm:$0xff] %v493_v47  ;;  %v635_v2 = vmul.f32 %v493_v47, %v493_v47  ;;  %v597_v4 = vadd.f32 %v596_v1, %v493_v47  ;;  %v643_v35 = vmul.f32 %v1178_v48, %v1178_v48 }
  0xd3   : > { %574 = vst [vmem:[%s1117_s13 + $0x68] sm:$0xff] %v1178_v48 }
  0xd4   : > { %589 = vst [vmem:[%s1117_s13 + $0xe0] sm:$0xff] %v1183_v49  ;;  %v666_v7 = vadd.f32 %v665_v3, %v635_v2 }
  0xd8   : > { %v1189_v57 = vpop.f32.mrf.mxu2  ;;  %v1194_v63 = vpop.f32.mrf.mxu3 }
  0xd9   : > { %v496_v58 = vpop.f32.mrf.mxu0  ;;  %v516_v59 = vpop.f32.mrf.mxu1  ;;  %582 = vst [vmem:[%s1117_s13 + $0xa8] sm:$0xff] %v1189_v57  ;;  %v651_v3 = vmul.f32 %v1189_v57, %v1189_v57 }
  0xda   : > { %567 = vst [vmem:[%s1117_s13 + $0x30] sm:$0xff] %v496_v58  ;;  %v636_v5 = vmul.f32 %v496_v58, %v496_v58  ;;  %v598_v8 = vadd.f32 %v597_v4, %v496_v58  ;;  %v644_v47 = vmul.f32 %v516_v59, %v516_v59 }
  0xdb   : > { %575 = vst [vmem:[%s1117_s13 + $0x70] sm:$0xff] %v516_v59 }
  0xdc   : > { %590 = vst [vmem:[%s1117_s13 + $0xe8] sm:$0xff] %v1194_v63  ;;  %v667_v12 = vadd.f32 %v666_v7, %v636_v5 }
  0xe0   : > { %v536_v9 = vpop.f32.mrf.mxu2  ;;  %v1201_v16 = vpop.f32.mrf.mxu3 }
  0xe1   : > { %v498_v10 = vpop.f32.mrf.mxu0  ;;  %v518_v11 = vpop.f32.mrf.mxu1  ;;  %583 = vst [vmem:[%s1117_s13 + $0xb0] sm:$0xff] %v536_v9  ;;  %v652_v7 = vmul.f32 %v536_v9, %v536_v9 }
  0xe2   : > { %568 = vst [vmem:[%s1117_s13 + $0x38] sm:$0xff] %v498_v10  ;;  %v599_v13 = vadd.f32 %v598_v8, %v498_v10  ;;  %v637_v15 = vmul.f32 %v498_v10, %v498_v10 }
  0xe3   : > { %576 = vst [vmem:[%s1117_s13 + $0x78] sm:$0xff] %v518_v11 }
  0xe4   : > { %v600_v18 = vadd.f32 %v599_v13, %v1119_v29  ;;  %v668_v19 = vadd.f32 %v667_v12, %v637_v15  ;;  %591 = vst [vmem:[%s1117_s13 + $0xf0] sm:$0xff] %v1201_v16  ;;  %v642_v29 = vmul.f32 %v1165_v44, %v1165_v44 }
  0xe6   : > { %v601_v20 = vadd.f32 %v600_v18, %v1126_v32  ;;  %v669_v21 = vadd.f32 %v668_v19, %v638_v17  ;;  %v657_v19 = vmul.f32 %v1170_v45, %v1170_v45 }
  0xe8   : > { %v602_v23 = vadd.f32 %v601_v20, %v1139_v36  ;;  %v670_v24 = vadd.f32 %v669_v21, %v639_v6  ;;  %v538_v25 = vpop.f32.mrf.mxu2  ;;  %v558_v14 = vpop.f32.mrf.mxu3  ;;  %v658_v20 = vmul.f32 %v1183_v49, %v1183_v49 }
  0xe9   : > { %584 = vst [vmem:[%s1117_s13 + $0xb8] sm:$0xff] %v538_v25 }
  0xea   : > { %v671_v27 = vadd.f32 %v670_v24, %v640_v22  ;;  %v603_v28 = vadd.f32 %v602_v23, %v1152_v40  ;;  %592 = vst [vmem:[%s1117_s13 + $0xf8] sm:$0xff] %v558_v14  ;;  %v645_v40 = vmul.f32 %v518_v11, %v518_v11  ;;  %v659_v23 = vmul.f32 %v1194_v63, %v1194_v63 }
  0xec   : > { %v604_v31 = vadd.f32 %v603_v28, %v1165_v44  ;;  %v672_v32 = vadd.f32 %v671_v27, %v641_v26  ;;  %v647_v44 = vmul.f32 %v1137_v34, %v1137_v34  ;;  %v660_v26 = vmul.f32 %v1201_v16, %v1201_v16 }
  0xed   : > { %v661_v28 = vmul.f32 %v558_v14, %v558_v14 }
  0xee   : > { %v605_v36 = vadd.f32 %v604_v31, %v1178_v48  ;;  %v673_v39 = vadd.f32 %v672_v32, %v642_v29  ;;  %v648_v48 = vmul.f32 %v1150_v38, %v1150_v38 }
  0xf0   : > { %v606_v43 = vadd.f32 %v605_v36, %v516_v59  ;;  %v674_v50 = vadd.f32 %v673_v39, %v643_v35  ;;  %v699_v35 = vlaneseq }
  0xf2   : > { %v675_v51 = vadd.f32 %v674_v50, %v644_v47  ;;  %v607_v52 = vadd.f32 %v606_v43, %v518_v11  ;;  %v653_v11 = vmul.f32 %v538_v25, %v538_v25  ;;  %v700_v47 = vshrl.u32 %v699_v35, 7 }
  0xf4   : > { %v608_v54 = vadd.f32 %v607_v52, %v1124_v30  ;;  %v676_v55 = vadd.f32 %v675_v51, %v645_v40  ;;  %v650_v30 = vmul.f32 %v1176_v46, %v1176_v46  ;;  %vm702_vm0 = vcmp.eq.s32.totalorder %v700_v47, 1 }
  0xf5   : > { %vm701_vm1 = vcmp.eq.s32.totalorder %v700_v47, 0 }
  0xf6   : > { %v609_v56 = vadd.f32 %v608_v54, %v1137_v34  ;;  %v677_v58 = vadd.f32 %v676_v55, %v646_v53 }
  0xf8   : > { %v610_v59 = vadd.f32 %v609_v56, %v1150_v38  ;;  %v678_v60 = vadd.f32 %v677_v58, %v647_v44 }
  0xfa   : > { %v679_v62 = vadd.f32 %v678_v60, %v648_v48  ;;  %v611_v0 = vadd.f32 %v610_v59, %v1163_v42  ;;  %v654_v42 = vmul.f32 %v1131_v33, %v1131_v33 }
  0xfc   : > { %v612_v1 = vadd.f32 %v611_v0, %v1176_v46  ;;  %v680_v2 = vadd.f32 %v679_v62, %v649_v61  ;;  %v655_v46 = vmul.f32 %v1144_v37, %v1144_v37 }
  0xfe   : > { %v613_v34 = vadd.f32 %v612_v1, %v1189_v57  ;;  %v681_v4 = vadd.f32 %v680_v2, %v650_v30  ;;  %v656_v57 = vmul.f32 %v1157_v41, %v1157_v41 }
 0x100   : > { %v682_v38 = vadd.f32 %v681_v4, %v651_v3  ;;  %v614_v5 = vadd.f32 %v613_v34, %v536_v9 }
 0x102   : > { %v683_v8 = vadd.f32 %v682_v38, %v652_v7  ;;  %v615_v10 = vadd.f32 %v614_v5, %v538_v25 }
 0x104   : > { %v616_v12 = vadd.f32 %v615_v10, %v1131_v33  ;;  %v684_v13 = vadd.f32 %v683_v8, %v653_v11 }
 0x106   : > { %v617_v15 = vadd.f32 %v616_v12, %v1144_v37  ;;  %v685_v17 = vadd.f32 %v684_v13, %v654_v42 }
 0x108   : > { %v618_v9 = vadd.f32 %v617_v15, %v1157_v41  ;;  %v686_v18 = vadd.f32 %v685_v17, %v655_v46 }
 0x10a   : > { %v687_v6 = vadd.f32 %v686_v18, %v656_v57  ;;  %v619_v33 = vadd.f32 %v618_v9, %v1170_v45 }
 0x10c   : > { %v620_v21 = vadd.f32 %v619_v33, %v1183_v49  ;;  %v688_v37 = vadd.f32 %v687_v6, %v657_v19 }
 0x10e   : > { %v621_v22 = vadd.f32 %v620_v21, %v1194_v63  ;;  %v689_v41 = vadd.f32 %v688_v37, %v658_v20 }
 0x110   : > { %v690_v24 = vadd.f32 %v689_v41, %v659_v23  ;;  %v622_v25 = vadd.f32 %v621_v22, %v1201_v16 }
 0x112   : > { %v691_v45 = vadd.f32 %v690_v24, %v660_v26  ;;  %v623_v27 = vadd.f32 %v622_v25, %v558_v14 }
 0x114   : > { %v624_v29 = vrot.slane %v623_v27, 4  ;;  %v692_v31 = vadd.f32 %v691_v45, %v661_v28 }
 0x116   : > { %v625_v49 = vadd.f32 %v624_v29, %v623_v27  ;;  %v693_v32 = vrot.slane %v692_v31, 4 }
 0x118   : > { %v626_v36 = vrot.slane %v625_v49, 2  ;;  %v694_v39 = vadd.f32 %v693_v32, %v692_v31 }
 0x11a   : > { %v627_v63 = vadd.f32 %v626_v36, %v625_v49  ;;  %v695_v43 = vrot.slane %v694_v39, 2 }
 0x11c   : > { %v696_v50 = vadd.f32 %v695_v43, %v694_v39  ;;  %v628_v51 = vrot.slane %v627_v63, 1 }
 0x11e   : > { %v697_v52 = vrot.slane %v696_v50, 1  ;;  %v629_v14 = vadd.f32 %v628_v51, %v627_v63 }
 0x120   : > { %v698_v16 = vadd.f32 %v697_v52, %v696_v50 }
 0x122   : > { %v703_v40 = vsel %vm702_vm0, %v698_v16, 0.0 }
 0x123   : > { %v704_v53 = vsel %vm701_vm1, %v629_v14, %v703_v40 }
 0x124   : > { %705 = vst [vmem:[%s255_s17] sm:$0xff] %v704_v53 }
 0x125 PF: > { %s17_s18 = sadd.s32 1, %s946_s18  }
 0x126   : > { %p14_p8 = scmp.ge.s32.totalorder %s17_s18, 4  }
 0x128   :  { %16 = sbr.rel (!%p14_p8) target bundleno = 1 (0x1), region = 83 }
 0x12d   :  { %742 = vsyncpa [#allocation3], 1 }
 0x12e   :  { %744 = vsyncpa [#allocation3 + $0x1], 1 }

// kernel: bottleneck_forward.5
= control target key start
LH: loop header
LB: loop body
LE: loop exit
PB: predicated region body
PF: predicated region fallthrough
CT: control target
= control target key end

     0   :  { %11 = vsyncpa [#allocation4], 0  ;;  %s5001_s18 = smov 0   ;;  %s6204_s0 = inlined_call_operand.vmem [shape: f32[512,128], index: 0, kind: input, shape index: {}]   ;;  %s6205_s1 = inlined_call_operand.vmem [shape: f32[1,128], index: 1, kind: input, shape index: {}]   ;;  %s6206_s2 = inlined_call_operand.vmem [shape: f32[1,128], index: 2, kind: input, shape index: {}]   ;;  %s6207_s3 = inlined_call_operand.hbm [shape: bf16[1152,128], index: 3, kind: input, shape index: {}]   ;;  %s6208_s4 = inlined_call_operand.vmem [shape: f32[512,128], index: 4, kind: output, shape index: {0}]   ;;  %s6209_s5 = inlined_call_operand.vmem [shape: f32[16,128], index: 5, kind: output, shape index: {1}]  }
   0x1 LB: > { %s180_s21 = sshll.u32 %s6207_s3, 4  ;;  %s5010_s22 = sadd.s32 4294967295, %s4965_s18   ;;  %s4965_s18 = sphi %s5001_s18, %s17_s18   ;;  %s181_s21 = int_to_ptr.hbm [resolvable:$true] %s180_s21 }
   0x2   : > { %p4151_p0 = scmp.ge.s32.totalorder %s4965_s18, 1  ;;  %p163_p1 = scmp.lt.s32.totalorder %s4965_s18, 3 }
   0x3   : > { %p4891_p2 = scmp.eq.s32.totalorder %s5010_s22, 0  ;;  %s4967_s23 = smov [#allocation3]  }
   0x4   : > { %p164_p3 = pnand %p4151_p0, %p163_p1  ;;  %s182_s24 = sshll.u32 %s4967_s23, 4  ;;  %s183_s24 = int_to_ptr.vmem [resolvable:$true] %s182_s24 }
   0x5   : > { %s4968_s25 = smov 64   ;;  %s4969_s26 = smov 4  }
   0x6   : > { %p4887_p4 = pneg %p164_p3  ;;  %207 = sbr.rel (%p164_p3) target bundleno = 811 (0x32b), region = 36 }
   0x8   : > { %p4888_p5 = pnand %p4891_p2, %p4887_p4 }
   0xa   : > { %4890 = dma.hbm_to_vmem [thread:$0]  (!%p4888_p5), %s181_s21, 9216, %s183_s24, [#allocation4], %s4968_s25, %s4968_s25, %s4969_s26  }
   0xb   : > { %4960 = dma.done.wait (%p4891_p2), [#allocation4], 9216  }
   0xc   : > { %4962 = vsyncadd (%p4891_p2), [#allocation4], 4294958080  ;;  %s4156_s27 = sshll.u32 %s5010_s22, 5  ;;  %v4970_v0 = vmov 0   ;;  %v4794_v1 = vld [vmem:[#allocation3 + $0x38] sm:$0xff]  ;;  %v4793_v2 = vld [vmem:[#allocation3 + $0x30] sm:$0xff] }
   0xd   : > { %p241_p6 = scmp.lt.s32.totalorder %s4156_s27, 63  ;;  %405 = vst [vmem:[#allocation2 + $0x30] sm:$0xf] %v4970_v0  ;;  %4859 = vmatpush.bf16.msra.mxu1 %v4794_v1  ;;  %4860 = vmatpush.bf16.msra.mxu2 %v4794_v1  ;;  %v5040_v5 = vld [vmem:[%s6205_s1] ss:$0 sm:$0xff]  ;;  %v4792_v9 = vld [vmem:[#allocation3 + $0x28] sm:$0xff] }
   0xe   : > { %406 = vst [vmem:[#allocation2 + $0x34] sm:$0xf] %v4970_v0  ;;  %4861 = vmatpush.bf16.msra.mxu3 %v4794_v1  ;;  %3104 = vmatpush.bf16.msra.mxu0 %v4794_v1  ;;  %v5045_v6 = vld [vmem:[%s6206_s2] ss:$0 sm:$0xff]  ;;  %v4791_v14 = vld [vmem:[#allocation3 + $0x20] sm:$0xff]  ;;  %vm517_vm0 = vcmask 1040384  }
   0xf   : > { %s6227_s27 = smov (!%p241_p6, %s4156_s27), 63  ;;  %393 = vst [vmem:[#allocation2] sm:$0xf] %v4970_v0  ;;  %vm518_vm1 = vcmask 1044484   ;;  %v4790_v19 = vld [vmem:[#allocation3 + $0x18] sm:$0xff]  ;;  %v4789_v23 = vld [vmem:[#allocation3 + $0x10] sm:$0xff] }
  0x10   : > { %394 = vst [vmem:[#allocation2 + $0x4] sm:$0xf] %v4970_v0  ;;  %s4157_s28 = sshll.u32 %s6227_s27, 3  ;;  %vm5064_vm2 = vmor %vm517_vm0, %vm518_vm1  ;;  %v4788_v24 = vld [vmem:[#allocation3 + $0x8] sm:$0xff]  ;;  %v4787_v25 = vld [vmem:[#allocation3] sm:$0xff]  ;;  %vm809_vm3 = vcmask 1042432  }
  0x11   : > { %395 = vst [vmem:[#allocation2 + $0x8] sm:$0x3] %v4970_v0  ;;  %s5029_s6 = scalar_lea.vmem %s6204_s0, %s4157_s28  ;;  %4862 = vmatpush.bf16.msra.mxu1 %v4793_v2  ;;  %4863 = vmatpush.bf16.msra.mxu2 %v4793_v2  ;;  %v4810_v47 = vld [vmem:[#allocation3 + $0xb8] sm:$0xff]  ;;  %v4809_v56 = vld [vmem:[#allocation3 + $0xb0] sm:$0xff]  ;;  %vm810_vm4 = vcmask 1046532   ;;  %vm988_vm6 = vcmask 1041408   ;;  %s6003_s17 = scalar_lea.vmem %s6208_s4, %s4157_s28 }
  0x12   : > { %396 = vst [vmem:[#allocation2 + $0xc] sm:$0xf] %v4970_v0  ;;  %v261_v3 = vld [vmem:[%s5029_s6 + $0x20] sm:$0xff]  ;;  %v262_v4 = vld [vmem:[%s5029_s6 + $0x28] sm:$0xff]  ;;  %4864 = vmatpush.bf16.msra.mxu3 %v4793_v2  ;;  %3105 = vmatpush.bf16.msra.mxu0 %v4793_v2  ;;  %v263_v38 = vld [vmem:[%s5029_s6 + $0x30] sm:$0xff]  ;;  %vm989_vm7 = vcmask 1045508  }
  0x13   : > { %397 = vst [vmem:[#allocation2 + $0x10] sm:$0xf] %v4970_v0  ;;  %v297_v7 = vmul.f32 %v5040_v5, %v261_v3  ;;  %v298_v8 = vmul.f32 %v5040_v5, %v262_v4  ;;  %v269_v26 = vld [vmem:[%s5029_s6 + $0x60] sm:$0xff]  ;;  %v270_v27 = vld [vmem:[%s5029_s6 + $0x68] sm:$0xff]  ;;  %v271_v39 = vld [vmem:[%s5029_s6 + $0x70] sm:$0xff]  ;;  %v299_v43 = vmul.f32 %v5040_v5, %v263_v38  ;;  %p252_p7 = scmp.lt.s32.totalorder %s5010_s22, 1 }
  0x14   : > { %398 = vst [vmem:[#allocation2 + $0x14] sm:$0x3] %v4970_v0  ;;  %v277_v28 = vld [vmem:[%s5029_s6 + $0xa0] sm:$0xff]  ;;  %v305_v30 = vmul.f32 %v5040_v5, %v269_v26  ;;  %v306_v31 = vmul.f32 %v5040_v5, %v270_v27  ;;  %v278_v33 = vld [vmem:[%s5029_s6 + $0xa8] sm:$0xff]  ;;  %v279_v40 = vld [vmem:[%s5029_s6 + $0xb0] sm:$0xff]  ;;  %v307_v50 = vmul.f32 %v5040_v5, %v271_v39 }
  0x15   : > { %399 = vst [vmem:[#allocation2 + $0x18] sm:$0xf] %v4970_v0  ;;  %v333_v10 = vadd.f32 %v5045_v6, %v297_v7  ;;  %v334_v11 = vadd.f32 %v5045_v6, %v298_v8  ;;  %4865 = vmatpush.bf16.msra.mxu1 %v4792_v9  ;;  %4866 = vmatpush.bf16.msra.mxu2 %v4792_v9  ;;  %v264_v42 = vld [vmem:[%s5029_s6 + $0x38] sm:$0xff]  ;;  %v4818_v49 = vld [vmem:[#allocation3 + $0xf8] sm:$0xff]  ;;  %v4817_v63 = vld [vmem:[#allocation3 + $0xf0] sm:$0xff]  ;;  %s6229_s22 = smov (!%p252_p7, %s5010_s22), 1 }
  0x16   : > { %400 = vst [vmem:[#allocation2 + $0x1c] sm:$0xf] %v4970_v0  ;;  %4867 = vmatpush.bf16.msra.mxu3 %v4792_v9  ;;  %3106 = vmatpush.bf16.msra.mxu0 %v4792_v9  ;;  %v313_v32 = vmul.f32 %v5040_v5, %v277_v28  ;;  %v341_v34 = vadd.f32 %v5045_v6, %v305_v30  ;;  %v4802_v52 = vld [vmem:[#allocation3 + $0x78] sm:$0xff]  ;;  %v272_v54 = vld [vmem:[%s5029_s6 + $0x78] sm:$0xff]  ;;  %v4801_v1 = vld [vmem:[#allocation3 + $0x70] sm:$0xff]  ;;  %s4160_s19 = sshll.u32 %s6229_s22, 3 }
  0x17   : > { %401 = vst [vmem:[#allocation2 + $0x20] sm:$0x3] %v4970_v0  ;;  %v365_v12 = vmax.f32 %v333_v10, 0.0  ;;  %v366_v13 = vmax.f32 %v334_v11, 0.0  ;;  %v342_v35 = vadd.f32 %v5045_v6, %v306_v31  ;;  %v314_v36 = vmul.f32 %v5040_v5, %v278_v33  ;;  %v4739_v48 = vld [vmem:[#allocation2] sm:$0xff]  ;;  %v4826_v57 = vld [vmem:[#allocation3 + $0x138] sm:$0xff]  ;;  %vm5302_vm5 = vmor %vm809_vm3, %vm810_vm4  ;;  %s255_s23 = scalar_lea.vmem %s6209_s5, %s4160_s19 }
  0x18   : > { %402 = vst [vmem:[#allocation2 + $0x24] sm:$0xf] %v4970_v0  ;;  %v349_v37 = vadd.f32 %v5045_v6, %v313_v32  ;;  %v373_v41 = vmax.f32 %v341_v34, 0.0  ;;  %v315_v51 = vmul.f32 %v5040_v5, %v279_v40  ;;  %v300_v53 = vmul.f32 %v5040_v5, %v264_v42  ;;  %v280_v59 = vld [vmem:[%s5029_s6 + $0xb8] sm:$0xff]  ;;  %v266_v31 = vld [vmem:[%s5029_s6 + $0x48] sm:$0xff]  ;;  %vm5314_vm8 = vmor %vm988_vm6, %vm989_vm7 }
  0x19   : > { %403 = vst [vmem:[#allocation2 + $0x28] sm:$0xf] %v4970_v0  ;;  %v457_v15 = vpack.c.bf16 %v365_v12, %v365_v12  ;;  %v5058_v16 = vpack.c.bf16 %v366_v13, %v366_v13  ;;  %4868 = vmatpush.bf16.msra.mxu1 %v4791_v14  ;;  %4869 = vmatpush.bf16.msra.mxu2 %v4791_v14  ;;  %v374_v44 = vmax.f32 %v342_v35, 0.0  ;;  %v282_v40 = vld [vmem:[%s5029_s6 + $0xc8] sm:$0xff] }
  0x1a   : > { %404 = vst [vmem:[#allocation2 + $0x2c] sm:$0x3] %v4970_v0  ;;  %4870 = vmatpush.bf16.msra.mxu3 %v4791_v14  ;;  %3107 = vmatpush.bf16.msra.mxu0 %v4791_v14  ;;  %v350_v45 = vadd.f32 %v5045_v6, %v314_v36  ;;  %v381_v46 = vmax.f32 %v349_v37, 0.0  ;;  %v5119_v55 = vpack.c.bf16 %v373_v41, %v373_v41  ;;  %v274_v36 = vld [vmem:[%s5029_s6 + $0x88] sm:$0xff] }
  0x1b   : > { %407 = vst [vmem:[#allocation2 + $0x38] sm:$0x3] %v4970_v0  ;;  %v530_v17 = vrot.slane %v457_v15, 7  ;;  %v532_v18 = vrot.slane %v5058_v16, 7  ;;  %v335_v58 = vadd.f32 %v5045_v6, %v299_v43  ;;  %v5124_v60 = vpack.c.bf16 %v374_v44, %v374_v44 }
  0x1c   : > { %408 = vst [vmem:[#allocation2 + $0x3c] sm:$0xf] %v4970_v0  ;;  %v382_v61 = vmax.f32 %v350_v45, 0.0  ;;  %v5126_v62 = vpack.c.bf16 %v381_v46, %v381_v46  ;;  %v308_v2 = vmul.f32 %v5040_v5, %v272_v54  ;;  %v343_v3 = vadd.f32 %v5045_v6, %v307_v50  ;;  %v257_v46 = vld [vmem:[%s5029_s6] sm:$0xff]  ;;  %v4740_v54 = vld [vmem:[#allocation2 + $0xc] sm:$0xff] }
  0x1d   : > { %409 = vst [vmem:[#allocation2 + $0x40] sm:$0xf] %v4970_v0  ;;  %v531_v21 = vrot.slane %v530_v17, 4  ;;  %4871 = vmatpush.bf16.msra.mxu1 %v4790_v19  ;;  %4872 = vmatpush.bf16.msra.mxu2 %v4790_v19  ;;  %v351_v4 = vadd.f32 %v5045_v6, %v315_v51  ;;  %v336_v7 = vadd.f32 %v5045_v6, %v300_v53  ;;  %v367_v9 = vmax.f32 %v335_v58, 0.0  ;;  %v258_v51 = vld [vmem:[%s5029_s6 + $0x8] sm:$0xff]  ;;  %v4808_v53 = vld [vmem:[#allocation3 + $0xa8] sm:$0xff] }
  0x1e   : > { %410 = vst [vmem:[#allocation2 + $0x44] sm:$0x3] %v4970_v0  ;;  %4873 = vmatpush.bf16.msra.mxu3 %v4790_v19  ;;  %3108 = vmatpush.bf16.msra.mxu0 %v4790_v19  ;;  %v316_v8 = vmul.f32 %v5040_v5, %v280_v59  ;;  %v550_v10 = vrot.slane %v5119_v55, 7  ;;  %v552_v11 = vrot.slane %v5124_v60, 7  ;;  %v5139_v12 = vpack.c.bf16 %v382_v61, %v382_v61 }
  0x1f   : > { %411 = vst [vmem:[#allocation2 + $0x48] sm:$0xf] %v4970_v0  ;;  %v533_v22 = vsel %vm5064_vm2, %v531_v21, %v532_v18  ;;  %v570_v13 = vrot.slane %v5126_v62, 7  ;;  %v5144_v14 = vrot.slane %v532_v18, 4  ;;  %v344_v15 = vadd.f32 %v5045_v6, %v308_v2  ;;  %v4800_v2 = vld [vmem:[#allocation3 + $0x68] sm:$0xff] }
  0x20   : > { %412 = vst [vmem:[#allocation2 + $0x4c] sm:$0xf] %v4970_v0  ;;  %v383_v19 = vmax.f32 %v351_v4, 0.0  ;;  %v368_v21 = vmax.f32 %v336_v7, 0.0  ;;  %v5154_v16 = vpack.c.bf16 %v367_v9, %v367_v9  ;;  %v551_v28 = vrot.slane %v550_v10, 4 }
  0x21   : > { %655 = vst [vmem:[#allocation2 + $0x30] sm:$0xe] %v530_v17  ;;  %4874 = vmatpush.bf16.msra.mxu1 %v4789_v23  ;;  %4875 = vmatpush.bf16.msra.mxu2 %v4789_v23  ;;  %v375_v17 = vmax.f32 %v343_v3, 0.0  ;;  %v572_v30 = vrot.slane %v5139_v12, 7  ;;  %v376_v32 = vmax.f32 %v344_v15, 0.0  ;;  %v302_v34 = vmul.f32 %v5040_v5, %v266_v31  ;;  %v4815_v12 = vld [vmem:[#allocation3 + $0xe0] sm:$0xff] }
  0x22   : > { %413 = vst [vmem:[#allocation2 + $0x50] sm:$0x3] %v4970_v0  ;;  %4876 = vmatpush.bf16.msra.mxu3 %v4789_v23  ;;  %3109 = vmatpush.bf16.msra.mxu0 %v4789_v23  ;;  %v265_v23 = vld [vmem:[%s5029_s6 + $0x40] sm:$0xff]  ;;  %v5173_v38 = vpack.c.bf16 %v383_v19, %v383_v19  ;;  %v460_v42 = vpack.c.bf16 %v368_v21, %v368_v21  ;;  %v535_v43 = vrot.slane %v5154_v16, 7  ;;  %v4824_v15 = vld [vmem:[#allocation3 + $0x128] sm:$0xff] }
  0x23   : > { %414 = vst [vmem:[#allocation2 + $0x54] sm:$0xf] %v4970_v0  ;;  %v301_v18 = vmul.f32 %v5040_v5, %v265_v23  ;;  %v5167_v33 = vpack.c.bf16 %v375_v17, %v375_v17  ;;  %v338_v44 = vadd.f32 %v5045_v6, %v302_v34  ;;  %v318_v58 = vmul.f32 %v5040_v5, %v282_v40  ;;  %v4799_v17 = vld [vmem:[#allocation3 + $0x60] sm:$0xff] }
  0x24   : > { %656 = vst [vmem:[#allocation2 + $0x34] sm:$0xf] %v533_v22  ;;  %v352_v22 = vadd.f32 %v5045_v6, %v316_v8  ;;  %v293_v3 = vmul.f32 %v5040_v5, %v257_v46  ;;  %v536_v7 = vrot.slane %v535_v43, 4  ;;  %v4807_v8 = vld [vmem:[#allocation3 + $0xa0] sm:$0xff] }
  0x25   : > { %415 = vst [vmem:[#allocation2 + $0x58] sm:$0xf] %v4970_v0  ;;  %4877 = vmatpush.bf16.msra.mxu1 %v4788_v24  ;;  %4878 = vmatpush.bf16.msra.mxu2 %v4788_v24  ;;  %v337_v35 = vadd.f32 %v5045_v6, %v301_v18  ;;  %v555_v60 = vrot.slane %v5167_v33, 7  ;;  %v370_v9 = vmax.f32 %v338_v44, 0.0  ;;  %v267_v40 = vld [vmem:[%s5029_s6 + $0x50] sm:$0xff] }
  0x26   : > { %416 = vst [vmem:[#allocation2 + $0x5c] sm:$0x3] %v4970_v0  ;;  %4879 = vmatpush.bf16.msra.mxu3 %v4788_v24  ;;  %3110 = vmatpush.bf16.msra.mxu0 %v4788_v24  ;;  %v273_v24 = vld [vmem:[%s5029_s6 + $0x80] sm:$0xff]  ;;  %v384_v37 = vmax.f32 %v352_v22, 0.0  ;;  %v354_v22 = vadd.f32 %v5045_v6, %v318_v58  ;;  %v303_v46 = vmul.f32 %v5040_v5, %v267_v40 }
  0x27   : > { %417 = vst [vmem:[#allocation2 + $0x60] sm:$0xf] %v4970_v0  ;;  %v309_v26 = vmul.f32 %v5040_v5, %v273_v24  ;;  %v369_v45 = vmax.f32 %v337_v35, 0.0  ;;  %v556_v24 = vrot.slane %v555_v60, 4 }
  0x28   : > { %418 = vst [vmem:[#allocation2 + $0x64] sm:$0xf] %v4970_v0  ;;  %v5195_v61 = vpack.c.bf16 %v384_v37, %v384_v37  ;;  %v386_v35 = vmax.f32 %v354_v22, 0.0  ;;  %v339_v58 = vadd.f32 %v5045_v6, %v303_v46 }
  0x29   : > { %419 = vst [vmem:[#allocation2 + $0x68] sm:$0x3] %v4970_v0  ;;  %4880 = vmatpush.bf16.msra.mxu1 %v4787_v25  ;;  %4881 = vmatpush.bf16.msra.mxu2 %v4787_v25  ;;  %v345_v39 = vadd.f32 %v5045_v6, %v309_v26 }
  0x2a   : > { %420 = vst [vmem:[#allocation2 + $0x6c] sm:$0xf] %v4970_v0  ;;  %4882 = vmatpush.bf16.msra.mxu3 %v4787_v25  ;;  %3111 = vmatpush.bf16.msra.mxu0 %v4787_v25  ;;  %v281_v25 = vld [vmem:[%s5029_s6 + $0xc0] sm:$0xff]  ;;  %v577_v18 = vrot.slane %v5195_v61, 7 }
  0x2b   : > { %421 = vst [vmem:[#allocation2 + $0x70] sm:$0xf] %v4970_v0  ;;  %v4743_v29 = vld [vmem:[#allocation2 + $0x30] sm:$0xff]  ;;  %v317_v27 = vmul.f32 %v5040_v5, %v281_v25  ;;  %v377_v50 = vmax.f32 %v345_v39, 0.0 }
  0x2c   : > { %422 = vst [vmem:[#allocation2 + $0x74] sm:$0x3] %v4970_v0  ;;  %3132 = vmatmul.bf16.vlgmr.msra.gmra.mxu1 %v4743_v29  ;;  %v571_v29 = vrot.slane %v570_v13, 4  ;;  %v5225_v31 = vrot.slane %v577_v18, 4 }
  0x2d   : > { %423 = vst [vmem:[#allocation2 + $0x78] sm:$0xf] %v4970_v0  ;;  %3282 = vmatpush.bf16.msrb.mxu2 %v4810_v47  ;;  %3112 = vmatmul.bf16.vlgmr.msra.gmra.mxu0 %v4739_v48  ;;  %v353_v41 = vadd.f32 %v5045_v6, %v317_v27  ;;  %v553_v47 = vsel %vm5064_vm2, %v551_v28, %v552_v11  ;;  %v554_v48 = vrot.slane %v552_v11, 4  ;;  %v574_v11 = vrot.slane %v572_v30, 4 }
  0x2e   : > { %424 = vst [vmem:[#allocation2 + $0x7c] sm:$0xf] %v4970_v0  ;;  %3371 = vmatpush.bf16.msrb.mxu3 %v4818_v49  ;;  %3193 = vmatpush.bf16.msrb.mxu1 %v4802_v52  ;;  %v310_v49 = vmul.f32 %v5040_v5, %v274_v36  ;;  %v5188_v52 = vpack.c.bf16 %v376_v32, %v376_v32 }
  0x2f   : > { %425 = vst [vmem:[#allocation2 + $0x80] sm:$0x3] %v4970_v0  ;;  %3460 = vmatpush.bf16.msrb.mxu0 %v4826_v57  ;;  %v5190_v57 = vpack.c.bf16 %v369_v45, %v369_v45  ;;  %v385_v59 = vmax.f32 %v353_v41, 0.0  ;;  %v573_v4 = vsel %vm5064_vm2, %v571_v29, %v572_v30  ;;  %v5209_v21 = vpack.c.bf16 %v377_v50, %v377_v50  ;;  %v275_v41 = vld [vmem:[%s5029_s6 + $0x90] sm:$0xff]  ;;  %v268_v50 = vld [vmem:[%s5029_s6 + $0x58] sm:$0xff] }
  0x30   : > { %426 = vst [vmem:[#allocation2 + $0x84] sm:$0xf] %v4970_v0  ;;  %v346_v55 = vadd.f32 %v5045_v6, %v310_v49  ;;  %v557_v25 = vrot.slane %v5188_v52, 7  ;;  %v462_v29 = vpack.c.bf16 %v370_v9, %v370_v9  ;;  %v284_v52 = vld [vmem:[%s5029_s6 + $0xd8] sm:$0xff] }
  0x31   : > { %427 = vst [vmem:[#allocation2 + $0x88] sm:$0xf] %v4970_v0  ;;  %3283 = vmatpush.bf16.msrb.mxu2 %v4809_v56  ;;  %v4816_v56 = vld [vmem:[#allocation3 + $0xe8] sm:$0xff]  ;;  %v540_v19 = vrot.slane %v5190_v57, 7  ;;  %v5212_v23 = vpack.c.bf16 %v385_v59, %v385_v59  ;;  %v560_v34 = vrot.slane %v5209_v21, 7  ;;  %v259_v59 = vld [vmem:[%s5029_s6 + $0x10] sm:$0xff]  ;;  %v320_v33 = vmul.f32 %v5040_v5, %v284_v52 }
  0x32   : > { %428 = vst [vmem:[#allocation2 + $0x8c] sm:$0x3] %v4970_v0  ;;  %3372 = vmatpush.bf16.msrb.mxu3 %v4817_v63  ;;  %3194 = vmatpush.bf16.msrb.mxu1 %v4801_v1  ;;  %v575_v63 = vrot.slane %v5173_v38, 7  ;;  %v4825_v1 = vld [vmem:[#allocation3 + $0x130] sm:$0xff]  ;;  %v559_v30 = vrot.slane %v557_v25, 4  ;;  %v378_v62 = vmax.f32 %v346_v55, 0.0  ;;  %v558_v37 = vsel %vm5064_vm2, %v556_v24, %v557_v25 }
  0x33   : > { %429 = vst [vmem:[#allocation2 + $0x90] sm:$0xf] %v4970_v0  ;;  %3461 = vmatpush.bf16.msrb.mxu0 %v4825_v1  ;;  %v541_v32 = vrot.slane %v540_v19, 4  ;;  %v580_v36 = vrot.slane %v5212_v23, 7  ;;  %v542_v45 = vrot.slane %v462_v29, 7  ;;  %v4814_v24 = vld [vmem:[#allocation3 + $0xd8] sm:$0xff] }
  0x34   : > { %430 = vst [vmem:[#allocation2 + $0x94] sm:$0xf] %v4970_v0  ;;  %v576_v28 = vrot.slane %v575_v63, 4  ;;  %v4823_v25 = vld [vmem:[#allocation3 + $0x120] sm:$0xff] }
  0x35   : > { %431 = vst [vmem:[#allocation2 + $0x98] sm:$0x3] %v4970_v0  ;;  %3284 = vmatpush.bf16.msrb.mxu2 %v4808_v53  ;;  %v561_v53 = vrot.slane %v560_v34, 4  ;;  %v543_v55 = vsel %vm5064_vm2, %v541_v32, %v542_v45 }
  0x36   : > { %432 = vst [vmem:[#allocation2 + $0x9c] sm:$0xf] %v4970_v0  ;;  %3373 = vmatpush.bf16.msrb.mxu3 %v4816_v56  ;;  %3195 = vmatpush.bf16.msrb.mxu1 %v4800_v2  ;;  %v304_v56 = vmul.f32 %v5040_v5, %v268_v50 }
  0x37   : > { %433 = vst [vmem:[#allocation2 + $0xa0] sm:$0xf] %v4970_v0  ;;  %3462 = vmatpush.bf16.msrb.mxu0 %v4824_v15 }
  0x38   : > { %434 = vst [vmem:[#allocation2 + $0xa4] sm:$0x3] %v4970_v0 }
  0x39   : > { %435 = vst [vmem:[#allocation2 + $0xa8] sm:$0xf] %v4970_v0  ;;  %3285 = vmatpush.bf16.msrb.mxu2 %v4807_v8  ;;  %v295_v8 = vmul.f32 %v5040_v5, %v259_v59 }
  0x3a   : > { %436 = vst [vmem:[#allocation2 + $0xac] sm:$0xf] %v4970_v0  ;;  %3374 = vmatpush.bf16.msrb.mxu3 %v4815_v12  ;;  %3196 = vmatpush.bf16.msrb.mxu1 %v4799_v17  ;;  %v4806_v17 = vld [vmem:[#allocation3 + $0x98] sm:$0xff] }
  0x3b   : > { %437 = vst [vmem:[#allocation2 + $0xb0] sm:$0x3] %v4970_v0  ;;  %3463 = vmatpush.bf16.msrb.mxu0 %v4823_v25  ;;  %v4820_v25 = vld [vmem:[#allocation3 + $0x108] sm:$0xff] }
  0x3c   : > { %438 = vst [vmem:[#allocation2 + $0xb4] sm:$0xf] %v4970_v0 }
  0x3d   : > { %439 = vst [vmem:[#allocation2 + $0xb8] sm:$0xf] %v4970_v0  ;;  %3117 = vmatmul.bf16.gmra.mxu0 %v4740_v54  ;;  %v5251_v54 = vpack.c.bf16 %v386_v35, %v386_v35  ;;  %3286 = vmatpush.bf16.msrb.mxu2 %v4806_v17  ;;  %v4822_v35 = vld [vmem:[#allocation3 + $0x118] sm:$0xff]  ;;  %v4803_v17 = vld [vmem:[#allocation3 + $0x80] sm:$0xff] }
  0x3e   : > { %440 = vst [vmem:[#allocation2 + $0xbc] sm:$0x3] %v4970_v0  ;;  %3375 = vmatpush.bf16.msrb.mxu3 %v4814_v24 }
  0x3f   : > { %441 = vst [vmem:[#allocation2 + $0xc0] sm:$0xf] %v4970_v0  ;;  %v582_v29 = vrot.slane %v5251_v54, 7  ;;  %3464 = vmatpush.bf16.msrb.mxu0 %v4822_v35 }
  0x40   : > { %442 = vst [vmem:[#allocation2 + $0xc4] sm:$0xf] %v4970_v0 }
  0x41   : > { %443 = vst [vmem:[#allocation2 + $0xc8] sm:$0x3] %v4970_v0 }
  0x42   : > { %444 = vst [vmem:[#allocation2 + $0xcc] sm:$0xf] %v4970_v0 }
  0x43   : > { %445 = vst [vmem:[#allocation2 + $0xd0] sm:$0xf] %v4970_v0 }
  0x44   : > { %446 = vst [vmem:[#allocation2 + $0xd4] sm:$0x3] %v4970_v0 }
  0x45   : > { %447 = vst [vmem:[#allocation2 + $0xd8] sm:$0xf] %v4970_v0 }
  0x46   : > { %448 = vst [vmem:[#allocation2 + $0xdc] sm:$0xf] %v4970_v0 }
  0x47   : > { %449 = vst [vmem:[#allocation2 + $0xe0] sm:$0x3] %v4970_v0 }
  0x48   : > { %450 = vst [vmem:[#allocation2 + $0xe4] sm:$0xf] %v4970_v0 }
  0x49   : > { %451 = vst [vmem:[#allocation2 + $0xe8] sm:$0xf] %v4970_v0 }
  0x4a   : > { %452 = vst [vmem:[#allocation2 + $0xec] sm:$0x3] %v4970_v0  ;;  %v537_v0 = vrot.slane %v460_v42, 7  ;;  %v283_v42 = vld [vmem:[%s5029_s6 + $0xd0] sm:$0xff] }
  0x4b   : > { %667 = vst [vmem:[#allocation2 + $0x60] sm:$0xe] %v550_v10  ;;  %v294_v10 = vmul.f32 %v5040_v5, %v258_v51  ;;  %v319_v16 = vmul.f32 %v5040_v5, %v283_v42  ;;  %v276_v51 = vld [vmem:[%s5029_s6 + $0x98] sm:$0xff] }
  0x4c   : > { %668 = vst [vmem:[#allocation2 + $0x64] sm:$0xf] %v553_v47  ;;  %v538_v26 = vsel %vm5064_vm2, %v536_v7, %v537_v0  ;;  %v539_v27 = vrot.slane %v537_v0, 4  ;;  %v311_v47 = vmul.f32 %v5040_v5, %v275_v41  ;;  %v312_v1 = vmul.f32 %v5040_v5, %v276_v51  ;;  %v260_v0 = vld [vmem:[%s5029_s6 + $0x18] sm:$0xff] }
  0x4d   : > { %657 = vst [vmem:[#allocation2 + $0x38] sm:$0x1] %v5144_v14  ;;  %v329_v14 = vadd.f32 %v5045_v6, %v293_v3  ;;  %v340_v3 = vadd.f32 %v5045_v6, %v304_v56  ;;  %v355_v7 = vadd.f32 %v5045_v6, %v319_v16 }
  0x4e   : > { %669 = vst [vmem:[#allocation2 + $0x68] sm:$0x1] %v554_v48  ;;  %v470_v48 = vpack.c.bf16 %v378_v62, %v378_v62  ;;  %v347_v2 = vadd.f32 %v5045_v6, %v311_v47  ;;  %v348_v12 = vadd.f32 %v5045_v6, %v312_v1  ;;  %v4813_v62 = vld [vmem:[#allocation3 + $0xd0] sm:$0xff]  ;;  %v584_v47 = vrot.slane %v582_v29, 4 }
  0x4f   : > { %679 = vst [vmem:[#allocation2 + $0x90] sm:$0xe] %v570_v13  ;;  %v330_v13 = vadd.f32 %v5045_v6, %v294_v10  ;;  %v361_v39 = vmax.f32 %v329_v14, 0.0  ;;  %v544_v10 = vrot.slane %v542_v45, 4  ;;  %v4798_v14 = vld [vmem:[#allocation3 + $0x58] sm:$0xff]  ;;  %3376 = vmatpush.bf16.msrb.mxu3 %v4813_v62 }
  0x50   : > { %680 = vst [vmem:[#allocation2 + $0x94] sm:$0xf] %v573_v4  ;;  %v371_v4 = vmax.f32 %v339_v58, 0.0  ;;  %v562_v9 = vrot.slane %v470_v48, 7  ;;  %v379_v15 = vmax.f32 %v347_v2, 0.0  ;;  %3197 = vmatpush.bf16.msrb.mxu1 %v4798_v14  ;;  %v4819_v14 = vld [vmem:[#allocation3 + $0x100] sm:$0xff] }
  0x51   : > { %681 = vst [vmem:[#allocation2 + $0x98] sm:$0x1] %v574_v11  ;;  %v362_v49 = vmax.f32 %v330_v13, 0.0  ;;  %v5256_v61 = vpack.c.bf16 %v361_v39, %v361_v39  ;;  %v581_v11 = vrot.slane %v580_v36, 4  ;;  %v356_v13 = vadd.f32 %v5045_v6, %v320_v33 }
  0x52   : > { %658 = vst [vmem:[#allocation2 + $0x3c] sm:$0xe] %v535_v43  ;;  %v578_v43 = vsel %vm5064_vm2, %v576_v28, %v577_v18  ;;  %v5272_v18 = vpack.c.bf16 %v371_v4, %v371_v4  ;;  %v331_v28 = vadd.f32 %v5045_v6, %v295_v8  ;;  %v563_v32 = vsel %vm5064_vm2, %v561_v53, %v562_v9  ;;  %v4812_v8 = vld [vmem:[#allocation3 + $0xc8] sm:$0xff] }
  0x53   : > { %v4747_v44 = vld [vmem:[#allocation2 + $0x60] sm:$0xff]  ;;  %659 = vst [vmem:[#allocation2 + $0x40] sm:$0xf] %v538_v26  ;;  %v454_v22 = vpack.c.bf16 %v362_v49, %v362_v49  ;;  %v372_v26 = vmax.f32 %v340_v3, 0.0  ;;  %v471_v57 = vpack.c.bf16 %v379_v15, %v379_v15  ;;  %v583_v46 = vsel %vm5064_vm2, %v581_v11, %v582_v29  ;;  %v4796_v15 = vld [vmem:[#allocation3 + $0x48] sm:$0xff]  ;;  %3377 = vmatpush.bf16.msrb.mxu3 %v4812_v8 }
  0x54   : > { %660 = vst [vmem:[#allocation2 + $0x44] sm:$0x1] %v539_v27  ;;  %3152 = vmatmul.bf16.vlgmr.msra.gmra.mxu2 %v4747_v44  ;;  %v296_v27 = vmul.f32 %v5040_v5, %v260_v0  ;;  %v564_v5 = vrot.slane %v562_v9, 4  ;;  %v545_v40 = vrot.slane %v5272_v18, 7  ;;  %v363_v45 = vmax.f32 %v331_v28, 0.0  ;;  %v4804_v0 = vld [vmem:[#allocation3 + $0x88] sm:$0xff] }
  0x55   : > { %670 = vst [vmem:[#allocation2 + $0x6c] sm:$0xe] %v555_v60  ;;  %v464_v39 = vpack.c.bf16 %v372_v26, %v372_v26  ;;  %v522_v42 = vrot.slane %v454_v22, 7  ;;  %v388_v16 = vmax.f32 %v356_v13, 0.0  ;;  %v565_v49 = vrot.slane %v471_v57, 7  ;;  %v4811_v22 = vld [vmem:[#allocation3 + $0xc0] sm:$0xff] }
  0x56   : > { %671 = vst [vmem:[#allocation2 + $0x70] sm:$0xf] %v558_v37  ;;  %v380_v37 = vmax.f32 %v348_v12, 0.0  ;;  %v332_v44 = vadd.f32 %v5045_v6, %v296_v27  ;;  %v546_v6 = vrot.slane %v545_v40, 4  ;;  %v455_v53 = vpack.c.bf16 %v363_v45, %v363_v45  ;;  %v4821_v12 = vld [vmem:[#allocation3 + $0x110] sm:$0xff]  ;;  %v4795_v18 = vld [vmem:[#allocation3 + $0x40] sm:$0xff] }
  0x57   : > { %v4751_v60 = vld [vmem:[#allocation2 + $0x90] sm:$0xff]  ;;  %672 = vst [vmem:[#allocation2 + $0x74] sm:$0x1] %v559_v30  ;;  %v4805_v30 = vld [vmem:[#allocation3 + $0x90] sm:$0xff]  ;;  %v524_v51 = vrot.slane %v522_v42, 4  ;;  %v480_v54 = vpack.c.bf16 %v388_v16, %v388_v16  ;;  %v566_v58 = vrot.slane %v565_v49, 4  ;;  %3465 = vmatpush.bf16.msrb.mxu0 %v4821_v12  ;;  %3378 = vmatpush.bf16.msrb.mxu3 %v4811_v22 }
  0x58   : > { %682 = vst [vmem:[#allocation2 + $0x9c] sm:$0xe] %v575_v63  ;;  %3172 = vmatmul.bf16.vlgmr.msra.gmra.mxu3 %v4751_v60  ;;  %v520_v63 = vrot.slane %v5256_v61, 7  ;;  %3287 = vmatpush.bf16.msrb.mxu2 %v4805_v30  ;;  %v472_v48 = vpack.c.bf16 %v380_v37, %v380_v37  ;;  %v364_v52 = vmax.f32 %v332_v44, 0.0  ;;  %v525_v2 = vrot.slane %v455_v53, 7  ;;  %v4858_v57 = vld [vmem:[#allocation3 + $0x238] sm:$0xff] }
  0x59   : > { %683 = vst [vmem:[#allocation2 + $0xa0] sm:$0xf] %v578_v43  ;;  %v587_v60 = vrot.slane %v480_v54, 7  ;;  %v698_v28 = vld [vmem:[#allocation2 + $0x4] sm:$0xf] }
  0x5a   : > { %v4744_v38 = vld [vmem:[#allocation2 + $0x3c] sm:$0xff]  ;;  %684 = vst [vmem:[#allocation2 + $0xa4] sm:$0x1] %v5225_v31  ;;  %v387_v31 = vmax.f32 %v355_v7, 0.0  ;;  %v521_v41 = vrot.slane %v520_v63, 4  ;;  %v567_v59 = vrot.slane %v472_v48, 7  ;;  %v456_v1 = vpack.c.bf16 %v364_v52, %v364_v52 }
  0x5b   : > { %661 = vst [vmem:[#allocation2 + $0x48] sm:$0xe] %v540_v19  ;;  %3137 = vmatmul.bf16.gmra.mxu1 %v4744_v38  ;;  %v4797_v19 = vld [vmem:[#allocation3 + $0x50] sm:$0xff]  ;;  %v526_v9 = vrot.slane %v525_v2, 4  ;;  %3466 = vmatpush.bf16.msrb.mxu0 %v4820_v25  ;;  %v814_v13 = vrot.slane %v698_v28, 5 }
  0x5c   : > { %662 = vst [vmem:[#allocation2 + $0x4c] sm:$0xf] %v543_v55  ;;  %v479_v43 = vpack.c.bf16 %v387_v31, %v387_v31  ;;  %3198 = vmatpush.bf16.msrb.mxu1 %v4797_v19  ;;  %v523_v50 = vsel %vm5064_vm2, %v521_v41, %v522_v42  ;;  %v568_v4 = vsel %vm5064_vm2, %v566_v58, %v567_v59  ;;  %v569_v7 = vrot.slane %v567_v59, 4  ;;  %v729_v30 = vld [vmem:[#allocation2] sm:$0xe]  ;;  %v4842_v31 = vld [vmem:[#allocation3 + $0x1b8] sm:$0xff] }
  0x5d   : > { %663 = vst [vmem:[#allocation2 + $0x50] sm:$0x1] %v544_v10  ;;  %v4748_v21 = vld [vmem:[#allocation2 + $0x6c] sm:$0xff]  ;;  %v527_v11 = vrot.slane %v456_v1, 7  ;;  %v589_v10 = vrot.slane %v587_v60, 4  ;;  %3288 = vmatpush.bf16.msrb.mxu2 %v4804_v0  ;;  %v4161_v41 = vrot.slane %v729_v30, 9 }
  0x5e   : > { %673 = vst [vmem:[#allocation2 + $0x78] sm:$0xe] %v560_v34  ;;  %v547_v34 = vrot.slane %v464_v39, 7  ;;  %v585_v56 = vrot.slane %v479_v43, 7  ;;  %v730_v37 = vld [vmem:[#allocation2 + $0x8] sm:$0x1] }
  0x5f   : > { %674 = vst [vmem:[#allocation2 + $0x7c] sm:$0xf] %v563_v32  ;;  %v528_v38 = vsel %vm5064_vm2, %v526_v9, %v527_v11  ;;  %3467 = vmatpush.bf16.msrb.mxu0 %v4819_v14  ;;  %v4850_v32 = vld [vmem:[#allocation3 + $0x1f8] sm:$0xff]  ;;  %v816_v42 = vrot.slane %v814_v13, 4  ;;  %v817_v44 = vrot.slane %v730_v37, 5  ;;  %v815_v48 = vsel %vm5302_vm5, %v4161_v41, %v814_v13 }
  0x60   : > { %675 = vst [vmem:[#allocation2 + $0x80] sm:$0x1] %v564_v5  ;;  %v4752_v61 = vld [vmem:[#allocation2 + $0x9c] sm:$0xff]  ;;  %v548_v23 = vsel %vm5064_vm2, %v546_v6, %v547_v34  ;;  %v586_v33 = vrot.slane %v585_v56, 4  ;;  %3199 = vmatpush.bf16.msrb.mxu1 %v4796_v15  ;;  %v4834_v5 = vld [vmem:[#allocation3 + $0x178] sm:$0xff]  ;;  %3727 = vmatpush.bf16.msra.mxu3 %v4850_v32  ;;  %v993_v6 = vrot.slane %v698_v28, 6  ;;  %v1984_v52 = vunpack.c.l.b16 %v815_v48 }
  0x61   : > { %685 = vst [vmem:[#allocation2 + $0xa8] sm:$0xe] %v580_v36  ;;  %v549_v36 = vrot.slane %v547_v34, 4  ;;  %3289 = vmatpush.bf16.msrb.mxu2 %v4803_v17  ;;  %v925_v34 = vld [vmem:[#allocation2 + $0x8] sm:$0x3] }
  0x62   : > { %686 = vst [vmem:[#allocation2 + $0xac] sm:$0xf] %v583_v46  ;;  %v588_v55 = vsel %vm5064_vm2, %v586_v33, %v587_v60  ;;  %v995_v59 = vrot.slane %v993_v6, 4  ;;  %v700_v1 = vld [vmem:[#allocation2 + $0x10] sm:$0xf] }
  0x63   : > { %687 = vst [vmem:[#allocation2 + $0xb0] sm:$0x1] %v584_v47  ;;  %v4745_v3 = vld [vmem:[#allocation2 + $0x48] sm:$0xff]  ;;  %3816 = vmatpush.bf16.msra.mxu0 %v4858_v57  ;;  %v732_v8 = vld [vmem:[#allocation2 + $0x14] sm:$0x1] }
  0x64   : > { %649 = vst [vmem:[#allocation2 + $0x18] sm:$0xe] %v520_v63  ;;  %3157 = vmatmul.bf16.gmra.mxu2 %v4748_v21  ;;  %v529_v63 = vrot.slane %v527_v11, 4  ;;  %3200 = vmatpush.bf16.msrb.mxu1 %v4795_v18  ;;  %v924_v21 = vld [vmem:[#allocation2] sm:$0xc]  ;;  %v824_v22 = vrot.slane %v732_v8, 5 }
  0x65   : > { %650 = vst [vmem:[#allocation2 + $0x1c] sm:$0xf] %v523_v50  ;;  %3638 = vmatpush.bf16.msra.mxu2 %v4842_v31  ;;  %v731_v0 = vld [vmem:[#allocation2 + $0xc] sm:$0xe]  ;;  %v927_v28 = vld [vmem:[#allocation2 + $0x14] sm:$0x3] }
  0x66   : > { %651 = vst [vmem:[#allocation2 + $0x20] sm:$0x1] %v524_v51  ;;  %v4749_v26 = vld [vmem:[#allocation2 + $0x78] sm:$0xff] }
  0x67   : > { %664 = vst [vmem:[#allocation2 + $0x54] sm:$0xe] %v545_v40 }
  0x68   : > { %665 = vst [vmem:[#allocation2 + $0x58] sm:$0xf] %v548_v23  ;;  %3177 = vmatmul.bf16.gmra.mxu3 %v4752_v61  ;;  %3549 = vmatpush.bf16.msra.mxu1 %v4834_v5  ;;  %v996_v61 = vrot.slane %v925_v34, 6 }
  0x69   : > { %666 = vst [vmem:[#allocation2 + $0x5c] sm:$0x1] %v549_v36  ;;  %v4753_v27 = vld [vmem:[#allocation2 + $0xa8] sm:$0xff] }
  0x6a   : > { %676 = vst [vmem:[#allocation2 + $0x84] sm:$0xe] %v565_v49  ;;  %v818_v49 = vsel %vm5302_vm5, %v816_v42, %v817_v44  ;;  %v4841_v44 = vld [vmem:[#allocation3 + $0x1b0] sm:$0xff] }
  0x6b   : > { %677 = vst [vmem:[#allocation2 + $0x88] sm:$0xf] %v568_v4  ;;  %3142 = vmatmul.bf16.gmra.mxu1 %v4745_v3  ;;  %v1135_v39 = vld [vmem:[#allocation2 + $0x18] sm:$0xe]  ;;  %v1985_v53 = vunpack.c.l.b16 %v818_v49  ;;  %v821_v3 = vrot.slane %v700_v1, 5  ;;  %v997_v4 = vsel %vm5314_vm8, %v995_v59, %v996_v61  ;;  %3639 = vmatpush.bf16.msra.mxu2 %v4841_v44 }
  0x6c   : > { %v4741_v24 = vld [vmem:[#allocation2 + $0x18] sm:$0xff]  ;;  %678 = vst [vmem:[#allocation2 + $0x8c] sm:$0x1] %v569_v7  ;;  %v4193_v46 = vrot.slane %v1135_v39, 9 }
  0x6d   : > { %688 = vst [vmem:[#allocation2 + $0xb4] sm:$0xe] %v585_v56  ;;  %3122 = vmatmul.bf16.gmra.mxu0 %v4741_v24  ;;  %v1104_v62 = vld [vmem:[#allocation2 + $0x1c] sm:$0xf]  ;;  %v1136_v40 = vld [vmem:[#allocation2 + $0x20] sm:$0x1] }
  0x6e   : > { %689 = vst [vmem:[#allocation2 + $0xb8] sm:$0xf] %v588_v55  ;;  %v1217_v19 = vrot.slane %v1104_v62, 5  ;;  %v1220_v16 = vrot.slane %v1136_v40, 5  ;;  %v4177_v56 = vrot.slane %v924_v21, 10  ;;  %v2049_v55 = vunpack.c.l.b16 %v997_v4  ;;  %v4755_v31 = vld [vmem:[#allocation2 + $0x18] sm:$0xff] }
  0x6f   : > { %690 = vst [vmem:[#allocation2 + $0xbc] sm:$0x1] %v589_v10  ;;  %v4746_v29 = vld [vmem:[#allocation2 + $0x54] sm:$0xff]  ;;  %v4162_v10 = vrot.slane %v731_v0, 9  ;;  %v823_v17 = vrot.slane %v821_v3, 4  ;;  %v4857_v21 = vld [vmem:[#allocation3 + $0x230] sm:$0xff] }
  0x70   : > { %652 = vst [vmem:[#allocation2 + $0x24] sm:$0xe] %v525_v2  ;;  %v1219_v47 = vrot.slane %v1217_v19, 4  ;;  %v1218_v50 = vsel %vm5302_vm5, %v4193_v46, %v1217_v19  ;;  %v2016_v2 = vpack.c.b16 %v1985_v53, %v1984_v52  ;;  %v994_v60 = vsel %vm5314_vm8, %v4177_v56, %v993_v6  ;;  %v702_v19 = vld [vmem:[#allocation2 + $0x1c] sm:$0xf]  ;;  %v4849_v46 = vld [vmem:[#allocation3 + $0x1f0] sm:$0xff]  ;;  %3817 = vmatpush.bf16.msra.mxu0 %v4857_v21 }
  0x71   : > { %653 = vst [vmem:[#allocation2 + $0x28] sm:$0xf] %v528_v38  ;;  %v2192_v23 = vunpack.c.l.b16 %v1218_v50  ;;  %v2048_v11 = vunpack.c.l.b16 %v994_v60  ;;  %v825_v14 = vsel %vm5302_vm5, %v823_v17, %v824_v22  ;;  %v1108_v40 = vld [vmem:[#allocation2 + $0x34] sm:$0xf]  ;;  %v828_v42 = vrot.slane %v702_v19, 5  ;;  %3728 = vmatpush.bf16.msra.mxu3 %v4849_v46 }
  0x72   : > { %654 = vst [vmem:[#allocation2 + $0x2c] sm:$0x1] %v529_v63  ;;  %v4750_v43 = vld [vmem:[#allocation2 + $0x84] sm:$0xff]  ;;  %v1221_v51 = vsel %vm5302_vm5, %v1219_v47, %v1220_v16  ;;  %v822_v63 = vsel %vm5302_vm5, %v4162_v10, %v821_v3  ;;  %v1987_v13 = vunpack.c.l.b16 %v825_v14  ;;  %v733_v48 = vld [vmem:[#allocation2 + $0x18] sm:$0xe]  ;;  %v1231_v6 = vrot.slane %v1108_v40, 5 }
  0x73   : > { %v2193_v36 = vunpack.c.l.b16 %v1221_v51  ;;  %v2080_v38 = vpack.c.b16 %v2049_v55, %v2048_v11  ;;  %v1986_v62 = vunpack.c.l.b16 %v822_v63  ;;  %v4833_v47 = vld [vmem:[#allocation3 + $0x170] sm:$0xff]  ;;  %v1139_v50 = vld [vmem:[#allocation2 + $0x30] sm:$0xe]  ;;  %v1140_v51 = vld [vmem:[#allocation2 + $0x38] sm:$0x1]  ;;  %v4163_v53 = vrot.slane %v733_v48, 9 }
  0x74   : > { %3162 = vmatmul.bf16.gmra.mxu2 %v4749_v26  ;;  %v926_v26 = vld [vmem:[#allocation2 + $0xc] sm:$0xc]  ;;  %v734_v49 = vld [vmem:[#allocation2 + $0x20] sm:$0x1]  ;;  %3550 = vmatpush.bf16.msra.mxu1 %v4833_v47  ;;  %v4195_v59 = vrot.slane %v1139_v50, 9  ;;  %v1233_v61 = vrot.slane %v1231_v6, 4 }
  0x75   : > { %v4754_v54 = vld [vmem:[#allocation2 + $0xb4] sm:$0xff]  ;;  %v2224_v7 = vpack.c.b16 %v2193_v36, %v2192_v23  ;;  %v4178_v32 = vrot.slane %v926_v26, 10  ;;  %v2017_v39 = vpack.c.b16 %v1987_v13, %v1986_v62  ;;  %v831_v56 = vrot.slane %v734_v49, 5  ;;  %v929_v3 = vld [vmem:[#allocation2 + $0x20] sm:$0x3] }
  0x76   : > { %v1234_v23 = vrot.slane %v1140_v51, 5  ;;  %v1007_v60 = vrot.slane %v702_v19, 6  ;;  %v1232_v4 = vsel %vm5302_vm5, %v4195_v59, %v1231_v6  ;;  %v706_v50 = vld [vmem:[#allocation2 + $0x34] sm:$0xf]  ;;  %v4848_v59 = vld [vmem:[#allocation3 + $0x1e8] sm:$0xff] }
  0x77   : > { %v1137_v12 = vld [vmem:[#allocation2 + $0x24] sm:$0xe]  ;;  %v2196_v55 = vunpack.c.l.b16 %v1232_v4  ;;  %3729 = vmatpush.bf16.msra.mxu3 %v4848_v59  ;;  %v4832_v4 = vld [vmem:[#allocation3 + $0x168] sm:$0xff] }
  0x78   : > { %3182 = vmatmul.bf16.gmra.mxu3 %v4753_v27  ;;  %v4742_v35 = vld [vmem:[#allocation2 + $0x24] sm:$0xff]  ;;  %v4194_v24 = vrot.slane %v1137_v12, 9  ;;  %v1000_v27 = vrot.slane %v700_v1, 6  ;;  %v829_v1 = vsel %vm5302_vm5, %v4163_v53, %v828_v42  ;;  %v1009_v12 = vrot.slane %v1007_v60, 4  ;;  %3551 = vmatpush.bf16.msra.mxu1 %v4832_v4  ;;  %v934_v59 = vld [vmem:[#allocation2 + $0x3c] sm:$0xc] }
  0x79   : > { %v1106_v33 = vld [vmem:[#allocation2 + $0x28] sm:$0xf]  ;;  %v1138_v15 = vld [vmem:[#allocation2 + $0x2c] sm:$0x1]  ;;  %v1988_v0 = vunpack.c.l.b16 %v829_v1  ;;  %v735_v14 = vld [vmem:[#allocation2 + $0x24] sm:$0xe] }
  0x7a   : > { %v1224_v9 = vrot.slane %v1106_v33, 5  ;;  %v1227_v18 = vrot.slane %v1138_v15, 5  ;;  %v1002_v5 = vrot.slane %v1000_v27, 4  ;;  %v1001_v41 = vsel %vm5314_vm8, %v4178_v32, %v1000_v27  ;;  %v928_v33 = vld [vmem:[#allocation2 + $0x18] sm:$0xc] }
  0x7b   : > { %3147 = vmatmul.bf16.gmra.mxu1 %v4746_v29  ;;  %v2050_v34 = vunpack.c.l.b16 %v1001_v41  ;;  %v4179_v11 = vrot.slane %v928_v33, 10  ;;  %v1010_v15 = vrot.slane %v929_v3, 6  ;;  %v704_v17 = vld [vmem:[#allocation2 + $0x28] sm:$0xf]  ;;  %v736_v26 = vld [vmem:[#allocation2 + $0x2c] sm:$0x1] }
  0x7c   : > { %v1226_v25 = vrot.slane %v1224_v9, 4  ;;  %v1225_v29 = vsel %vm5302_vm5, %v4194_v24, %v1224_v9  ;;  %v4756_v9 = vld [vmem:[#allocation2 + $0x24] sm:$0xff]  ;;  %v1110_v24 = vld [vmem:[#allocation2 + $0x40] sm:$0xf]  ;;  %v4164_v13 = vrot.slane %v735_v14, 9  ;;  %v838_v32 = vrot.slane %v736_v26, 5 }
  0x7d   : > { %3127 = vmatmul.bf16.gmra.mxu0 %v4742_v35  ;;  %v1003_v35 = vrot.slane %v927_v28, 6  ;;  %v2194_v37 = vunpack.c.l.b16 %v1225_v29  ;;  %v1238_v27 = vrot.slane %v1110_v24, 5  ;;  %v1141_v29 = vld [vmem:[#allocation2 + $0x3c] sm:$0xe]  ;;  %v930_v40 = vld [vmem:[#allocation2 + $0x24] sm:$0xc] }
  0x7e   : > { %v1228_v30 = vsel %vm5302_vm5, %v1226_v25, %v1227_v18  ;;  %v1008_v25 = vsel %vm5314_vm8, %v4179_v11, %v1007_v60  ;;  %v835_v18 = vrot.slane %v704_v17, 5  ;;  %v1014_v41 = vrot.slane %v704_v17, 6  ;;  %v738_v1 = vld [vmem:[#allocation2 + $0x38] sm:$0x1]  ;;  %v1144_v3 = vld [vmem:[#allocation2 + $0x50] sm:$0x1] }
  0x7f   : > { %v2195_v57 = vunpack.c.l.b16 %v1228_v30  ;;  %v1004_v16 = vsel %vm5314_vm8, %v1002_v5, %v1003_v35  ;;  %v2052_v28 = vunpack.c.l.b16 %v1008_v25  ;;  %v1142_v30 = vld [vmem:[#allocation2 + $0x44] sm:$0x1]  ;;  %v4196_v5 = vrot.slane %v1141_v29, 9  ;;  %v932_v24 = vld [vmem:[#allocation2 + $0x30] sm:$0xc] }
  0x80   : > { %v2051_v52 = vunpack.c.l.b16 %v1004_v16  ;;  %v1240_v35 = vrot.slane %v1238_v27, 4  ;;  %v836_v19 = vsel %vm5302_vm5, %v4164_v13, %v835_v18  ;;  %v4180_v48 = vrot.slane %v930_v40, 10 }
  0x81   : > { %v1239_v44 = vsel %vm5302_vm5, %v4196_v5, %v1238_v27  ;;  %v1990_v47 = vunpack.c.l.b16 %v836_v19  ;;  %v1016_v49 = vrot.slane %v1014_v41, 4  ;;  %v845_v11 = vrot.slane %v738_v1, 5  ;;  %v708_v5 = vld [vmem:[#allocation2 + $0x40] sm:$0xf] }
  0x82   : > { %v2081_v36 = vpack.c.b16 %v2051_v52, %v2050_v34  ;;  %v2198_v6 = vunpack.c.l.b16 %v1239_v44  ;;  %v1112_v52 = vld [vmem:[#allocation2 + $0x4c] sm:$0xf]  ;;  %v1015_v53 = vsel %vm5314_vm8, %v4180_v48, %v1014_v41  ;;  %v1021_v25 = vrot.slane %v706_v50, 6  ;;  %v739_v41 = vld [vmem:[#allocation2 + $0x3c] sm:$0xe] }
  0x83   : > { %v1245_v33 = vrot.slane %v1112_v52, 5  ;;  %v2054_v60 = vunpack.c.l.b16 %v1015_v53  ;;  %v849_v19 = vrot.slane %v708_v5, 5 }
  0x84   : > { %3167 = vmatmul.bf16.gmra.mxu2 %v4750_v43  ;;  %v2225_v43 = vpack.c.b16 %v2195_v57, %v2194_v37  ;;  %v1241_v37 = vrot.slane %v1142_v30, 5  ;;  %v4181_v30 = vrot.slane %v932_v24, 10  ;;  %v4839_v24 = vld [vmem:[#allocation3 + $0x1a0] sm:$0xff] }
  0x86   : > { %v1242_v46 = vsel %vm5302_vm5, %v1240_v35, %v1241_v37  ;;  %v1114_v37 = vld [vmem:[#allocation2 + $0x58] sm:$0xf] }
  0x87   : > { %v2199_v34 = vunpack.c.l.b16 %v1242_v46  ;;  %v1252_v44 = vrot.slane %v1114_v37, 5 }
  0x88   : > { %3187 = vmatmul.bf16.gmra.mxu3 %v4754_v54  ;;  %v830_v54 = vrot.slane %v828_v42, 4  ;;  %v931_v42 = vld [vmem:[#allocation2 + $0x2c] sm:$0x3] }
  0x89   : > { %v1017_v21 = vrot.slane %v931_v42, 6  ;;  %v740_v42 = vld [vmem:[#allocation2 + $0x44] sm:$0x1] }
  0x8b   : > { %3201 = vmatmul.bf16.vlgmr.msrb.gmra.mxu1 %v2016_v2  ;;  %v832_v2 = vsel %vm5302_vm5, %v830_v54, %v831_v56  ;;  %v842_v54 = vrot.slane %v706_v50, 5  ;;  %v4840_v56 = vld [vmem:[#allocation3 + $0x1a8] sm:$0xff] }
  0x8c   : > { %v1989_v8 = vunpack.c.l.b16 %v832_v2  ;;  %3640 = vmatpush.bf16.msra.mxu2 %v4840_v56  ;;  %v1143_v2 = vld [vmem:[#allocation2 + $0x48] sm:$0xe] }
  0x8d   : > { %3468 = vmatmul.bf16.vlgmr.msrb.gmra.mxu0 %v2224_v7  ;;  %v1235_v7 = vsel %vm5302_vm5, %v1233_v61, %v1234_v23  ;;  %v1018_v61 = vsel %vm5314_vm8, %v1016_v49, %v1017_v21  ;;  %v2227_v23 = vpack.c.b16 %v2199_v34, %v2198_v6  ;;  %v4166_v49 = vrot.slane %v739_v41, 9 }
  0x8e   : > { %v2197_v10 = vunpack.c.l.b16 %v1235_v7  ;;  %v2018_v22 = vpack.c.b16 %v1989_v8, %v1988_v0  ;;  %v4856_v7 = vld [vmem:[#allocation3 + $0x228] sm:$0xff]  ;;  %v2055_v0 = vunpack.c.l.b16 %v1018_v61  ;;  %v851_v21 = vrot.slane %v849_v19, 4 }
  0x8f   : > { %3818 = vmatpush.bf16.msra.mxu0 %v4856_v7  ;;  %v852_v6 = vrot.slane %v740_v42, 5  ;;  %v1028_v61 = vrot.slane %v708_v5, 6 }
  0x90   : > { %v2226_v63 = vpack.c.b16 %v2197_v10, %v2196_v55  ;;  %v1248_v55 = vrot.slane %v1144_v3, 5  ;;  %v2083_v10 = vpack.c.b16 %v2055_v0, %v2054_v60  ;;  %v4759_v60 = vld [vmem:[#allocation2 + $0x48] sm:$0xff]  ;;  %v4182_v3 = vrot.slane %v934_v59, 10  ;;  %3641 = vmatpush.bf16.msra.mxu2 %v4839_v24 }
  0x91   : > { %v853_v56 = vsel %vm5302_vm5, %v851_v21, %v852_v6  ;;  %v1030_v4 = vrot.slane %v1028_v61, 4  ;;  %v937_v21 = vld [vmem:[#allocation2 + $0x50] sm:$0x3] }
  0x94   : > { %3290 = vmatmul.bf16.vlgmr.msrb.gmra.mxu2 %v2080_v38  ;;  %v1011_v38 = vsel %vm5314_vm8, %v1009_v12, %v1010_v15  ;;  %v4197_v12 = vrot.slane %v1143_v2, 9  ;;  %v1247_v15 = vrot.slane %v1245_v33, 4 }
  0x95   : > { %v2053_v62 = vunpack.c.l.b16 %v1011_v38  ;;  %v933_v38 = vld [vmem:[#allocation2 + $0x38] sm:$0x3] }
  0x96   : > { %v1249_v14 = vsel %vm5302_vm5, %v1247_v15, %v1248_v55  ;;  %v1024_v13 = vrot.slane %v933_v38, 6  ;;  %v1116_v55 = vld [vmem:[#allocation2 + $0x64] sm:$0xf] }
  0x97   : > { %v2082_v57 = vpack.c.b16 %v2053_v62, %v2052_v28  ;;  %v4758_v28 = vld [vmem:[#allocation2 + $0x3c] sm:$0xff]  ;;  %v1023_v62 = vrot.slane %v1021_v25, 4 }
  0x98   : > { %3379 = vmatmul.bf16.vlgmr.msrb.gmra.mxu3 %v4755_v31  ;;  %v837_v31 = vrot.slane %v835_v18, 4 }
  0x9b   : > { %3206 = vmatmul.bf16.gmra.mxu1 %v2017_v39  ;;  %v839_v39 = vsel %vm5302_vm5, %v837_v31, %v838_v32  ;;  %v2201_v32 = vunpack.c.l.b16 %v1249_v14  ;;  %v741_v14 = vld [vmem:[#allocation2 + $0x48] sm:$0xe] }
  0x9c   : > { %v1991_v16 = vunpack.c.l.b16 %v839_v39  ;;  %v1025_v39 = vsel %vm5314_vm8, %v1023_v62, %v1024_v13  ;;  %v1148_v13 = vld [vmem:[#allocation2 + $0x68] sm:$0x1] }
  0x9d   : > { %3473 = vmatmul.bf16.gmra.mxu0 %v2225_v43  ;;  %v4757_v43 = vld [vmem:[#allocation2 + $0x30] sm:$0xff] }
  0x9e   : > { %v2019_v51 = vpack.c.b16 %v1991_v16, %v1990_v47  ;;  %v1145_v47 = vld [vmem:[#allocation2 + $0x54] sm:$0xe]  ;;  %v1146_v16 = vld [vmem:[#allocation2 + $0x5c] sm:$0x1] }
  0x9f   : > { %v4198_v50 = vrot.slane %v1145_v47, 9  ;;  %v1255_v52 = vrot.slane %v1146_v16, 5 }
  0xa4   : > { %3295 = vmatmul.bf16.gmra.mxu2 %v2081_v36  ;;  %v737_v36 = vld [vmem:[#allocation2 + $0x30] sm:$0xe] }
  0xa5   : > { %v4165_v8 = vrot.slane %v737_v36, 9  ;;  %v1253_v36 = vsel %vm5302_vm5, %v4198_v50, %v1252_v44 }
  0xa6   : > { %v2202_v0 = vunpack.c.l.b16 %v1253_v36 }
  0xa7   : > { %v843_v17 = vsel %vm5302_vm5, %v4165_v8, %v842_v54 }
  0xa8   : > { %3384 = vmatmul.bf16.gmra.mxu3 %v4756_v9  ;;  %v844_v9 = vrot.slane %v842_v54, 4  ;;  %v1992_v26 = vunpack.c.l.b16 %v843_v17  ;;  %v850_v54 = vsel %vm5302_vm5, %v4166_v49, %v849_v19  ;;  %v1029_v17 = vsel %vm5314_vm8, %v4182_v3, %v1028_v61 }
  0xa9   : > { %v5368_v29 = vpop.f32.mrf.mxu1  ;;  %v1994_v2 = vunpack.c.l.b16 %v850_v54  ;;  %v2058_v62 = vunpack.c.l.b16 %v1029_v17  ;;  %v4760_v54 = vld [vmem:[#allocation2 + $0x54] sm:$0xff]  ;;  %v1038_v61 = vrot.slane %v937_v21, 6  ;;  %v4761_v21 = vld [vmem:[#allocation2 + $0x60] sm:$0xff] }
  0xaa   : > { %v5362_v18 = vpop.f32.mrf.mxu0 }
  0xab   : > { %3211 = vmatmul.bf16.gmra.mxu1 %v2018_v22  ;;  %v846_v22 = vsel %vm5302_vm5, %v844_v9, %v845_v11  ;;  %v5386_v9 = vld [vmem:[#allocation2 + $0x4c] sm:$0xf] }
  0xac   : > { %v1993_v27 = vunpack.c.l.b16 %v846_v22  ;;  %v856_v22 = vrot.slane %v5386_v9, 5  ;;  %v1035_v49 = vrot.slane %v5386_v9, 6  ;;  %v743_v9 = vld [vmem:[#allocation2 + $0x54] sm:$0xe] }
  0xad   : > { %3478 = vmatmul.bf16.gmra.mxu0 %v2226_v63  ;;  %v1246_v63 = vsel %vm5302_vm5, %v4197_v12, %v1245_v33  ;;  %v1995_v33 = vunpack.c.l.b16 %v853_v56 }
  0xae   : > { %v2200_v31 = vunpack.c.l.b16 %v1246_v63  ;;  %v2020_v35 = vpack.c.b16 %v1993_v27, %v1992_v26  ;;  %v742_v26 = vld [vmem:[#allocation2 + $0x50] sm:$0x1]  ;;  %v1147_v27 = vld [vmem:[#allocation2 + $0x60] sm:$0xe]  ;;  %v858_v37 = vrot.slane %v856_v22, 4  ;;  %v1037_v59 = vrot.slane %v1035_v49, 4 }
  0xaf   : > { %v2021_v15 = vpack.c.b16 %v1995_v33, %v1994_v2  ;;  %v4199_v19 = vrot.slane %v1147_v27, 9 }
  0xb0   : > { %v2228_v40 = vpack.c.b16 %v2201_v32, %v2200_v31  ;;  %v4831_v31 = vld [vmem:[#allocation3 + $0x160] sm:$0xff] }
  0xb1   : > { %v5376_v34 = vpop.f32.mrf.mxu1  ;;  %v4855_v32 = vld [vmem:[#allocation3 + $0x220] sm:$0xff]  ;;  %3552 = vmatpush.bf16.msra.mxu1 %v4831_v31 }
  0xb2   : > { %v5374_v48 = vpop.f32.mrf.mxu0  ;;  %3819 = vmatpush.bf16.msra.mxu0 %v4855_v32 }
  0xb4   : > { %3300 = vmatmul.bf16.gmra.mxu2 %v2082_v57  ;;  %v1022_v57 = vsel %vm5314_vm8, %v4181_v30, %v1021_v25  ;;  %v4847_v25 = vld [vmem:[#allocation3 + $0x1e0] sm:$0xff] }
  0xb5   : > { %v2056_v46 = vunpack.c.l.b16 %v1022_v57  ;;  %3730 = vmatpush.bf16.msra.mxu3 %v4847_v25  ;;  %v859_v57 = vrot.slane %v742_v26, 5  ;;  %v1149_v25 = vld [vmem:[#allocation2 + $0x6c] sm:$0xe] }
  0xb7   : > { %v860_v16 = vsel %vm5302_vm5, %v858_v37, %v859_v57  ;;  %v938_v57 = vld [vmem:[#allocation2 + $0x54] sm:$0xc] }
  0xb8   : > { %3389 = vmatmul.bf16.gmra.mxu3 %v4757_v43  ;;  %v2057_v43 = vunpack.c.l.b16 %v1025_v39 }
  0xba   : > { %v2084_v53 = vpack.c.b16 %v2057_v43, %v2056_v46  ;;  %v5388_v11 = vpop.f32.mrf.mxu0  ;;  %v936_v43 = vld [vmem:[#allocation2 + $0x48] sm:$0xc] }
  0xbb   : > { %3216 = vmatmul.bf16.gmra.mxu1 %v2019_v51  ;;  %v1254_v51 = vrot.slane %v1252_v44, 4  ;;  %v4183_v56 = vrot.slane %v936_v43, 10 }
  0xbd   : > { %3483 = vmatmul.bf16.gmra.mxu0 %v2227_v23  ;;  %v935_v23 = vld [vmem:[#allocation2 + $0x44] sm:$0x3]  ;;  %v1256_v1 = vsel %vm5302_vm5, %v1254_v51, %v1255_v52 }
  0xbe   : > { %v1031_v7 = vrot.slane %v935_v23, 6  ;;  %v2203_v8 = vunpack.c.l.b16 %v1256_v1  ;;  %v712_v1 = vld [vmem:[#allocation2 + $0x58] sm:$0xf] }
  0xc0   : > { %v1032_v38 = vsel %vm5314_vm8, %v1030_v4, %v1031_v7  ;;  %v2229_v63 = vpack.c.b16 %v2203_v8, %v2202_v0  ;;  %v1036_v4 = vsel %vm5314_vm8, %v4183_v56, %v1035_v49  ;;  %v863_v7 = vrot.slane %v712_v1, 5  ;;  %v5446_v56 = vld [vmem:[#allocation2 + $0x64] sm:$0xf] }
  0xc1   : > { %v2059_v5 = vunpack.c.l.b16 %v1032_v38  ;;  %v1039_v0 = vsel %vm5314_vm8, %v1037_v59, %v1038_v61  ;;  %v2060_v24 = vunpack.c.l.b16 %v1036_v4  ;;  %v1150_v38 = vld [vmem:[#allocation2 + $0x74] sm:$0x1]  ;;  %v4846_v4 = vld [vmem:[#allocation3 + $0x1d8] sm:$0xff] }
  0xc2   : > { %v5405_v46 = vpop.f32.mrf.mxu0  ;;  %v865_v26 = vrot.slane %v863_v7, 4  ;;  %3731 = vmatpush.bf16.msra.mxu3 %v4846_v4 }
  0xc3   : > { %v2085_v42 = vpack.c.b16 %v2059_v5, %v2058_v62 }
  0xc4   : > { %3305 = vmatmul.bf16.gmra.mxu2 %v2083_v10 }
  0xc8   : > { %3394 = vmatmul.bf16.gmra.mxu3 %v4758_v28  ;;  %v1259_v28 = vrot.slane %v1116_v55, 5 }
  0xca   : > { %v1261_v39 = vrot.slane %v1259_v28, 4  ;;  %v1260_v6 = vsel %vm5302_vm5, %v4199_v19, %v1259_v28  ;;  %v4200_v28 = vrot.slane %v1149_v25, 9  ;;  %v1042_v19 = vrot.slane %v712_v1, 6 }
  0xcb   : > { %3221 = vmatmul.bf16.gmra.mxu1 %v2020_v35  ;;  %v4167_v35 = vrot.slane %v741_v14, 9  ;;  %v2204_v23 = vunpack.c.l.b16 %v1260_v6  ;;  %v4168_v14 = vrot.slane %v743_v9, 9  ;;  %v4184_v6 = vrot.slane %v938_v57, 10  ;;  %v746_v9 = vld [vmem:[#allocation2 + $0x68] sm:$0x1] }
  0xcd   : > { %3488 = vmatmul.bf16.gmra.mxu0 %v2228_v40  ;;  %v1262_v40 = vrot.slane %v1148_v13, 5  ;;  %v857_v47 = vsel %vm5302_vm5, %v4167_v35, %v856_v22  ;;  %v1269_v13 = vrot.slane %v1150_v38, 5  ;;  %v864_v35 = vsel %vm5302_vm5, %v4168_v14, %v863_v7  ;;  %v1151_v38 = vld [vmem:[#allocation2 + $0x78] sm:$0xe] }
  0xce   : > { %v1996_v52 = vunpack.c.l.b16 %v857_v47  ;;  %v1998_v43 = vunpack.c.l.b16 %v864_v35  ;;  %v1043_v1 = vsel %vm5314_vm8, %v4184_v6, %v1042_v19  ;;  %v941_v6 = vld [vmem:[#allocation2 + $0x68] sm:$0x3] }
  0xcf   : > { %v1263_v50 = vsel %vm5302_vm5, %v1261_v39, %v1262_v40  ;;  %v939_v40 = vld [vmem:[#allocation2 + $0x5c] sm:$0x3]  ;;  %v2062_v25 = vunpack.c.l.b16 %v1043_v1 }
  0xd0   : > { %v2205_v36 = vunpack.c.l.b16 %v1263_v50  ;;  %v1044_v50 = vrot.slane %v1042_v19, 4 }
  0xd2   : > { %v2230_v8 = vpack.c.b16 %v2205_v36, %v2204_v23  ;;  %v1120_v23 = vld [vmem:[#allocation2 + $0x7c] sm:$0xf] }
  0xd4   : > { %3310 = vmatmul.bf16.gmra.mxu2 %v2084_v53  ;;  %v1997_v53 = vunpack.c.l.b16 %v860_v16 }
  0xd6   : > { %v2022_v33 = vpack.c.b16 %v1997_v53, %v1996_v52  ;;  %v1045_v52 = vrot.slane %v939_v40, 6 }
  0xd7   : > { %v5390_v12 = vpop.f32.mrf.mxu2 }
  0xd8   : > { %3399 = vmatmul.bf16.gmra.mxu3 %v4759_v60  ;;  %v5392_v10 = vpop.f32.mrf.mxu1  ;;  %v1118_v60 = vld [vmem:[#allocation2 + $0x70] sm:$0xf]  ;;  %v1046_v7 = vsel %vm5314_vm8, %v1044_v50, %v1045_v52 }
  0xd9   : > { %v1266_v17 = vrot.slane %v1118_v60, 5  ;;  %v4838_v60 = vld [vmem:[#allocation3 + $0x198] sm:$0xff]  ;;  %v2063_v14 = vunpack.c.l.b16 %v1046_v7  ;;  %v716_v7 = vld [vmem:[#allocation2 + $0x70] sm:$0xf] }
  0xda   : > { %3642 = vmatpush.bf16.msra.mxu2 %v4838_v60  ;;  %v1052_v60 = vrot.slane %v941_v6, 6 }
  0xdb   : > { %v5399_v30 = vpop.f32.mrf.mxu3  ;;  %3226 = vmatmul.bf16.gmra.mxu1 %v2021_v15  ;;  %v744_v15 = vld [vmem:[#allocation2 + $0x5c] sm:$0x1]  ;;  %v1268_v62 = vrot.slane %v1266_v17, 4  ;;  %v2087_v19 = vpack.c.b16 %v2063_v14, %v2062_v25 }
  0xdc   : > { %v866_v27 = vrot.slane %v744_v15, 5 }
  0xdd   : > { %3493 = vmatmul.bf16.gmra.mxu0 %v2229_v63  ;;  %v2061_v63 = vunpack.c.l.b16 %v1039_v0  ;;  %v1270_v47 = vsel %vm5302_vm5, %v1268_v62, %v1269_v13  ;;  %v4830_v62 = vld [vmem:[#allocation3 + $0x158] sm:$0xff] }
  0xde   : > { %v867_v37 = vsel %vm5302_vm5, %v865_v26, %v866_v27  ;;  %v4854_v13 = vld [vmem:[#allocation3 + $0x218] sm:$0xff]  ;;  %3553 = vmatpush.bf16.msra.mxu1 %v4830_v62 }
  0xdf   : > { %v5401_v41 = vpop.f32.mrf.mxu2  ;;  %v2086_v32 = vpack.c.b16 %v2061_v63, %v2060_v24  ;;  %v1999_v49 = vunpack.c.l.b16 %v867_v37  ;;  %v1152_v63 = vld [vmem:[#allocation2 + $0x80] sm:$0x1]  ;;  %3820 = vmatpush.bf16.msra.mxu0 %v4854_v13 }
  0xe0   : > { %v5403_v44 = vpop.f32.mrf.mxu1  ;;  %v1276_v37 = vrot.slane %v1152_v63, 5 }
  0xe1   : > { %v2023_v61 = vpack.c.b16 %v1999_v49, %v1998_v43  ;;  %v940_v43 = vld [vmem:[#allocation2 + $0x60] sm:$0xc]  ;;  %v1049_v49 = vrot.slane %v5446_v56, 6 }
  0xe2   : > { %v4185_v1 = vrot.slane %v940_v43, 10 }
  0xe3   : > { %v5416_v51 = vpop.f32.mrf.mxu3 }
  0xe4   : > { %3315 = vmatmul.bf16.gmra.mxu2 %v2085_v42  ;;  %v1267_v42 = vsel %vm5302_vm5, %v4200_v28, %v1266_v17  ;;  %v1273_v17 = vrot.slane %v1120_v23, 5  ;;  %v873_v28 = vrot.slane %v746_v9, 5  ;;  %v4762_v23 = vld [vmem:[#allocation2 + $0x6c] sm:$0xff]  ;;  %v1122_v9 = vld [vmem:[#allocation2 + $0x88] sm:$0xf]  ;;  %v1050_v25 = vsel %vm5314_vm8, %v4185_v1, %v1049_v49 }
  0xe5   : > { %v2206_v53 = vunpack.c.l.b16 %v1267_v42  ;;  %v1280_v62 = vrot.slane %v1122_v9, 5 }
  0xe6   : > { %v1275_v35 = vrot.slane %v1273_v17, 4 }
  0xe7   : > { %v5418_v2 = vpop.f32.mrf.mxu2  ;;  %v1282_v6 = vrot.slane %v1280_v62, 4 }
  0xe8   : > { %3404 = vmatmul.bf16.gmra.mxu3 %v4760_v54  ;;  %v5420_v3 = vpop.f32.mrf.mxu1  ;;  %v2207_v54 = vunpack.c.l.b16 %v1270_v47  ;;  %v1277_v52 = vsel %vm5302_vm5, %v1275_v35, %v1276_v37  ;;  %v1153_v35 = vld [vmem:[#allocation2 + $0x84] sm:$0xe]  ;;  %v1154_v37 = vld [vmem:[#allocation2 + $0x8c] sm:$0x1] }
  0xea   : > { %v5426_v55 = vpop.f32.mrf.mxu0  ;;  %v2231_v0 = vpack.c.b16 %v2207_v54, %v2206_v53 }
  0xeb   : > { %v5428_v22 = vpop.f32.mrf.mxu3  ;;  %3231 = vmatmul.bf16.gmra.mxu1 %v2022_v33  ;;  %v870_v33 = vrot.slane %v5446_v56, 5  ;;  %v2209_v56 = vunpack.c.l.b16 %v1277_v52 }
  0xed   : > { %3498 = vmatmul.bf16.gmra.mxu0 %v2230_v8  ;;  %v745_v8 = vld [vmem:[#allocation2 + $0x60] sm:$0xe]  ;;  %v872_v27 = vrot.slane %v870_v33, 4 }
  0xee   : > { %v4169_v26 = vrot.slane %v745_v8, 9 }
  0xef   : > { %v5430_v31 = vpop.f32.mrf.mxu2  ;;  %v874_v47 = vsel %vm5302_vm5, %v872_v27, %v873_v28  ;;  %v748_v27 = vld [vmem:[#allocation2 + $0x74] sm:$0x1] }
  0xf0   : > { %v5432_v5 = vpop.f32.mrf.mxu1  ;;  %v871_v42 = vsel %vm5302_vm5, %v4169_v26, %v870_v33  ;;  %v1051_v33 = vrot.slane %v1049_v49, 4  ;;  %v747_v26 = vld [vmem:[#allocation2 + $0x6c] sm:$0xe]  ;;  %v880_v43 = vrot.slane %v748_v27, 5  ;;  %v4202_v49 = vrot.slane %v1153_v35, 9 }
  0xf1   : > { %v2000_v54 = vunpack.c.l.b16 %v871_v42  ;;  %v4170_v42 = vrot.slane %v747_v26, 9 }
  0xf2   : > { %v5438_v39 = vpop.f32.mrf.mxu0  ;;  %v1053_v63 = vsel %vm5314_vm8, %v1051_v33, %v1052_v60  ;;  %v1056_v33 = vrot.slane %v716_v7, 6  ;;  %v942_v60 = vld [vmem:[#allocation2 + $0x6c] sm:$0xc] }
  0xf3   : > { %v5444_v16 = vpop.f32.mrf.mxu3  ;;  %v4186_v26 = vrot.slane %v942_v60, 10 }
  0xf4   : > { %3320 = vmatmul.bf16.gmra.mxu2 %v2086_v32  ;;  %v4201_v32 = vrot.slane %v1151_v38, 9  ;;  %v877_v38 = vrot.slane %v716_v7, 5  ;;  %v1058_v27 = vrot.slane %v1056_v33, 4 }
  0xf6   : > { %v1274_v50 = vsel %vm5302_vm5, %v4201_v32, %v1273_v17  ;;  %v2064_v32 = vunpack.c.l.b16 %v1050_v25 }
  0xf7   : > { %v5448_v59 = vpop.f32.mrf.mxu2  ;;  %v2208_v4 = vunpack.c.l.b16 %v1274_v50  ;;  %v1283_v50 = vrot.slane %v1154_v37, 5  ;;  %v5502_v37 = vld [vmem:[#allocation2 + $0x7c] sm:$0xf] }
  0xf8   : > { %3409 = vmatmul.bf16.gmra.mxu3 %v4761_v21  ;;  %v5450_v36 = vpop.f32.mrf.mxu1 }
  0xf9   : > { %v2232_v14 = vpack.c.b16 %v2209_v56, %v2208_v4  ;;  %v943_v4 = vld [vmem:[#allocation2 + $0x74] sm:$0x3]  ;;  %v1284_v9 = vsel %vm5302_vm5, %v1282_v6, %v1283_v50  ;;  %v1057_v6 = vsel %vm5314_vm8, %v4186_v26, %v1056_v33  ;;  %v1155_v33 = vld [vmem:[#allocation2 + $0x90] sm:$0xe] }
  0xfa   : > { %v5457_v15 = vpop.f32.mrf.mxu0  ;;  %v2211_v35 = vunpack.c.l.b16 %v1284_v9 }
  0xfb   : > { %v5459_v24 = vpop.f32.mrf.mxu3  ;;  %3236 = vmatmul.bf16.gmra.mxu1 %v2023_v61  ;;  %v2001_v61 = vunpack.c.l.b16 %v874_v47  ;;  %v879_v47 = vrot.slane %v877_v38, 4 }
  0xfd   : > { %3503 = vmatmul.bf16.gmra.mxu0 %v2231_v0  ;;  %v2024_v8 = vpack.c.b16 %v2001_v61, %v2000_v54  ;;  %v881_v1 = vsel %vm5302_vm5, %v879_v47, %v880_v43  ;;  %v1124_v47 = vld [vmem:[#allocation2 + $0x94] sm:$0xf] }
  0xff   : > { %v5461_v57 = vpop.f32.mrf.mxu2 }
 0x100   : > { %v5463_v40 = vpop.f32.mrf.mxu1 }
 0x102   : > { %v5470_v21 = vpop.f32.mrf.mxu0 }
 0x103   : > { %v5476_v53 = vpop.f32.mrf.mxu3 }
 0x104   : > { %3325 = vmatmul.bf16.gmra.mxu2 %v2087_v19  ;;  %v2065_v19 = vunpack.c.l.b16 %v1053_v63 }
 0x106   : > { %v2088_v54 = vpack.c.b16 %v2065_v19, %v2064_v32  ;;  %v1059_v32 = vrot.slane %v943_v4, 6  ;;  %v749_v4 = vld [vmem:[#allocation2 + $0x78] sm:$0xe] }
 0x107   : > { %v5478_v0 = vpop.f32.mrf.mxu2 }
 0x108   : > { %3414 = vmatmul.bf16.gmra.mxu3 %v4762_v23  ;;  %v3202_v17 = vpop.f32.mrf.mxu1  ;;  %v878_v23 = vsel %vm5302_vm5, %v4170_v42, %v877_v38  ;;  %v4763_v38 = vld [vmem:[#allocation2 + $0x78] sm:$0xff]  ;;  %v1060_v50 = vsel %vm5314_vm8, %v1058_v27, %v1059_v32  ;;  %v4171_v27 = vrot.slane %v749_v4, 9 }
 0x109   : > { %v2002_v63 = vunpack.c.l.b16 %v878_v23  ;;  %v3203_v19 = vadd.f32 %v3202_v17, %v5362_v18  ;;  %v4837_v23 = vld [vmem:[#allocation3 + $0x190] sm:$0xff]  ;;  %v1287_v17 = vrot.slane %v1124_v47, 5 }
 0x10a   : > { %v5484_v28 = vpop.f32.mrf.mxu0  ;;  %3643 = vmatpush.bf16.msra.mxu2 %v4837_v23 }
 0x10b   : > { %v5486_v13 = vpop.f32.mrf.mxu3  ;;  %3241 = vmatmul.bf16.gmra.mxu1 %v2024_v8  ;;  %v1281_v8 = vsel %vm5302_vm5, %v4202_v49, %v1280_v62 }
 0x10c   : > { %6216 = vst [vmem:[#allocation6_spill] sm:$0xff] %v5486_v13  ;;  %v2210_v7 = vunpack.c.l.b16 %v1281_v8  ;;  %v750_v8 = vld [vmem:[#allocation2 + $0x80] sm:$0x1]  ;;  %v1289_v13 = vrot.slane %v1287_v17, 4 }
 0x10d   : > { %3508 = vmatmul.bf16.gmra.mxu0 %v2232_v14  ;;  %v2003_v14 = vunpack.c.l.b16 %v881_v1  ;;  %v4845_v1 = vld [vmem:[#allocation3 + $0x1d0] sm:$0xff] }
 0x10e   : > { %v2233_v60 = vpack.c.b16 %v2211_v35, %v2210_v7  ;;  %3732 = vmatpush.bf16.msra.mxu3 %v4845_v1  ;;  %v4203_v35 = vrot.slane %v1155_v33, 9 }
 0x10f   : > { %v5488_v52 = vpop.f32.mrf.mxu2  ;;  %v2025_v62 = vpack.c.b16 %v2003_v14, %v2002_v63  ;;  %v2066_v63 = vunpack.c.l.b16 %v1057_v6  ;;  %v2067_v14 = vunpack.c.l.b16 %v1060_v50 }
 0x110   : > { %v3204_v61 = vpop.f32.mrf.mxu1 }
 0x111   : > { %v3205_v7 = vadd.f32 %v3204_v61, %v5374_v48  ;;  %v2089_v6 = vpack.c.b16 %v2067_v14, %v2066_v63  ;;  %v1063_v48 = vrot.slane %v5502_v37, 6 }
 0x112   : > { %v5494_v56 = vpop.f32.mrf.mxu0 }
 0x113   : > { %v5500_v25 = vpop.f32.mrf.mxu3 }
 0x114   : > { %6217 = vst [vmem:[#allocation7_spill] sm:$0xff] %v5500_v25  ;;  %3330 = vmatmul.bf16.gmra.mxu2 %v2088_v54  ;;  %v884_v54 = vrot.slane %v5502_v37, 5  ;;  %v4853_v25 = vld [vmem:[#allocation3 + $0x210] sm:$0xff]  ;;  %v1065_v37 = vrot.slane %v1063_v48, 4 }
 0x115   : > { %3821 = vmatpush.bf16.msra.mxu0 %v4853_v25 }
 0x116   : > { %v886_v32 = vrot.slane %v884_v54, 4  ;;  %v885_v1 = vsel %vm5302_vm5, %v4171_v27, %v884_v54 }
 0x117   : > { %v3291_v42 = vpop.f32.mrf.mxu2  ;;  %v2004_v14 = vunpack.c.l.b16 %v885_v1 }
 0x118   : > { %3419 = vmatmul.bf16.gmra.mxu3 %v4763_v38  ;;  %v3292_v43 = vadd.f32 %v3291_v42, %v3203_v19  ;;  %v3207_v49 = vpop.f32.mrf.mxu1  ;;  %v1156_v38 = vld [vmem:[#allocation2 + $0x98] sm:$0x1]  ;;  %v887_v19 = vrot.slane %v750_v8, 5  ;;  %v4829_v42 = vld [vmem:[#allocation3 + $0x150] sm:$0xff] }
 0x119   : > { %v1290_v23 = vrot.slane %v1156_v38, 5  ;;  %3554 = vmatpush.bf16.msra.mxu1 %v4829_v42  ;;  %v945_v8 = vld [vmem:[#allocation2 + $0x80] sm:$0x3]  ;;  %v4764_v38 = vld [vmem:[#allocation2 + $0x84] sm:$0xff]  ;;  %v3208_v42 = vadd.f32 %v3207_v49, %v5388_v11 }
 0x11a   : > { %v5510_v18 = vpop.f32.mrf.mxu0  ;;  %v888_v4 = vsel %vm5302_vm5, %v886_v32, %v887_v19  ;;  %v1066_v27 = vrot.slane %v945_v8, 6  ;;  %v5528_v19 = vld [vmem:[#allocation2 + $0x88] sm:$0xf]  ;;  %v751_v49 = vld [vmem:[#allocation2 + $0x84] sm:$0xe] }
 0x11b   : > { %v3380_v9 = vpop.f32.mrf.mxu3  ;;  %3246 = vmatmul.bf16.gmra.mxu1 %v2025_v62  ;;  %v2005_v54 = vunpack.c.l.b16 %v888_v4 }
 0x11c   : > { %v3381_v26 = vadd.f32 %v3380_v9, %v3292_v43  ;;  %v1291_v9 = vsel %vm5302_vm5, %v1289_v13, %v1290_v23 }
 0x11d   : > { %3513 = vmatmul.bf16.gmra.mxu0 %v2233_v60  ;;  %v944_v60 = vld [vmem:[#allocation2 + $0x78] sm:$0xc]  ;;  %v2213_v32 = vunpack.c.l.b16 %v1291_v9  ;;  %v2026_v13 = vpack.c.b16 %v2005_v54, %v2004_v14  ;;  %v1158_v14 = vld [vmem:[#allocation2 + $0xa4] sm:$0x1]  ;;  %v4172_v54 = vrot.slane %v751_v49, 9 }
 0x11e   : > { %v5514_v62 = vadd.f32 %v5484_v28, %v3381_v26  ;;  %v1288_v28 = vsel %vm5302_vm5, %v4203_v35, %v1287_v17  ;;  %v4187_v26 = vrot.slane %v944_v60, 10  ;;  %v1126_v35 = vld [vmem:[#allocation2 + $0xa0] sm:$0xf] }
 0x11f   : > { %v3293_v47 = vpop.f32.mrf.mxu2  ;;  %v1294_v60 = vrot.slane %v1126_v35, 5 }
 0x120   : > { %v3294_v50 = vadd.f32 %v3293_v47, %v3205_v7  ;;  %v3209_v43 = vpop.f32.mrf.mxu1 }
 0x121   : > { %v3210_v61 = vadd.f32 %v3209_v43, %v5405_v46  ;;  %v2212_v46 = vunpack.c.l.b16 %v1288_v28  ;;  %v891_v43 = vrot.slane %v5528_v19, 5 }
 0x122   : > { %v5522_v25 = vpop.f32.mrf.mxu0 }
 0x123   : > { %v3382_v63 = vpop.f32.mrf.mxu3  ;;  %v2234_v11 = vpack.c.b16 %v2213_v32, %v2212_v46 }
 0x124   : > { %v3383_v33 = vadd.f32 %v3382_v63, %v3294_v50  ;;  %3335 = vmatmul.bf16.gmra.mxu2 %v2089_v6  ;;  %v1064_v6 = vsel %vm5314_vm8, %v4187_v26, %v1063_v48  ;;  %v1067_v50 = vsel %vm5314_vm8, %v1065_v37, %v1066_v27  ;;  %v1157_v63 = vld [vmem:[#allocation2 + $0x9c] sm:$0xe]  ;;  %v1296_v37 = vrot.slane %v1294_v60, 4 }
 0x125   : > { %v2068_v28 = vunpack.c.l.b16 %v1064_v6  ;;  %v2069_v9 = vunpack.c.l.b16 %v1067_v50  ;;  %v4204_v26 = vrot.slane %v1157_v63, 9  ;;  %v946_v6 = vld [vmem:[#allocation2 + $0x84] sm:$0xc]  ;;  %v947_v50 = vld [vmem:[#allocation2 + $0x8c] sm:$0x3] }
 0x126   : > { %v5532_v17 = vadd.f32 %v5494_v56, %v3383_v33  ;;  %v752_v56 = vld [vmem:[#allocation2 + $0x8c] sm:$0x1]  ;;  %v893_v33 = vrot.slane %v891_v43, 4 }
 0x127   : > { %v3296_v7 = vpop.f32.mrf.mxu2  ;;  %v2090_v32 = vpack.c.b16 %v2069_v9, %v2068_v28  ;;  %v4765_v28 = vld [vmem:[#allocation2 + $0x90] sm:$0xff] }
 0x128   : > { %3424 = vmatmul.bf16.gmra.mxu3 %v4764_v38  ;;  %v3297_v23 = vadd.f32 %v3296_v7, %v3208_v42  ;;  %v3212_v47 = vpop.f32.mrf.mxu1  ;;  %v894_v38 = vrot.slane %v752_v56, 5 }
 0x129   : > { %v3213_v1 = vadd.f32 %v3212_v47, %v5426_v55  ;;  %v1297_v55 = vrot.slane %v1158_v14, 5 }
 0x12a   : > { %v5540_v4 = vpop.f32.mrf.mxu0  ;;  %v895_v35 = vsel %vm5302_vm5, %v893_v33, %v894_v38 }
 0x12b   : > { %v3385_v8 = vpop.f32.mrf.mxu3  ;;  %3251 = vmatmul.bf16.gmra.mxu1 %v2026_v13  ;;  %v892_v13 = vsel %vm5302_vm5, %v4172_v54, %v891_v43  ;;  %v2007_v56 = vunpack.c.l.b16 %v895_v35  ;;  %v1128_v54 = vld [vmem:[#allocation2 + $0xac] sm:$0xf] }
 0x12c   : > { %v3386_v48 = vadd.f32 %v3385_v8, %v3297_v23  ;;  %v1070_v23 = vrot.slane %v5528_v19, 6  ;;  %v2006_v43 = vunpack.c.l.b16 %v892_v13  ;;  %v4188_v19 = vrot.slane %v946_v6, 10  ;;  %v4844_v13 = vld [vmem:[#allocation3 + $0x1c8] sm:$0xff] }
 0x12d   : > { %3518 = vmatmul.bf16.gmra.mxu0 %v2234_v11  ;;  %v754_v6 = vld [vmem:[#allocation2 + $0x98] sm:$0x1]  ;;  %3733 = vmatpush.bf16.msra.mxu3 %v4844_v13 }
 0x12e   : > { %v5543_v27 = vadd.f32 %v5510_v18, %v3386_v48  ;;  %v1295_v18 = vsel %vm5302_vm5, %v4204_v26, %v1294_v60  ;;  %v1072_v9 = vrot.slane %v1070_v23, 4  ;;  %v5559_v48 = vld [vmem:[#allocation2 + $0x94] sm:$0xf]  ;;  %v2027_v38 = vpack.c.b16 %v2007_v56, %v2006_v43  ;;  %v1160_v56 = vld [vmem:[#allocation2 + $0xb0] sm:$0x1] }
 0x12f   : > { %v3298_v46 = vpop.f32.mrf.mxu2  ;;  %v2214_v63 = vunpack.c.l.b16 %v1295_v18  ;;  %v1159_v18 = vld [vmem:[#allocation2 + $0xa8] sm:$0xe] }
 0x130   : > { %6218 = vst [vmem:[#allocation8_spill] sm:$0xff] %v5543_v27  ;;  %v3299_v42 = vadd.f32 %v3298_v46, %v3210_v61  ;;  %v3214_v7 = vpop.f32.mrf.mxu1  ;;  %v1298_v61 = vsel %vm5302_vm5, %v1296_v37, %v1297_v55  ;;  %v1071_v55 = vsel %vm5314_vm8, %v4188_v19, %v1070_v23 }
 0x131   : > { %v5551_v47 = vadd.f32 %v3214_v7, %v5438_v39  ;;  %v1073_v39 = vrot.slane %v947_v50, 6  ;;  %v2215_v14 = vunpack.c.l.b16 %v1298_v61  ;;  %v4836_v7 = vld [vmem:[#allocation3 + $0x188] sm:$0xff]  ;;  %v1301_v50 = vrot.slane %v1128_v54, 5 }
 0x132   : > { %v5553_v11 = vpop.f32.mrf.mxu0  ;;  %3644 = vmatpush.bf16.msra.mxu2 %v4836_v7  ;;  %v2070_v61 = vunpack.c.l.b16 %v1071_v55  ;;  %v4205_v54 = vrot.slane %v1159_v18, 9  ;;  %v5586_v55 = vld [vmem:[%s6206_s2] ss:$0 sm:$0xff] }
 0x133   : > { %v3387_v49 = vpop.f32.mrf.mxu3  ;;  %v1074_v46 = vsel %vm5314_vm8, %v1072_v9, %v1073_v39  ;;  %v2235_v35 = vpack.c.b16 %v2215_v14, %v2214_v63  ;;  %v4828_v9 = vld [vmem:[#allocation3 + $0x148] sm:$0xff]  ;;  %v5578_v63 = vld [vmem:[%s6205_s1] ss:$0 sm:$0xff] }
 0x134   : > { %v3388_v8 = vadd.f32 %v3387_v49, %v3299_v42  ;;  %3340 = vmatmul.bf16.gmra.mxu2 %v2090_v32  ;;  %v753_v32 = vld [vmem:[#allocation2 + $0x90] sm:$0xe]  ;;  %v898_v42 = vrot.slane %v5559_v48, 5  ;;  %v2071_v49 = vunpack.c.l.b16 %v1074_v46  ;;  %v4852_v39 = vld [vmem:[#allocation3 + $0x208] sm:$0xff]  ;;  %3555 = vmatpush.bf16.msra.mxu1 %v4828_v9 }
 0x135   : > { %v4173_v43 = vrot.slane %v753_v32, 9  ;;  %3822 = vmatpush.bf16.msra.mxu0 %v4852_v39 }
 0x136   : > { %v5562_v33 = vadd.f32 %v5522_v25, %v3388_v8  ;;  %v285_v8 = vld [vmem:[%s5029_s6 + $0xe0] sm:$0xff]  ;;  %v900_v19 = vrot.slane %v898_v42, 4  ;;  %v2091_v13 = vpack.c.b16 %v2071_v49, %v2070_v61 }
 0x137   : > { %v3301_v60 = vpop.f32.mrf.mxu2  ;;  %v321_v14 = vmul.f32 %v5578_v63, %v285_v8  ;;  %v948_v8 = vld [vmem:[#allocation2 + $0x90] sm:$0xc] }
 0x138   : > { %6219 = vst [vmem:[#allocation9_spill] sm:$0xff] %v5562_v33  ;;  %3429 = vmatmul.bf16.gmra.mxu3 %v4765_v28  ;;  %v3302_v26 = vadd.f32 %v3301_v60, %v3213_v1  ;;  %v3217_v37 = vpop.f32.mrf.mxu1  ;;  %v1303_v60 = vrot.slane %v1301_v50, 4  ;;  %v1130_v33 = vld [vmem:[#allocation2 + $0xb8] sm:$0xf] }
 0x139   : > { %v5570_v25 = vadd.f32 %v3217_v37, %v5457_v15  ;;  %v901_v15 = vrot.slane %v754_v6, 5  ;;  %v1304_v37 = vrot.slane %v1160_v56, 5  ;;  %v357_v46 = vadd.f32 %v5586_v55, %v321_v14 }
 0x13a   : > { %v5572_v1 = vpop.f32.mrf.mxu0 }
 0x13b   : > { %v3390_v23 = vpop.f32.mrf.mxu3  ;;  %3256 = vmatmul.bf16.gmra.mxu1 %v2027_v38  ;;  %v286_v38 = vld [vmem:[%s5029_s6 + $0xe8] sm:$0xff]  ;;  %v902_v56 = vsel %vm5302_vm5, %v900_v19, %v901_v15  ;;  %v389_v61 = vmax.f32 %v357_v46, 0.0  ;;  %v4189_v19 = vrot.slane %v948_v8, 10 }
 0x13c   : > { %v3391_v28 = vadd.f32 %v3390_v23, %v3302_v26  ;;  %v322_v26 = vmul.f32 %v5578_v63, %v286_v38  ;;  %v899_v23 = vsel %vm5302_vm5, %v4173_v43, %v898_v42  ;;  %v2009_v43 = vunpack.c.l.b16 %v902_v56  ;;  %v4766_v38 = vld [vmem:[#allocation2 + $0x9c] sm:$0xff] }
 0x13d   : > { %3523 = vmatmul.bf16.gmra.mxu0 %v2235_v35  ;;  %v1077_v35 = vrot.slane %v5559_v48, 6  ;;  %v1302_v48 = vsel %vm5302_vm5, %v4205_v54, %v1301_v50  ;;  %v2008_v49 = vunpack.c.l.b16 %v899_v23  ;;  %v481_v50 = vpack.c.bf16 %v389_v61, %v389_v61  ;;  %v755_v56 = vld [vmem:[#allocation2 + $0x9c] sm:$0xe] }
 0x13e   : > { %v5590_v32 = vadd.f32 %v5540_v4, %v3391_v28  ;;  %v358_v9 = vadd.f32 %v5586_v55, %v322_v26  ;;  %v949_v4 = vld [vmem:[#allocation2 + $0x98] sm:$0x3] }
 0x13f   : > { %v3303_v7 = vpop.f32.mrf.mxu2  ;;  %v1080_v26 = vrot.slane %v949_v4, 6  ;;  %v2028_v27 = vpack.c.b16 %v2009_v43, %v2008_v49  ;;  %v756_v4 = vld [vmem:[#allocation2 + $0xa4] sm:$0x1]  ;;  %v1162_v49 = vld [vmem:[#allocation2 + $0xbc] sm:$0x1] }
 0x140   : > { %6220 = vst [vmem:[#allocation10_spill] sm:$0xff] %v5590_v32  ;;  %v3304_v6 = vadd.f32 %v3303_v7, %v5551_v47  ;;  %v3219_v18 = vpop.f32.mrf.mxu1  ;;  %v1305_v47 = vsel %vm5302_vm5, %v1303_v60, %v1304_v37  ;;  %v390_v15 = vmax.f32 %v358_v9, 0.0  ;;  %v2216_v7 = vunpack.c.l.b16 %v1302_v48  ;;  %v5608_v32 = vld [vmem:[#allocation2 + $0xa0] sm:$0xf] }
 0x141   : > { %v5600_v39 = vadd.f32 %v3219_v18, %v5470_v21  ;;  %v1079_v21 = vrot.slane %v1077_v35, 4  ;;  %v2217_v18 = vunpack.c.l.b16 %v1305_v47  ;;  %v1078_v60 = vsel %vm5314_vm8, %v4189_v19, %v1077_v35 }
 0x142   : > { %v5602_v28 = vpop.f32.mrf.mxu0  ;;  %v482_v37 = vpack.c.bf16 %v390_v15, %v390_v15  ;;  %v905_v8 = vrot.slane %v5608_v32, 5  ;;  %v1308_v48 = vrot.slane %v1130_v33, 5  ;;  %v590_v35 = vrot.slane %v481_v50, 7 }
 0x143   : > { %v3392_v42 = vpop.f32.mrf.mxu3  ;;  %v1081_v23 = vsel %vm5314_vm8, %v1079_v21, %v1080_v26  ;;  %v2236_v9 = vpack.c.b16 %v2217_v18, %v2216_v7  ;;  %v4174_v19 = vrot.slane %v755_v56, 9  ;;  %v908_v7 = vrot.slane %v756_v4, 5 }
 0x144   : > { %v3393_v14 = vadd.f32 %v3392_v42, %v3304_v6  ;;  %3345 = vmatmul.bf16.gmra.mxu2 %v2091_v13  ;;  %v592_v47 = vrot.slane %v482_v37, 7  ;;  %v1161_v42 = vld [vmem:[#allocation2 + $0xb4] sm:$0xe]  ;;  %v2073_v43 = vunpack.c.l.b16 %v1081_v23  ;;  %v591_v15 = vrot.slane %v590_v35, 4  ;;  %691 = vst [vmem:[#allocation2 + $0xc0] sm:$0xe] %v590_v35 }
 0x145   : > { %v907_v26 = vrot.slane %v905_v8, 4  ;;  %v4206_v18 = vrot.slane %v1161_v42, 9  ;;  %v1310_v50 = vrot.slane %v1308_v48, 4 }
 0x146   : > { %v5613_v46 = vadd.f32 %v5553_v11, %v3393_v14  ;;  %v2072_v11 = vunpack.c.l.b16 %v1078_v60  ;;  %v594_v14 = vrot.slane %v592_v47, 4  ;;  %v1311_v60 = vrot.slane %v1162_v49, 5 }
 0x147   : > { %v3306_v54 = vpop.f32.mrf.mxu2  ;;  %v909_v49 = vsel %vm5302_vm5, %v907_v26, %v908_v7  ;;  %v4767_v26 = vld [vmem:[#allocation2 + $0xa8] sm:$0xff] }
 0x148   : > { %3434 = vmatmul.bf16.gmra.mxu3 %v4766_v38  ;;  %v3307_v13 = vadd.f32 %v3306_v54, %v5570_v25  ;;  %v5616_v6 = vpop.f32.mrf.mxu1  ;;  %v287_v38 = vld [vmem:[%s5029_s6 + $0xf0] sm:$0xff]  ;;  %v593_v54 = vsel %vm5064_vm2, %v591_v15, %v592_v47  ;;  %693 = vst [vmem:[#allocation2 + $0xc8] sm:$0x1] %v594_v14  ;;  %v2092_v4 = vpack.c.b16 %v2073_v43, %v2072_v11  ;;  %v951_v15 = vld [vmem:[#allocation2 + $0xa4] sm:$0x3] }
 0x149   : > { %v323_v33 = vmul.f32 %v5578_v63, %v287_v38  ;;  %692 = vst [vmem:[#allocation2 + $0xc4] sm:$0xf] %v593_v54  ;;  %v906_v47 = vsel %vm5302_vm5, %v4174_v19, %v905_v8  ;;  %v1309_v11 = vsel %vm5302_vm5, %v4206_v18, %v1308_v48  ;;  %v2011_v38 = vunpack.c.l.b16 %v909_v49 }
 0x14a   : > { %v5621_v61 = vpop.f32.mrf.mxu0  ;;  %v2010_v14 = vunpack.c.l.b16 %v906_v47  ;;  %v3223_v48 = vadd.f32 %v5616_v6, %v5368_v29  ;;  %v4835_v6 = vld [vmem:[#allocation3 + $0x180] sm:$0xff] }
 0x14b   : > { %v3395_v25 = vpop.f32.mrf.mxu3  ;;  %3261 = vmatmul.bf16.gmra.mxu1 %v2028_v27  ;;  %v288_v27 = vld [vmem:[%s5029_s6 + $0xf8] sm:$0xff]  ;;  %v359_v23 = vadd.f32 %v5586_v55, %v323_v33  ;;  %v2218_v33 = vunpack.c.l.b16 %v1309_v11  ;;  %3645 = vmatpush.bf16.msra.mxu2 %v4835_v6 }
 0x14c   : > { %v3396_v21 = vadd.f32 %v3395_v25, %v3307_v13  ;;  %v324_v37 = vmul.f32 %v5578_v63, %v288_v27  ;;  %v950_v63 = vld [vmem:[#allocation2 + $0x9c] sm:$0xc]  ;;  %v5648_v27 = vld [vmem:[#allocation2 + $0xac] sm:$0xf] }
 0x14d   : > { %3528 = vmatmul.bf16.gmra.mxu0 %v2236_v9  ;;  %v1084_v9 = vrot.slane %v5608_v32, 6  ;;  %v1312_v32 = vsel %vm5302_vm5, %v1310_v50, %v1311_v60  ;;  %v4190_v8 = vrot.slane %v950_v63, 10  ;;  %v2029_v60 = vpack.c.b16 %v2011_v38, %v2010_v14 }
 0x14e   : > { %v5631_v13 = vadd.f32 %v5572_v1, %v3396_v21  ;;  %v360_v25 = vadd.f32 %v5586_v55, %v324_v37  ;;  %v1087_v55 = vrot.slane %v951_v15, 6  ;;  %v2219_v54 = vunpack.c.l.b16 %v1312_v32  ;;  %v4843_v15 = vld [vmem:[#allocation3 + $0x1c0] sm:$0xff] }
 0x14f   : > { %v3308_v56 = vpop.f32.mrf.mxu2  ;;  %v1086_v7 = vrot.slane %v1084_v9, 4  ;;  %v912_v29 = vrot.slane %v5648_v27, 5  ;;  %v758_v32 = vld [vmem:[#allocation2 + $0xb0] sm:$0x1]  ;;  %3734 = vmatpush.bf16.msra.mxu3 %v4843_v15  ;;  %v952_v15 = vld [vmem:[#allocation2 + $0xa8] sm:$0xc] }
 0x150   : > { %v3309_v35 = vadd.f32 %v3308_v56, %v5600_v39  ;;  %v5635_v42 = vpop.f32.mrf.mxu1  ;;  %v391_v39 = vmax.f32 %v359_v23, 0.0  ;;  %v392_v19 = vmax.f32 %v360_v25, 0.0  ;;  %v1085_v23 = vsel %vm5314_vm8, %v4190_v8, %v1084_v9  ;;  %v1132_v56 = vld [vmem:[#allocation2 + $0xc4] sm:$0xf]  ;;  %v757_v25 = vld [vmem:[#allocation2 + $0xa8] sm:$0xe] }
 0x151   : > { %v1088_v63 = vsel %vm5314_vm8, %v1086_v7, %v1087_v55  ;;  %v2237_v11 = vpack.c.b16 %v2219_v54, %v2218_v33  ;;  %v1315_v14 = vrot.slane %v1132_v56, 5  ;;  %v914_v54 = vrot.slane %v912_v29, 4 }
 0x152   : > { %v5642_v1 = vpop.f32.mrf.mxu0  ;;  %v483_v37 = vpack.c.bf16 %v391_v39, %v391_v39  ;;  %v484_v18 = vpack.c.bf16 %v392_v19, %v392_v19  ;;  %v2075_v8 = vunpack.c.l.b16 %v1088_v63  ;;  %v4175_v19 = vrot.slane %v757_v25, 9 }
 0x153   : > { %v3397_v43 = vpop.f32.mrf.mxu3 }
 0x154   : > { %v3398_v21 = vadd.f32 %v3397_v43, %v3309_v35  ;;  %3350 = vmatmul.bf16.gmra.mxu2 %v2092_v4  ;;  %v595_v35 = vrot.slane %v483_v37, 7  ;;  %v597_v39 = vrot.slane %v484_v18, 7  ;;  %v915_v37 = vrot.slane %v758_v32, 5  ;;  %v4851_v18 = vld [vmem:[#allocation3 + $0x200] sm:$0xff] }
 0x155   : > { %3823 = vmatpush.bf16.msra.mxu0 %v4851_v18  ;;  %v913_v6 = vsel %vm5302_vm5, %v4175_v19, %v912_v29  ;;  %v4768_v29 = vld [vmem:[#allocation2 + $0xb4] sm:$0xff]  ;;  %v4191_v19 = vrot.slane %v952_v15, 10 }
 0x156   : > { %v5655_v4 = vadd.f32 %v5602_v28, %v3398_v21  ;;  %v596_v9 = vrot.slane %v595_v35, 4  ;;  %694 = vst [vmem:[#allocation2 + $0xcc] sm:$0xe] %v595_v35  ;;  %v2074_v28 = vunpack.c.l.b16 %v1085_v23  ;;  %v1163_v21 = vld [vmem:[#allocation2 + $0xc0] sm:$0xe]  ;;  %v599_v55 = vrot.slane %v597_v39, 4 }
 0x157   : > { %v3311_v50 = vpop.f32.mrf.mxu2  ;;  %v1317_v23 = vrot.slane %v1315_v14, 4 }
 0x158   : > { %3439 = vmatmul.bf16.gmra.mxu3 %v4767_v26  ;;  %v3312_v47 = vadd.f32 %v3311_v50, %v3223_v48  ;;  %v5657_v49 = vpop.f32.mrf.mxu1  ;;  %v1164_v26 = vld [vmem:[#allocation2 + $0xc8] sm:$0x1]  ;;  %v598_v7 = vsel %vm5064_vm2, %v596_v9, %v597_v39  ;;  %v4827_v48 = vld [vmem:[#allocation3 + $0x140] sm:$0xff]  ;;  %v3225_v50 = vadd.f32 %v5635_v42, %v5376_v34  ;;  %696 = vst [vmem:[#allocation2 + $0xd4] sm:$0x1] %v599_v55  ;;  %v1091_v42 = vrot.slane %v5648_v27, 6 }
 0x159   : > { %695 = vst [vmem:[#allocation2 + $0xd0] sm:$0xf] %v598_v7  ;;  %v1318_v56 = vrot.slane %v1164_v26, 5  ;;  %3556 = vmatpush.bf16.msra.mxu1 %v4827_v48  ;;  %v916_v34 = vsel %vm5302_vm5, %v914_v54, %v915_v37  ;;  %v5682_v55 = vld [vmem:[#allocation2 + $0xb8] sm:$0xf] }
 0x15a   : > { %v5662_v43 = vpop.f32.mrf.mxu0 }
 0x15b   : > { %v3400_v38 = vpop.f32.mrf.mxu3  ;;  %3266 = vmatmul.bf16.gmra.mxu1 %v2029_v60  ;;  %v4207_v60 = vrot.slane %v1163_v21, 9  ;;  %v1319_v9 = vsel %vm5302_vm5, %v1317_v23, %v1318_v56  ;;  %v1093_v21 = vrot.slane %v1091_v42, 4  ;;  %v919_v56 = vrot.slane %v5682_v55, 5 }
 0x15c   : > { %v3401_v33 = vadd.f32 %v3400_v38, %v3312_v47  ;;  %v2093_v47 = vpack.c.b16 %v2075_v8, %v2074_v28  ;;  %v2012_v28 = vunpack.c.l.b16 %v913_v6  ;;  %v2013_v38 = vunpack.c.l.b16 %v916_v34 }
 0x15d   : > { %3533 = vmatmul.bf16.gmra.mxu0 %v2237_v11  ;;  %v953_v11 = vld [vmem:[#allocation2 + $0xb0] sm:$0x3]  ;;  %v2221_v7 = vunpack.c.l.b16 %v1319_v9  ;;  %v1165_v15 = vld [vmem:[#allocation2 + $0xcc] sm:$0xe] }
 0x15e   : > { %v5669_v20 = vadd.f32 %v5621_v61, %v3401_v33  ;;  %v1316_v61 = vsel %vm5302_vm5, %v4207_v60, %v1315_v14  ;;  %v1094_v26 = vrot.slane %v953_v11, 6  ;;  %v3228_v33 = vadd.f32 %v5657_v49, %v5392_v10  ;;  %v760_v10 = vld [vmem:[#allocation2 + $0xbc] sm:$0x1] }
 0x15f   : > { %v3313_v35 = vpop.f32.mrf.mxu2  ;;  %v2220_v27 = vunpack.c.l.b16 %v1316_v61  ;;  %v2030_v37 = vpack.c.b16 %v2013_v38, %v2012_v28  ;;  %v1092_v60 = vsel %vm5314_vm8, %v4191_v19, %v1091_v42  ;;  %v1166_v11 = vld [vmem:[#allocation2 + $0xd4] sm:$0x1]  ;;  %v921_v42 = vrot.slane %v919_v56, 4 }
 0x160   : > { %v3314_v63 = vadd.f32 %v3313_v35, %v3225_v50  ;;  %v3229_v25 = vpop.f32.mrf.mxu1  ;;  %v1134_v48 = vld [vmem:[#allocation2 + $0xd0] sm:$0xf]  ;;  %v1095_v23 = vsel %vm5314_vm8, %v1093_v21, %v1094_v26  ;;  %v2076_v6 = vunpack.c.l.b16 %v1092_v60  ;;  %v4208_v38 = vrot.slane %v1165_v15, 9 }
 0x161   : > { %v2238_v35 = vpack.c.b16 %v2221_v7, %v2220_v27  ;;  %v2077_v34 = vunpack.c.l.b16 %v1095_v23  ;;  %v3230_v28 = vadd.f32 %v3229_v25, %v5403_v44  ;;  %v1098_v44 = vrot.slane %v5682_v55, 6 }
 0x162   : > { %v5676_v32 = vpop.f32.mrf.mxu0 }
 0x163   : > { %v3402_v39 = vpop.f32.mrf.mxu3  ;;  %v2094_v27 = vpack.c.b16 %v2077_v34, %v2076_v6 }
 0x164   : > { %v3403_v8 = vadd.f32 %v3402_v39, %v3314_v63  ;;  %3355 = vmatmul.bf16.gmra.mxu2 %v2093_v47  ;;  %v759_v47 = vld [vmem:[#allocation2 + $0xb4] sm:$0xe]  ;;  %v922_v39 = vrot.slane %v760_v10, 5 }
 0x165   : > { %v4176_v9 = vrot.slane %v759_v47, 9 }
 0x166   : > { %v5687_v14 = vadd.f32 %v5642_v1, %v3403_v8  ;;  %v1322_v1 = vrot.slane %v1134_v48, 5  ;;  %v955_v48 = vld [vmem:[#allocation2 + $0xbc] sm:$0x3] }
 0x167   : > { %v3316_v54 = vpop.f32.mrf.mxu2  ;;  %v1101_v6 = vrot.slane %v955_v48, 6  ;;  %v1729_v48 = vld [vmem:[#allocation2 + $0x38] sm:$0x3] }
 0x168   : > { %3444 = vmatmul.bf16.gmra.mxu3 %v4768_v29  ;;  %v3317_v18 = vadd.f32 %v3316_v54, %v3228_v33  ;;  %v3232_v50 = vpop.f32.mrf.mxu1  ;;  %v1324_v8 = vrot.slane %v1322_v1, 4  ;;  %v1325_v29 = vrot.slane %v1166_v11, 5  ;;  %v920_v33 = vsel %vm5302_vm5, %v4176_v9, %v919_v56  ;;  %v4769_v56 = vld [vmem:[#allocation2 + $0xc0] sm:$0xff] }
 0x169   : > { %v923_v54 = vsel %vm5302_vm5, %v921_v42, %v922_v39  ;;  %v2014_v23 = vunpack.c.l.b16 %v920_v33  ;;  %v3233_v15 = vadd.f32 %v3232_v50, %v5420_v3  ;;  %v1505_v3 = vld [vmem:[#allocation2 + $0x34] sm:$0xf] }
 0x16a   : > { %v5694_v49 = vpop.f32.mrf.mxu0 }
 0x16b   : > { %v3405_v63 = vpop.f32.mrf.mxu3  ;;  %3271 = vmatmul.bf16.gmra.mxu1 %v2030_v37  ;;  %v954_v37 = vld [vmem:[#allocation2 + $0xb4] sm:$0xc] }
 0x16c   : > { %v3406_v61 = vadd.f32 %v3405_v63, %v3317_v18  ;;  %v1326_v18 = vsel %vm5302_vm5, %v1324_v8, %v1325_v29  ;;  %v4192_v10 = vrot.slane %v954_v37, 10  ;;  %v1100_v63 = vrot.slane %v1098_v44, 4  ;;  %v1728_v37 = vld [vmem:[#allocation2 + $0x30] sm:$0xc] }
 0x16d   : > { %3538 = vmatmul.bf16.gmra.mxu0 %v2238_v35  ;;  %v2015_v35 = vunpack.c.l.b16 %v923_v54  ;;  %v2223_v55 = vunpack.c.l.b16 %v1326_v18 }
 0x16e   : > { %v5698_v19 = vadd.f32 %v5662_v43, %v3406_v61  ;;  %v1323_v43 = vsel %vm5302_vm5, %v4208_v38, %v1322_v1  ;;  %v4909_v1 = vld [vmem:[#allocation2 + $0x1c] sm:$0xf]  ;;  %v1099_v38 = vsel %vm5314_vm8, %v4192_v10, %v1098_v44  ;;  %v1102_v8 = vsel %vm5314_vm8, %v1100_v63, %v1101_v6 }
 0x16f   : > { %v3318_v21 = vpop.f32.mrf.mxu2  ;;  %v2222_v34 = vunpack.c.l.b16 %v1323_v43  ;;  %v1393_v61 = vrot.slane %v4909_v1, 6  ;;  %v2031_v42 = vpack.c.b16 %v2015_v35, %v2014_v23  ;;  %v2078_v54 = vunpack.c.l.b16 %v1099_v38 }
 0x170   : > { %v3319_v26 = vadd.f32 %v3318_v21, %v3230_v28  ;;  %v3234_v7 = vpop.f32.mrf.mxu1  ;;  %v1327_v21 = vld [vmem:[#allocation2 + $0x18] sm:$0xc]  ;;  %v2079_v18 = vunpack.c.l.b16 %v1102_v8  ;;  %v4241_v35 = vrot.slane %v1728_v37, 10  ;;  %v4770_v8 = vld [vmem:[#allocation2 + $0xcc] sm:$0xff] }
 0x171   : > { %v2239_v29 = vpack.c.b16 %v2223_v55, %v2222_v34  ;;  %v3235_v23 = vadd.f32 %v3234_v7, %v5432_v5 }
 0x172   : > { %v5705_v25 = vpop.f32.mrf.mxu0  ;;  %v2095_v34 = vpack.c.b16 %v2079_v18, %v2078_v54 }
 0x173   : > { %v3407_v60 = vpop.f32.mrf.mxu3 }
 0x174   : > { %v3408_v47 = vadd.f32 %v3407_v60, %v3319_v26  ;;  %3360 = vmatmul.bf16.gmra.mxu2 %v2094_v27  ;;  %v1328_v26 = vld [vmem:[#allocation2 + $0x20] sm:$0x3]  ;;  %v1395_v27 = vrot.slane %v1393_v61, 4  ;;  %v4209_v60 = vrot.slane %v1327_v21, 10  ;;  %v1618_v21 = vrot.slane %v1505_v3, 5 }
 0x175   : > { %v1396_v44 = vrot.slane %v1328_v26, 6 }
 0x176   : > { %v5713_v11 = vadd.f32 %v5676_v32, %v3408_v47  ;;  %v1794_v32 = vrot.slane %v1505_v3, 6  ;;  %v1329_v3 = vld [vmem:[#allocation2 + $0x24] sm:$0xc] }
 0x177   : > { %v3321_v9 = vpop.f32.mrf.mxu2  ;;  %v1397_v1 = vsel %vm5314_vm8, %v1395_v27, %v1396_v44 }
 0x178   : > { %3449 = vmatmul.bf16.gmra.mxu3 %v4769_v56  ;;  %v3322_v39 = vadd.f32 %v3321_v9, %v3233_v15  ;;  %v3237_v28 = vpop.f32.mrf.mxu1  ;;  %v1796_v47 = vrot.slane %v1794_v32, 4  ;;  %v1797_v56 = vrot.slane %v1729_v48, 6  ;;  %v1394_v15 = vsel %vm5314_vm8, %v4209_v60, %v1393_v61  ;;  %v1537_v61 = vld [vmem:[#allocation2 + $0x38] sm:$0x1] }
 0x179   : > { %v1795_v5 = vsel %vm5314_vm8, %v4241_v35, %v1794_v32  ;;  %v3238_v27 = vadd.f32 %v3237_v28, %v5450_v36  ;;  %v1621_v35 = vrot.slane %v1537_v61, 5 }
 0x17a   : > { %v5719_v50 = vpop.f32.mrf.mxu0  ;;  %v1798_v7 = vsel %vm5314_vm8, %v1796_v47, %v1797_v56  ;;  %v2464_v26 = vunpack.c.l.b16 %v1795_v5  ;;  %v1330_v56 = vld [vmem:[#allocation2 + $0x2c] sm:$0x3]  ;;  %v4210_v5 = vrot.slane %v1329_v3, 10 }
 0x17b   : > { %v3410_v33 = vpop.f32.mrf.mxu3  ;;  %3276 = vmatmul.bf16.gmra.mxu1 %v2031_v42  ;;  %v2256_v42 = vunpack.c.l.b16 %v1394_v15  ;;  %v1731_v15 = vld [vmem:[#allocation2 + $0x44] sm:$0x3] }
 0x17c   : > { %v3411_v43 = vadd.f32 %v3410_v33, %v3322_v39  ;;  %v2257_v39 = vunpack.c.l.b16 %v1397_v1  ;;  %v2465_v33 = vunpack.c.l.b16 %v1798_v7 }
 0x17d   : > { %3543 = vmatmul.bf16.gmra.mxu0 %v2239_v29  ;;  %v1536_v29 = vld [vmem:[#allocation2 + $0x30] sm:$0xe] }
 0x17e   : > { %v5723_v10 = vadd.f32 %v5694_v49, %v3411_v43  ;;  %v2288_v37 = vpack.c.b16 %v2257_v39, %v2256_v42  ;;  %v4225_v48 = vrot.slane %v1536_v29, 9  ;;  %v4910_v43 = vld [vmem:[#allocation2 + $0x28] sm:$0xf]  ;;  %v2496_v47 = vpack.c.b16 %v2465_v33, %v2464_v26 }
 0x17f   : > { %v3323_v63 = vpop.f32.mrf.mxu2  ;;  %v1400_v18 = vrot.slane %v4910_v43, 6  ;;  %v1804_v29 = vrot.slane %v1731_v15, 6 }
 0x180   : > { %v3324_v6 = vadd.f32 %v3323_v63, %v3235_v23  ;;  %v3239_v55 = vpop.f32.mrf.mxu1  ;;  %v1620_v23 = vrot.slane %v1618_v21, 4  ;;  %v5739_v63 = vld [vmem:[#allocation2 + $0x40] sm:$0xf] }
 0x181   : > { %v1801_v36 = vrot.slane %v5739_v63, 6  ;;  %v1402_v7 = vrot.slane %v1400_v18, 4  ;;  %v3240_v42 = vadd.f32 %v3239_v55, %v5463_v40 }
 0x182   : > { %v5729_v9 = vpop.f32.mrf.mxu0  ;;  %v1622_v39 = vsel %vm5302_vm5, %v1620_v23, %v1621_v35 }
 0x183   : > { %v3412_v49 = vpop.f32.mrf.mxu3 }
 0x184   : > { %v3413_v38 = vadd.f32 %v3412_v49, %v3324_v6  ;;  %3365 = vmatmul.bf16.gmra.mxu2 %v2095_v34  ;;  %v1730_v34 = vld [vmem:[#allocation2 + $0x3c] sm:$0xc]  ;;  %v1403_v49 = vrot.slane %v1330_v56, 6 }
 0x185   : > { %v1538_v56 = vld [vmem:[#allocation2 + $0x3c] sm:$0xe] }
 0x186   : > { %v5737_v32 = vadd.f32 %v5705_v25, %v3413_v38  ;;  %v1619_v25 = vsel %vm5302_vm5, %v4225_v48, %v1618_v21  ;;  %v4242_v38 = vrot.slane %v1730_v34, 10  ;;  %v1401_v48 = vsel %vm5314_vm8, %v4210_v5, %v1400_v18 }
 0x187   : > { %v3326_v54 = vpop.f32.mrf.mxu2  ;;  %v2400_v21 = vunpack.c.l.b16 %v1619_v25  ;;  %v1404_v40 = vsel %vm5314_vm8, %v1402_v7, %v1403_v49  ;;  %v2258_v23 = vunpack.c.l.b16 %v1401_v48  ;;  %v1625_v18 = vrot.slane %v5739_v63, 5  ;;  %v4911_v49 = vld [vmem:[#allocation2 + $0x34] sm:$0xf]  ;;  %v1331_v63 = vld [vmem:[#allocation2 + $0x30] sm:$0xc] }
 0x188   : > { %3454 = vmatmul.bf16.gmra.mxu3 %v4770_v8  ;;  %v3327_v60 = vadd.f32 %v3326_v54, %v3238_v27  ;;  %v3242_v44 = vpop.f32.mrf.mxu1  ;;  %v1803_v8 = vrot.slane %v1801_v36, 4  ;;  %v4771_v27 = vld [vmem:[#allocation2 + $0x30] sm:$0xff]  ;;  %v2401_v54 = vunpack.c.l.b16 %v1622_v39  ;;  %v1802_v43 = vsel %vm5314_vm8, %v4242_v38, %v1801_v36 }
 0x189   : > { %v2259_v35 = vunpack.c.l.b16 %v1404_v40  ;;  %v2466_v25 = vunpack.c.l.b16 %v1802_v43  ;;  %v3243_v15 = vadd.f32 %v3242_v44, %v5390_v12  ;;  %v4226_v36 = vrot.slane %v1538_v56, 9  ;;  %v1733_v48 = vld [vmem:[#allocation2 + $0x50] sm:$0x3] }
 0x18a   : > { %v5741_v6 = vpop.f32.mrf.mxu0  ;;  %v2432_v3 = vpack.c.b16 %v2401_v54, %v2400_v21  ;;  %v1332_v21 = vld [vmem:[#allocation2 + $0x38] sm:$0x3]  ;;  %v1732_v54 = vld [vmem:[#allocation2 + $0x48] sm:$0xc]  ;;  %v4211_v43 = vrot.slane %v1331_v63, 10  ;;  %v1811_v56 = vrot.slane %v1733_v48, 6 }
 0x18b   : > { %v3415_v28 = vpop.f32.mrf.mxu3  ;;  %3557 = vmatmul.bf16.vlgmr.msra.gmra.mxu1 %v2288_v37  ;;  %v2289_v5 = vpack.c.b16 %v2259_v35, %v2258_v23 }
 0x18c   : > { %v3416_v1 = vadd.f32 %v3415_v28, %v3327_v60  ;;  %v1539_v28 = vld [vmem:[#allocation2 + $0x44] sm:$0x1] }
 0x18d   : > { %3824 = vmatmul.bf16.vlgmr.msra.gmra.mxu0 %v2496_v47 }
 0x18e   : > { %v5750_v61 = vadd.f32 %v5719_v50, %v3416_v1  ;;  %v1805_v50 = vsel %vm5314_vm8, %v1803_v8, %v1804_v29  ;;  %v1627_v8 = vrot.slane %v1625_v18, 4  ;;  %v1628_v29 = vrot.slane %v1539_v28, 5 }
 0x18f   : > { %v3328_v26 = vpop.f32.mrf.mxu2  ;;  %v2467_v34 = vunpack.c.l.b16 %v1805_v50 }
 0x190   : > { %v3329_v33 = vadd.f32 %v3328_v26, %v3240_v42  ;;  %v3244_v37 = vpop.f32.mrf.mxu1  ;;  %v1407_v42 = vrot.slane %v4911_v49, 6  ;;  %v1629_v35 = vsel %vm5302_vm5, %v1627_v8, %v1628_v29 }
 0x191   : > { %v2497_v26 = vpack.c.b16 %v2467_v34, %v2466_v25  ;;  %v3245_v23 = vadd.f32 %v3244_v37, %v5401_v41 }
 0x192   : > { %v5756_v55 = vpop.f32.mrf.mxu0  ;;  %v1409_v50 = vrot.slane %v1407_v42, 4 }
 0x193   : > { %v3417_v60 = vpop.f32.mrf.mxu3 }
 0x194   : > { %v3418_v47 = vadd.f32 %v3417_v60, %v3329_v33  ;;  %3646 = vmatmul.bf16.vlgmr.msra.gmra.mxu2 %v4771_v27  ;;  %v5767_v33 = vld [vmem:[#allocation2 + $0x4c] sm:$0xf]  ;;  %v1410_v60 = vrot.slane %v1332_v21, 6  ;;  %v1540_v21 = vld [vmem:[#allocation2 + $0x48] sm:$0xe] }
 0x195   : > { %v1808_v12 = vrot.slane %v5767_v33, 6 }
 0x196   : > { %v5765_v7 = vadd.f32 %v5729_v9, %v3418_v47  ;;  %v1626_v9 = vsel %vm5302_vm5, %v4226_v36, %v1625_v18  ;;  %v4243_v47 = vrot.slane %v1732_v54, 10  ;;  %v1408_v36 = vsel %vm5314_vm8, %v4211_v43, %v1407_v42 }
 0x197   : > { %v3331_v1 = vpop.f32.mrf.mxu2  ;;  %v2402_v18 = vunpack.c.l.b16 %v1626_v9  ;;  %v1411_v41 = vsel %vm5314_vm8, %v1409_v50, %v1410_v60  ;;  %v2260_v8 = vunpack.c.l.b16 %v1408_v36  ;;  %v1632_v42 = vrot.slane %v5767_v33, 5  ;;  %v4912_v60 = vld [vmem:[#allocation2 + $0x40] sm:$0xf]  ;;  %v1333_v33 = vld [vmem:[#allocation2 + $0x3c] sm:$0xc] }
 0x198   : > { %3735 = vmatmul.bf16.vlgmr.msra.gmra.mxu3 %v2432_v3  ;;  %v3332_v39 = vadd.f32 %v3331_v1, %v3243_v15  ;;  %v3247_v38 = vpop.f32.mrf.mxu1  ;;  %v1810_v3 = vrot.slane %v1808_v12, 4  ;;  %v4772_v15 = vld [vmem:[#allocation2 + $0x3c] sm:$0xff]  ;;  %v2403_v1 = vunpack.c.l.b16 %v1629_v35  ;;  %v1809_v49 = vsel %vm5314_vm8, %v4243_v47, %v1808_v12 }
 0x199   : > { %v2261_v29 = vunpack.c.l.b16 %v1411_v41  ;;  %v2468_v9 = vunpack.c.l.b16 %v1809_v49  ;;  %v3248_v48 = vadd.f32 %v3247_v38, %v5418_v2  ;;  %v4227_v12 = vrot.slane %v1540_v21, 9  ;;  %v1735_v36 = vld [vmem:[#allocation2 + $0x5c] sm:$0x3] }
 0x19a   : > { %v5769_v27 = vpop.f32.mrf.mxu0  ;;  %v2433_v63 = vpack.c.b16 %v2403_v1, %v2402_v18  ;;  %v1334_v18 = vld [vmem:[#allocation2 + $0x44] sm:$0x3]  ;;  %v1734_v1 = vld [vmem:[#allocation2 + $0x54] sm:$0xc]  ;;  %v4212_v49 = vrot.slane %v1333_v33, 10  ;;  %v1818_v21 = vrot.slane %v1735_v36, 6 }
 0x19b   : > { %v3420_v44 = vpop.f32.mrf.mxu3  ;;  %3562 = vmatmul.bf16.gmra.mxu1 %v2289_v5  ;;  %v2290_v43 = vpack.c.b16 %v2261_v29, %v2260_v8 }
 0x19c   : > { %v3421_v40 = vadd.f32 %v3420_v44, %v3332_v39  ;;  %v1541_v44 = vld [vmem:[#allocation2 + $0x50] sm:$0x1] }
 0x19d   : > { %3829 = vmatmul.bf16.gmra.mxu0 %v2497_v26 }
 0x19e   : > { %v5778_v28 = vadd.f32 %v5741_v6, %v3421_v40  ;;  %v1812_v6 = vsel %vm5314_vm8, %v1810_v3, %v1811_v56  ;;  %v1634_v3 = vrot.slane %v1632_v42, 4  ;;  %v1635_v56 = vrot.slane %v1541_v44, 5 }
 0x19f   : > { %v3333_v25 = vpop.f32.mrf.mxu2  ;;  %v2469_v54 = vunpack.c.l.b16 %v1812_v6 }
 0x1a0   : > { %v3334_v34 = vadd.f32 %v3333_v25, %v3245_v23  ;;  %v3249_v5 = vpop.f32.mrf.mxu1  ;;  %v1414_v23 = vrot.slane %v4912_v60, 6  ;;  %v1636_v29 = vsel %vm5302_vm5, %v1634_v3, %v1635_v56 }
 0x1a1   : > { %v2498_v25 = vpack.c.b16 %v2469_v54, %v2468_v9  ;;  %v3250_v8 = vadd.f32 %v3249_v5, %v5430_v31 }
 0x1a2   : > { %v5784_v37 = vpop.f32.mrf.mxu0  ;;  %v1416_v6 = vrot.slane %v1414_v23, 4 }
 0x1a3   : > { %v3422_v39 = vpop.f32.mrf.mxu3 }
 0x1a4   : > { %v3423_v26 = vadd.f32 %v3422_v39, %v3334_v34  ;;  %3651 = vmatmul.bf16.gmra.mxu2 %v4772_v15  ;;  %v5795_v34 = vld [vmem:[#allocation2 + $0x58] sm:$0xf]  ;;  %v1417_v39 = vrot.slane %v1334_v18, 6  ;;  %v1542_v18 = vld [vmem:[#allocation2 + $0x54] sm:$0xe] }
 0x1a5   : > { %v1815_v2 = vrot.slane %v5795_v34, 6 }
 0x1a6   : > { %v5793_v50 = vadd.f32 %v5756_v55, %v3423_v26  ;;  %v1633_v55 = vsel %vm5302_vm5, %v4227_v12, %v1632_v42  ;;  %v4244_v26 = vrot.slane %v1734_v1, 10  ;;  %v1415_v12 = vsel %vm5314_vm8, %v4212_v49, %v1414_v23 }
 0x1a7   : > { %v3336_v40 = vpop.f32.mrf.mxu2  ;;  %v2404_v42 = vunpack.c.l.b16 %v1633_v55  ;;  %v1418_v31 = vsel %vm5314_vm8, %v1416_v6, %v1417_v39  ;;  %v2262_v3 = vunpack.c.l.b16 %v1415_v12  ;;  %v1639_v23 = vrot.slane %v5795_v34, 5  ;;  %v4913_v39 = vld [vmem:[#allocation2 + $0x4c] sm:$0xf]  ;;  %v1335_v34 = vld [vmem:[#allocation2 + $0x48] sm:$0xc] }
 0x1a8   : > { %3740 = vmatmul.bf16.gmra.mxu3 %v2433_v63  ;;  %v3337_v35 = vadd.f32 %v3336_v40, %v3248_v48  ;;  %v3252_v47 = vpop.f32.mrf.mxu1  ;;  %v1817_v63 = vrot.slane %v1815_v2, 4  ;;  %v4773_v48 = vld [vmem:[#allocation2 + $0x48] sm:$0xff]  ;;  %v2405_v40 = vunpack.c.l.b16 %v1636_v29  ;;  %v1816_v60 = vsel %vm5314_vm8, %v4244_v26, %v1815_v2 }
 0x1a9   : > { %v2263_v56 = vunpack.c.l.b16 %v1418_v31  ;;  %v2470_v55 = vunpack.c.l.b16 %v1816_v60  ;;  %v3253_v36 = vadd.f32 %v3252_v47, %v5448_v59  ;;  %v4228_v2 = vrot.slane %v1542_v18, 9  ;;  %v1737_v12 = vld [vmem:[#allocation2 + $0x68] sm:$0x3] }
 0x1aa   : > { %v5797_v15 = vpop.f32.mrf.mxu0  ;;  %v2434_v33 = vpack.c.b16 %v2405_v40, %v2404_v42  ;;  %v1336_v42 = vld [vmem:[#allocation2 + $0x50] sm:$0x3]  ;;  %v1736_v40 = vld [vmem:[#allocation2 + $0x60] sm:$0xc]  ;;  %v4213_v60 = vrot.slane %v1335_v34, 10  ;;  %v1825_v18 = vrot.slane %v1737_v12, 6 }
 0x1ab   : > { %v3425_v38 = vpop.f32.mrf.mxu3  ;;  %3567 = vmatmul.bf16.gmra.mxu1 %v2290_v43  ;;  %v2291_v49 = vpack.c.b16 %v2263_v56, %v2262_v3 }
 0x1ac   : > { %v3426_v41 = vadd.f32 %v3425_v38, %v3337_v35  ;;  %v1543_v38 = vld [vmem:[#allocation2 + $0x5c] sm:$0x1] }
 0x1ad   : > { %3834 = vmatmul.bf16.gmra.mxu0 %v2498_v25 }
 0x1ae   : > { %v5806_v44 = vadd.f32 %v5769_v27, %v3426_v41  ;;  %v1819_v27 = vsel %vm5314_vm8, %v1817_v63, %v1818_v21  ;;  %v1641_v63 = vrot.slane %v1639_v23, 4  ;;  %v1642_v21 = vrot.slane %v1543_v38, 5 }
 0x1af   : > { %v3338_v9 = vpop.f32.mrf.mxu2  ;;  %v2471_v1 = vunpack.c.l.b16 %v1819_v27 }
 0x1b0   : > { %v3339_v54 = vadd.f32 %v3338_v9, %v3250_v8  ;;  %v3254_v43 = vpop.f32.mrf.mxu1  ;;  %v1421_v8 = vrot.slane %v4913_v39, 6  ;;  %v1643_v56 = vsel %vm5302_vm5, %v1641_v63, %v1642_v21 }
 0x1b1   : > { %v2499_v9 = vpack.c.b16 %v2471_v1, %v2470_v55  ;;  %v3255_v3 = vadd.f32 %v3254_v43, %v5461_v57 }
 0x1b2   : > { %v5812_v5 = vpop.f32.mrf.mxu0  ;;  %v1423_v27 = vrot.slane %v1421_v8, 4 }
 0x1b3   : > { %v3427_v35 = vpop.f32.mrf.mxu3 }
 0x1b4   : > { %v3428_v25 = vadd.f32 %v3427_v35, %v3339_v54  ;;  %3656 = vmatmul.bf16.gmra.mxu2 %v4773_v48  ;;  %v5823_v54 = vld [vmem:[#allocation2 + $0x64] sm:$0xf]  ;;  %v1424_v35 = vrot.slane %v1336_v42, 6  ;;  %v1544_v42 = vld [vmem:[#allocation2 + $0x60] sm:$0xe] }
 0x1b5   : > { %v1822_v59 = vrot.slane %v5823_v54, 6 }
 0x1b6   : > { %v5821_v6 = vadd.f32 %v5784_v37, %v3428_v25  ;;  %v1640_v37 = vsel %vm5302_vm5, %v4228_v2, %v1639_v23  ;;  %v4245_v25 = vrot.slane %v1736_v40, 10  ;;  %v1422_v2 = vsel %vm5314_vm8, %v4213_v60, %v1421_v8 }
 0x1b7   : > { %v3341_v41 = vpop.f32.mrf.mxu2  ;;  %v2406_v23 = vunpack.c.l.b16 %v1640_v37  ;;  %v1425_v57 = vsel %vm5314_vm8, %v1423_v27, %v1424_v35  ;;  %v2264_v63 = vunpack.c.l.b16 %v1422_v2  ;;  %v1646_v8 = vrot.slane %v5823_v54, 5  ;;  %v4914_v35 = vld [vmem:[#allocation2 + $0x58] sm:$0xf]  ;;  %v1337_v54 = vld [vmem:[#allocation2 + $0x54] sm:$0xc] }
 0x1b8   : > { %3745 = vmatmul.bf16.gmra.mxu3 %v2434_v33  ;;  %v3342_v29 = vadd.f32 %v3341_v41, %v3253_v36  ;;  %v3257_v26 = vpop.f32.mrf.mxu1  ;;  %v1824_v33 = vrot.slane %v1822_v59, 4  ;;  %v4774_v36 = vld [vmem:[#allocation2 + $0x54] sm:$0xff]  ;;  %v2407_v41 = vunpack.c.l.b16 %v1643_v56  ;;  %v1823_v39 = vsel %vm5314_vm8, %v4245_v25, %v1822_v59 }
 0x1b9   : > { %v2265_v21 = vunpack.c.l.b16 %v1425_v57  ;;  %v2472_v37 = vunpack.c.l.b16 %v1823_v39  ;;  %v3258_v12 = vadd.f32 %v3257_v26, %v5478_v0  ;;  %v4229_v59 = vrot.slane %v1544_v42, 9  ;;  %v1739_v2 = vld [vmem:[#allocation2 + $0x74] sm:$0x3] }
 0x1ba   : > { %v5825_v48 = vpop.f32.mrf.mxu0  ;;  %v2435_v34 = vpack.c.b16 %v2407_v41, %v2406_v23  ;;  %v1338_v23 = vld [vmem:[#allocation2 + $0x5c] sm:$0x3]  ;;  %v1738_v41 = vld [vmem:[#allocation2 + $0x6c] sm:$0xc]  ;;  %v4214_v39 = vrot.slane %v1337_v54, 10  ;;  %v1832_v42 = vrot.slane %v1739_v2, 6 }
 0x1bb   : > { %v3430_v47 = vpop.f32.mrf.mxu3  ;;  %3572 = vmatmul.bf16.gmra.mxu1 %v2291_v49  ;;  %v2292_v60 = vpack.c.b16 %v2265_v21, %v2264_v63 }
 0x1bc   : > { %v3431_v31 = vadd.f32 %v3430_v47, %v3342_v29  ;;  %v1545_v47 = vld [vmem:[#allocation2 + $0x68] sm:$0x1] }
 0x1bd   : > { %3839 = vmatmul.bf16.gmra.mxu0 %v2499_v9 }
 0x1be   : > { %v5834_v38 = vadd.f32 %v5797_v15, %v3431_v31  ;;  %v1826_v15 = vsel %vm5314_vm8, %v1824_v33, %v1825_v18  ;;  %v1648_v33 = vrot.slane %v1646_v8, 4  ;;  %v1649_v18 = vrot.slane %v1545_v47, 5 }
 0x1bf   : > { %v3343_v55 = vpop.f32.mrf.mxu2  ;;  %v2473_v40 = vunpack.c.l.b16 %v1826_v15 }
 0x1c0   : > { %v3344_v1 = vadd.f32 %v3343_v55, %v3255_v3  ;;  %v3259_v49 = vpop.f32.mrf.mxu1  ;;  %v1428_v3 = vrot.slane %v4914_v35, 6  ;;  %v1650_v21 = vsel %vm5302_vm5, %v1648_v33, %v1649_v18 }
 0x1c1   : > { %v2500_v55 = vpack.c.b16 %v2473_v40, %v2472_v37  ;;  %v3260_v63 = vadd.f32 %v3259_v49, %v5488_v52 }
 0x1c2   : > { %v5840_v43 = vpop.f32.mrf.mxu0  ;;  %v1430_v15 = vrot.slane %v1428_v3, 4 }
 0x1c3   : > { %v3432_v29 = vpop.f32.mrf.mxu3 }
 0x1c4   : > { %v3433_v9 = vadd.f32 %v3432_v29, %v3344_v1  ;;  %3661 = vmatmul.bf16.gmra.mxu2 %v4774_v36  ;;  %v5851_v1 = vld [vmem:[#allocation2 + $0x70] sm:$0xf]  ;;  %v1431_v29 = vrot.slane %v1338_v23, 6  ;;  %v1546_v23 = vld [vmem:[#allocation2 + $0x6c] sm:$0xe] }
 0x1c5   : > { %v1829_v0 = vrot.slane %v5851_v1, 6 }
 0x1c6   : > { %v5849_v27 = vadd.f32 %v5812_v5, %v3433_v9  ;;  %v1647_v5 = vsel %vm5302_vm5, %v4229_v59, %v1646_v8  ;;  %v4246_v9 = vrot.slane %v1738_v41, 10  ;;  %v1429_v59 = vsel %vm5314_vm8, %v4214_v39, %v1428_v3 }
 0x1c7   : > { %v3346_v31 = vpop.f32.mrf.mxu2  ;;  %v2408_v8 = vunpack.c.l.b16 %v1647_v5  ;;  %v1432_v52 = vsel %vm5314_vm8, %v1430_v15, %v1431_v29  ;;  %v2266_v33 = vunpack.c.l.b16 %v1429_v59  ;;  %v1653_v3 = vrot.slane %v5851_v1, 5  ;;  %v4915_v29 = vld [vmem:[#allocation2 + $0x64] sm:$0xf]  ;;  %v1339_v1 = vld [vmem:[#allocation2 + $0x60] sm:$0xc] }
 0x1c8   : > { %3750 = vmatmul.bf16.gmra.mxu3 %v2435_v34  ;;  %v3347_v56 = vadd.f32 %v3346_v31, %v3258_v12  ;;  %v3262_v25 = vpop.f32.mrf.mxu1  ;;  %v1831_v34 = vrot.slane %v1829_v0, 4  ;;  %v4775_v12 = vld [vmem:[#allocation2 + $0x60] sm:$0xff]  ;;  %v2409_v31 = vunpack.c.l.b16 %v1650_v21  ;;  %v1830_v35 = vsel %vm5314_vm8, %v4246_v9, %v1829_v0 }
 0x1c9   : > { %v2267_v18 = vunpack.c.l.b16 %v1432_v52  ;;  %v2474_v5 = vunpack.c.l.b16 %v1830_v35  ;;  %v3263_v2 = vadd.f32 %v3262_v25, %v5399_v30  ;;  %v4230_v0 = vrot.slane %v1546_v23, 9  ;;  %v1741_v59 = vld [vmem:[#allocation2 + $0x80] sm:$0x3] }
 0x1ca   : > { %v5853_v36 = vpop.f32.mrf.mxu0  ;;  %v2436_v54 = vpack.c.b16 %v2409_v31, %v2408_v8  ;;  %v1340_v8 = vld [vmem:[#allocation2 + $0x68] sm:$0x3]  ;;  %v1740_v31 = vld [vmem:[#allocation2 + $0x78] sm:$0xc]  ;;  %v4215_v35 = vrot.slane %v1339_v1, 10  ;;  %v1839_v23 = vrot.slane %v1741_v59, 6 }
 0x1cb   : > { %v3435_v26 = vpop.f32.mrf.mxu3  ;;  %3577 = vmatmul.bf16.gmra.mxu1 %v2292_v60  ;;  %v2293_v39 = vpack.c.b16 %v2267_v18, %v2266_v33 }
 0x1cc   : > { %v3436_v57 = vadd.f32 %v3435_v26, %v3347_v56  ;;  %v1547_v26 = vld [vmem:[#allocation2 + $0x74] sm:$0x1] }
 0x1cd   : > { %3844 = vmatmul.bf16.gmra.mxu0 %v2500_v55 }
 0x1ce   : > { %v5862_v47 = vadd.f32 %v5825_v48, %v3436_v57  ;;  %v1833_v48 = vsel %vm5314_vm8, %v1831_v34, %v1832_v42  ;;  %v1655_v34 = vrot.slane %v1653_v3, 4  ;;  %v1656_v42 = vrot.slane %v1547_v26, 5 }
 0x1cf   : > { %v3348_v37 = vpop.f32.mrf.mxu2  ;;  %v2475_v41 = vunpack.c.l.b16 %v1833_v48 }
 0x1d0   : > { %v3349_v40 = vadd.f32 %v3348_v37, %v3260_v63  ;;  %v3264_v60 = vpop.f32.mrf.mxu1  ;;  %v1435_v63 = vrot.slane %v4915_v29, 6  ;;  %v1657_v18 = vsel %vm5302_vm5, %v1655_v34, %v1656_v42 }
 0x1d1   : > { %v2501_v37 = vpack.c.b16 %v2475_v41, %v2474_v5  ;;  %v3265_v33 = vadd.f32 %v3264_v60, %v5416_v51 }
 0x1d2   : > { %v5868_v49 = vpop.f32.mrf.mxu0  ;;  %v1437_v48 = vrot.slane %v1435_v63, 4 }
 0x1d3   : > { %v3437_v56 = vpop.f32.mrf.mxu3 }
 0x1d4   : > { %v3438_v55 = vadd.f32 %v3437_v56, %v3349_v40  ;;  %3666 = vmatmul.bf16.gmra.mxu2 %v4775_v12  ;;  %v5879_v40 = vld [vmem:[#allocation2 + $0x7c] sm:$0xf]  ;;  %v1438_v56 = vrot.slane %v1340_v8, 6  ;;  %v1548_v8 = vld [vmem:[#allocation2 + $0x78] sm:$0xe] }
 0x1d5   : > { %v1836_v30 = vrot.slane %v5879_v40, 6 }
 0x1d6   : > { %v5877_v15 = vadd.f32 %v5840_v43, %v3438_v55  ;;  %v1654_v43 = vsel %vm5302_vm5, %v4230_v0, %v1653_v3  ;;  %v4247_v55 = vrot.slane %v1740_v31, 10  ;;  %v1436_v0 = vsel %vm5314_vm8, %v4215_v35, %v1435_v63 }
 0x1d7   : > { %v3351_v57 = vpop.f32.mrf.mxu2  ;;  %v2410_v3 = vunpack.c.l.b16 %v1654_v43  ;;  %v1439_v51 = vsel %vm5314_vm8, %v1437_v48, %v1438_v56  ;;  %v2268_v34 = vunpack.c.l.b16 %v1436_v0  ;;  %v1660_v63 = vrot.slane %v5879_v40, 5  ;;  %v4916_v56 = vld [vmem:[#allocation2 + $0x70] sm:$0xf]  ;;  %v1341_v40 = vld [vmem:[#allocation2 + $0x6c] sm:$0xc] }
 0x1d8   : > { %3755 = vmatmul.bf16.gmra.mxu3 %v2436_v54  ;;  %v3352_v21 = vadd.f32 %v3351_v57, %v3263_v2  ;;  %v3267_v9 = vpop.f32.mrf.mxu1  ;;  %v1838_v54 = vrot.slane %v1836_v30, 4  ;;  %v4776_v2 = vld [vmem:[#allocation2 + $0x6c] sm:$0xff]  ;;  %v2411_v57 = vunpack.c.l.b16 %v1657_v18  ;;  %v1837_v29 = vsel %vm5314_vm8, %v4247_v55, %v1836_v30 }
 0x1d9   : > { %v2269_v42 = vunpack.c.l.b16 %v1439_v51  ;;  %v2476_v43 = vunpack.c.l.b16 %v1837_v29  ;;  %v3268_v59 = vadd.f32 %v3267_v9, %v5428_v22  ;;  %v4231_v30 = vrot.slane %v1548_v8, 9  ;;  %v1743_v0 = vld [vmem:[#allocation2 + $0x8c] sm:$0x3] }
 0x1da   : > { %v5881_v12 = vpop.f32.mrf.mxu0  ;;  %v2437_v1 = vpack.c.b16 %v2411_v57, %v2410_v3  ;;  %v1342_v3 = vld [vmem:[#allocation2 + $0x74] sm:$0x3]  ;;  %v1742_v57 = vld [vmem:[#allocation2 + $0x84] sm:$0xc]  ;;  %v4216_v29 = vrot.slane %v1341_v40, 10  ;;  %v1846_v8 = vrot.slane %v1743_v0, 6 }
 0x1db   : > { %v3440_v25 = vpop.f32.mrf.mxu3  ;;  %3582 = vmatmul.bf16.gmra.mxu1 %v2293_v39  ;;  %v2294_v35 = vpack.c.b16 %v2269_v42, %v2268_v34 }
 0x1dc   : > { %v3441_v52 = vadd.f32 %v3440_v25, %v3352_v21  ;;  %v1549_v25 = vld [vmem:[#allocation2 + $0x80] sm:$0x1] }
 0x1dd   : > { %3849 = vmatmul.bf16.gmra.mxu0 %v2501_v37 }
 0x1de   : > { %v5890_v26 = vadd.f32 %v5853_v36, %v3441_v52  ;;  %v1840_v36 = vsel %vm5314_vm8, %v1838_v54, %v1839_v23  ;;  %v1662_v54 = vrot.slane %v1660_v63, 4  ;;  %v1663_v23 = vrot.slane %v1549_v25, 5 }
 0x1df   : > { %v3353_v5 = vpop.f32.mrf.mxu2  ;;  %v2477_v31 = vunpack.c.l.b16 %v1840_v36 }
 0x1e0   : > { %v3354_v41 = vadd.f32 %v3353_v5, %v3265_v33  ;;  %v3269_v39 = vpop.f32.mrf.mxu1  ;;  %v1442_v33 = vrot.slane %v4916_v56, 6  ;;  %v1664_v42 = vsel %vm5302_vm5, %v1662_v54, %v1663_v23 }
 0x1e1   : > { %v2502_v5 = vpack.c.b16 %v2477_v31, %v2476_v43  ;;  %v3270_v34 = vadd.f32 %v3269_v39, %v5444_v16 }
 0x1e2   : > { %v5896_v60 = vpop.f32.mrf.mxu0  ;;  %v1444_v36 = vrot.slane %v1442_v33, 4 }
 0x1e3   : > { %v3442_v21 = vpop.f32.mrf.mxu3 }
 0x1e4   : > { %v3443_v37 = vadd.f32 %v3442_v21, %v3354_v41  ;;  %3671 = vmatmul.bf16.gmra.mxu2 %v4776_v2  ;;  %v5907_v41 = vld [vmem:[#allocation2 + $0x88] sm:$0xf]  ;;  %v1445_v21 = vrot.slane %v1342_v3, 6  ;;  %v1550_v3 = vld [vmem:[#allocation2 + $0x84] sm:$0xe] }
 0x1e5   : > { %v1843_v22 = vrot.slane %v5907_v41, 6 }
 0x1e6   : > { %v5905_v48 = vadd.f32 %v5868_v49, %v3443_v37  ;;  %v1661_v49 = vsel %vm5302_vm5, %v4231_v30, %v1660_v63  ;;  %v4248_v37 = vrot.slane %v1742_v57, 10  ;;  %v1443_v30 = vsel %vm5314_vm8, %v4216_v29, %v1442_v33 }
 0x1e7   : > { %v3356_v52 = vpop.f32.mrf.mxu2  ;;  %v2412_v63 = vunpack.c.l.b16 %v1661_v49  ;;  %v1446_v16 = vsel %vm5314_vm8, %v1444_v36, %v1445_v21  ;;  %v2270_v54 = vunpack.c.l.b16 %v1443_v30  ;;  %v1667_v33 = vrot.slane %v5907_v41, 5  ;;  %v1343_v41 = vld [vmem:[#allocation2 + $0x78] sm:$0xc]  ;;  %v1745_v30 = vld [vmem:[#allocation2 + $0x98] sm:$0x3] }
 0x1e8   : > { %3760 = vmatmul.bf16.gmra.mxu3 %v2437_v1  ;;  %v3357_v18 = vadd.f32 %v3356_v52, %v3268_v59  ;;  %v3272_v55 = vpop.f32.mrf.mxu1  ;;  %v1845_v1 = vrot.slane %v1843_v22, 4  ;;  %v4777_v59 = vld [vmem:[#allocation2 + $0x78] sm:$0xff]  ;;  %v2413_v52 = vunpack.c.l.b16 %v1664_v42  ;;  %v1844_v56 = vsel %vm5314_vm8, %v4248_v37, %v1843_v22 }
 0x1e9   : > { %v2271_v23 = vunpack.c.l.b16 %v1446_v16  ;;  %v2478_v49 = vunpack.c.l.b16 %v1844_v56  ;;  %v3273_v0 = vadd.f32 %v3272_v55, %v5459_v24  ;;  %v4232_v22 = vrot.slane %v1550_v3, 9 }
 0x1ea   : > { %v5909_v2 = vpop.f32.mrf.mxu0  ;;  %v2438_v40 = vpack.c.b16 %v2413_v52, %v2412_v63  ;;  %v1669_v42 = vrot.slane %v1667_v33, 4  ;;  %v1344_v63 = vld [vmem:[#allocation2 + $0x80] sm:$0x3]  ;;  %v1744_v52 = vld [vmem:[#allocation2 + $0x90] sm:$0xc]  ;;  %v4217_v56 = vrot.slane %v1343_v41, 10 }
 0x1eb   : > { %v3445_v9 = vpop.f32.mrf.mxu3  ;;  %3587 = vmatmul.bf16.gmra.mxu1 %v2294_v35  ;;  %v2295_v29 = vpack.c.b16 %v2271_v23, %v2270_v54  ;;  %v1853_v3 = vrot.slane %v1745_v30, 6  ;;  %v6221_v30 = vld [vmem:[#allocation6_spill] sm:$0xff] }
 0x1ec   : > { %v3446_v51 = vadd.f32 %v3445_v9, %v3357_v18  ;;  %v1551_v9 = vld [vmem:[#allocation2 + $0x8c] sm:$0x1] }
 0x1ed   : > { %3854 = vmatmul.bf16.gmra.mxu0 %v2502_v5  ;;  %v1670_v37 = vrot.slane %v1551_v9, 5 }
 0x1ee   : > { %v5918_v25 = vadd.f32 %v5881_v12, %v3446_v51  ;;  %v1847_v12 = vsel %vm5314_vm8, %v1845_v1, %v1846_v8  ;;  %v4917_v1 = vld [vmem:[#allocation2 + $0x7c] sm:$0xf] }
 0x1ef   : > { %v3358_v43 = vpop.f32.mrf.mxu2  ;;  %v2479_v57 = vunpack.c.l.b16 %v1847_v12  ;;  %v1449_v8 = vrot.slane %v4917_v1, 6  ;;  %v1671_v23 = vsel %vm5302_vm5, %v1669_v42, %v1670_v37 }
 0x1f0   : > { %v3359_v31 = vadd.f32 %v3358_v43, %v3270_v34  ;;  %v3274_v35 = vpop.f32.mrf.mxu1 }
 0x1f1   : > { %v2503_v43 = vpack.c.b16 %v2479_v57, %v2478_v49  ;;  %v1451_v12 = vrot.slane %v1449_v8, 4  ;;  %v3275_v54 = vadd.f32 %v3274_v35, %v5476_v53 }
 0x1f2   : > { %v5924_v39 = vpop.f32.mrf.mxu0 }
 0x1f3   : > { %v3447_v18 = vpop.f32.mrf.mxu3 }
 0x1f4   : > { %v3448_v5 = vadd.f32 %v3447_v18, %v3359_v31  ;;  %3676 = vmatmul.bf16.gmra.mxu2 %v4777_v59  ;;  %v5935_v31 = vld [vmem:[#allocation2 + $0x94] sm:$0xf]  ;;  %v1452_v18 = vrot.slane %v1344_v63, 6  ;;  %v1552_v63 = vld [vmem:[#allocation2 + $0x90] sm:$0xe] }
 0x1f5   : > { %v1850_v24 = vrot.slane %v5935_v31, 6 }
 0x1f6   : > { %v5933_v36 = vadd.f32 %v5896_v60, %v3448_v5  ;;  %v1668_v60 = vsel %vm5302_vm5, %v4232_v22, %v1667_v33  ;;  %v4249_v5 = vrot.slane %v1744_v52, 10  ;;  %v1450_v22 = vsel %vm5314_vm8, %v4217_v56, %v1449_v8 }
 0x1f7   : > { %v3361_v51 = vpop.f32.mrf.mxu2  ;;  %v2414_v33 = vunpack.c.l.b16 %v1668_v60  ;;  %v1453_v53 = vsel %vm5314_vm8, %v1451_v12, %v1452_v18  ;;  %v2272_v37 = vunpack.c.l.b16 %v1450_v22  ;;  %v1674_v8 = vrot.slane %v5935_v31, 5  ;;  %v1345_v31 = vld [vmem:[#allocation2 + $0x84] sm:$0xc] }
 0x1f8   : > { %3765 = vmatmul.bf16.gmra.mxu3 %v2438_v40  ;;  %v3362_v21 = vadd.f32 %v3361_v51, %v3273_v0  ;;  %v3277_v34 = vpop.f32.mrf.mxu1  ;;  %v1852_v40 = vrot.slane %v1850_v24, 4  ;;  %v4778_v0 = vld [vmem:[#allocation2 + $0x84] sm:$0xff]  ;;  %v2415_v51 = vunpack.c.l.b16 %v1671_v23  ;;  %v2273_v1 = vunpack.c.l.b16 %v1453_v53  ;;  %v1746_v53 = vld [vmem:[#allocation2 + $0x9c] sm:$0xc] }
 0x1fa   : > { %v5937_v59 = vpop.f32.mrf.mxu0  ;;  %v2439_v41 = vpack.c.b16 %v2415_v51, %v2414_v33  ;;  %v2296_v12 = vpack.c.b16 %v2273_v1, %v2272_v37 }
 0x1fb   : > { %v3450_v55 = vpop.f32.mrf.mxu3  ;;  %3592 = vmatmul.bf16.gmra.mxu1 %v2295_v29 }
 0x1fc   : > { %v3451_v16 = vadd.f32 %v3450_v55, %v3362_v21  ;;  %v1851_v21 = vsel %vm5314_vm8, %v4249_v5, %v1850_v24  ;;  %v1553_v55 = vld [vmem:[#allocation2 + $0x98] sm:$0x1]  ;;  %v4233_v24 = vrot.slane %v1552_v63, 9  ;;  %v1676_v5 = vrot.slane %v1674_v8, 4 }
 0x1fd   : > { %3859 = vmatmul.bf16.gmra.mxu0 %v2503_v43  ;;  %v2480_v60 = vunpack.c.l.b16 %v1851_v21  ;;  %v1747_v21 = vld [vmem:[#allocation2 + $0xa4] sm:$0x3] }
 0x1fe   : > { %v5946_v9 = vadd.f32 %v5909_v2, %v3451_v16  ;;  %v1854_v2 = vsel %vm5314_vm8, %v1852_v40, %v1853_v3  ;;  %v3278_v16 = vadd.f32 %v3277_v34, %v6221_v30  ;;  %v1677_v40 = vrot.slane %v1553_v55, 5  ;;  %v4918_v3 = vld [vmem:[#allocation2 + $0x88] sm:$0xf] }
 0x1ff   : > { %v3363_v49 = vpop.f32.mrf.mxu2  ;;  %v2481_v52 = vunpack.c.l.b16 %v1854_v2  ;;  %v4250_v55 = vrot.slane %v1746_v53, 10  ;;  %v1554_v53 = vld [vmem:[#allocation2 + $0x9c] sm:$0xe] }
 0x200   : > { %v3364_v57 = vadd.f32 %v3363_v49, %v3275_v54  ;;  %v3279_v29 = vpop.f32.mrf.mxu1  ;;  %v1456_v49 = vrot.slane %v4918_v3, 6  ;;  %v1678_v63 = vsel %vm5302_vm5, %v1676_v5, %v1677_v40 }
 0x201   : > { %v2504_v33 = vpack.c.b16 %v2481_v52, %v2480_v60  ;;  %v1860_v52 = vrot.slane %v1747_v21, 6  ;;  %v1555_v21 = vld [vmem:[#allocation2 + $0xa4] sm:$0x1] }
 0x202   : > { %v5952_v35 = vpop.f32.mrf.mxu0  ;;  %v1458_v37 = vrot.slane %v1456_v49, 4 }
 0x203   : > { %v3452_v42 = vpop.f32.mrf.mxu3 }
 0x204   : > { %v3453_v43 = vadd.f32 %v3452_v42, %v3364_v57  ;;  %3681 = vmatmul.bf16.gmra.mxu2 %v4778_v0  ;;  %v1346_v57 = vld [vmem:[#allocation2 + $0x8c] sm:$0x3]  ;;  %v5963_v0 = vld [vmem:[#allocation2 + $0xa0] sm:$0xf]  ;;  %v4218_v42 = vrot.slane %v1345_v31, 10 }
 0x205   : > { %v1857_v34 = vrot.slane %v5963_v0, 6  ;;  %v1459_v1 = vrot.slane %v1346_v57, 6 }
 0x206   : > { %v5961_v18 = vadd.f32 %v5924_v39, %v3453_v43  ;;  %v1675_v39 = vsel %vm5302_vm5, %v4233_v24, %v1674_v8  ;;  %v6222_v43 = vld [vmem:[#allocation7_spill] sm:$0xff]  ;;  %v2417_v24 = vunpack.c.l.b16 %v1678_v63  ;;  %v1457_v3 = vsel %vm5314_vm8, %v4218_v42, %v1456_v49 }
 0x207   : > { %v3366_v56 = vpop.f32.mrf.mxu2  ;;  %v1859_v60 = vrot.slane %v1857_v34, 4  ;;  %v2416_v8 = vunpack.c.l.b16 %v1675_v39  ;;  %v1858_v40 = vsel %vm5314_vm8, %v4250_v55, %v1857_v34  ;;  %v2274_v31 = vunpack.c.l.b16 %v1457_v3 }
 0x208   : > { %3770 = vmatmul.bf16.gmra.mxu3 %v2439_v41  ;;  %v3367_v54 = vadd.f32 %v3366_v56, %v3278_v16  ;;  %v3558_v23 = vpop.f32.mrf.mxu1  ;;  %v3280_v41 = vadd.f32 %v3279_v29, %v6222_v43  ;;  %v1460_v29 = vsel %vm5314_vm8, %v1458_v37, %v1459_v1  ;;  %v1681_v49 = vrot.slane %v5963_v0, 5 }
 0x209   : > { %v2275_v57 = vunpack.c.l.b16 %v1460_v29  ;;  %v2440_v39 = vpack.c.b16 %v2417_v24, %v2416_v8  ;;  %v3559_v37 = vadd.f32 %v3558_v23, %v5514_v62  ;;  %v4234_v34 = vrot.slane %v1554_v53, 9  ;;  %v5991_v24 = vld [vmem:[#allocation2 + $0xac] sm:$0xf]  ;;  %v1748_v29 = vld [vmem:[#allocation2 + $0xa8] sm:$0xc] }
 0x20a   : > { %v5965_v51 = vpop.f32.mrf.mxu0  ;;  %v1864_v23 = vrot.slane %v5991_v24, 6 }
 0x20b   : > { %v3455_v22 = vpop.f32.mrf.mxu3  ;;  %3597 = vmatmul.bf16.gmra.mxu1 %v2296_v12  ;;  %v4779_v12 = vld [vmem:[#allocation2 + $0x90] sm:$0xff]  ;;  %v2297_v43 = vpack.c.b16 %v2275_v57, %v2274_v31 }
 0x20c   : > { %v3456_v2 = vadd.f32 %v3455_v22, %v3367_v54 }
 0x20d   : > { %3864 = vmatmul.bf16.gmra.mxu0 %v2504_v33 }
 0x20e   : > { %v5974_v30 = vadd.f32 %v5937_v59, %v3456_v2  ;;  %v1861_v59 = vsel %vm5314_vm8, %v1859_v60, %v1860_v52  ;;  %v2482_v2 = vunpack.c.l.b16 %v1858_v40  ;;  %v1683_v60 = vrot.slane %v1681_v49, 4  ;;  %v1749_v40 = vld [vmem:[#allocation2 + $0xb0] sm:$0x3] }
 0x20f   : > { %v3368_v16 = vpop.f32.mrf.mxu2  ;;  %v2483_v42 = vunpack.c.l.b16 %v1861_v59  ;;  %v1684_v52 = vrot.slane %v1555_v21, 5  ;;  %v1866_v21 = vrot.slane %v1864_v23, 4 }
 0x210   : > { %v3369_v56 = vadd.f32 %v3368_v16, %v3280_v41  ;;  %v3560_v54 = vpop.f32.mrf.mxu1  ;;  %v4919_v16 = vld [vmem:[#allocation2 + $0x94] sm:$0xf] }
 0x211   : > { %v1463_v8 = vrot.slane %v4919_v16, 6  ;;  %v2505_v0 = vpack.c.b16 %v2483_v42, %v2482_v2  ;;  %v1867_v2 = vrot.slane %v1749_v40, 6 }
 0x212   : > { %v5980_v5 = vpop.f32.mrf.mxu0 }
 0x213   : > { %v3457_v33 = vpop.f32.mrf.mxu3  ;;  %v1465_v31 = vrot.slane %v1463_v8, 4 }
 0x214   : > { %v3458_v22 = vadd.f32 %v3457_v33, %v3369_v56  ;;  %3686 = vmatmul.bf16.gmra.mxu2 %v4779_v12  ;;  %v1347_v56 = vld [vmem:[#allocation2 + $0x90] sm:$0xc]  ;;  %v1348_v12 = vld [vmem:[#allocation2 + $0x98] sm:$0x3] }
 0x215   : > { %v4219_v33 = vrot.slane %v1347_v56, 10  ;;  %v1466_v57 = vrot.slane %v1348_v12, 6  ;;  %v1556_v12 = vld [vmem:[#allocation2 + $0xa8] sm:$0xe] }
 0x216   : > { %v5989_v41 = vadd.f32 %v5952_v35, %v3458_v22  ;;  %v1682_v35 = vsel %vm5302_vm5, %v4234_v34, %v1681_v49  ;;  %v3561_v22 = vadd.f32 %v3560_v54, %v5532_v17  ;;  %v4251_v49 = vrot.slane %v1748_v29, 10  ;;  %v1557_v29 = vld [vmem:[#allocation2 + $0xb0] sm:$0x1] }
 0x217   : > { %v3647_v1 = vpop.f32.mrf.mxu2  ;;  %v1464_v16 = vsel %vm5314_vm8, %v4219_v33, %v1463_v8  ;;  %v1467_v17 = vsel %vm5314_vm8, %v1465_v31, %v1466_v57  ;;  %v6223_v31 = vld [vmem:[#allocation8_spill] sm:$0xff]  ;;  %v4235_v57 = vrot.slane %v1556_v12, 9  ;;  %v1750_v12 = vld [vmem:[#allocation2 + $0xb4] sm:$0xc] }
 0x218   : > { %3775 = vmatmul.bf16.gmra.mxu3 %v2440_v39  ;;  %v3648_v63 = vadd.f32 %v3647_v1, %v3559_v37  ;;  %v3563_v55 = vpop.f32.mrf.mxu1  ;;  %v1685_v39 = vsel %vm5302_vm5, %v1683_v60, %v1684_v52  ;;  %v2418_v37 = vunpack.c.l.b16 %v1682_v35  ;;  %v1868_v60 = vsel %vm5314_vm8, %v1866_v21, %v1867_v2 }
 0x219   : > { %v2419_v34 = vunpack.c.l.b16 %v1685_v39  ;;  %v2277_v56 = vunpack.c.l.b16 %v1467_v17  ;;  %v1691_v2 = vrot.slane %v1557_v29, 5 }
 0x21a   : > { %v5993_v62 = vpop.f32.mrf.mxu0 }
 0x21b   : > { %v3736_v3 = vpop.f32.mrf.mxu3  ;;  %3602 = vmatmul.bf16.gmra.mxu1 %v2297_v43  ;;  %v4780_v43 = vld [vmem:[#allocation2 + $0x9c] sm:$0xff]  ;;  %v2441_v8 = vpack.c.b16 %v2419_v34, %v2418_v37 }
 0x21c   : > { %v3737_v59 = vadd.f32 %v3736_v3, %v3648_v63  ;;  %v1688_v3 = vrot.slane %v5991_v24, 5  ;;  %v1349_v37 = vld [vmem:[#allocation2 + $0x9c] sm:$0xc] }
 0x21d   : > { %3869 = vmatmul.bf16.gmra.mxu0 %v2505_v0  ;;  %v2276_v0 = vunpack.c.l.b16 %v1464_v16 }
 0x21e   : > { %v3826_v53 = vadd.f32 %v5965_v51, %v3737_v59  ;;  %v1865_v51 = vsel %vm5314_vm8, %v4251_v49, %v1864_v23  ;;  %v2485_v59 = vunpack.c.l.b16 %v1868_v60  ;;  %v3564_v23 = vadd.f32 %v3563_v55, %v6223_v31 }
 0x21f   : > { %v3649_v42 = vpop.f32.mrf.mxu2  ;;  %v2484_v40 = vunpack.c.l.b16 %v1865_v51  ;;  %v2298_v49 = vpack.c.b16 %v2277_v56, %v2276_v0  ;;  %v1690_v21 = vrot.slane %v1688_v3, 4  ;;  %v1350_v51 = vld [vmem:[#allocation2 + $0xa4] sm:$0x3]  ;;  %v4220_v56 = vrot.slane %v1349_v37, 10 }
 0x220   : > { %3905 = vst [vmem:[%s6003_s17] sm:$0xff] %v3826_v53  ;;  %v3650_v1 = vadd.f32 %v3649_v42, %v3561_v22  ;;  %v3565_v63 = vpop.f32.mrf.mxu1  ;;  %v3974_v22 = vmul.f32 %v3826_v53, %v3826_v53 }
 0x221   : > { %v2506_v17 = vpack.c.b16 %v2485_v59, %v2484_v40  ;;  %v1692_v29 = vsel %vm5302_vm5, %v1690_v21, %v1691_v2  ;;  %v1473_v59 = vrot.slane %v1350_v51, 6  ;;  %v4781_v2 = vld [vmem:[#allocation2 + $0xa8] sm:$0xff] }
 0x222   : > { %v6014_v54 = vpop.f32.mrf.mxu0 }
 0x223   : > { %v3738_v52 = vpop.f32.mrf.mxu3 }
 0x224   : > { %v3739_v35 = vadd.f32 %v3738_v52, %v3650_v1  ;;  %3691 = vmatmul.bf16.gmra.mxu2 %v4780_v43  ;;  %v4920_v43 = vld [vmem:[#allocation2 + $0xa0] sm:$0xf] }
 0x225   : > { %v1470_v34 = vrot.slane %v4920_v43, 6 }
 0x226   : > { %v3828_v33 = vadd.f32 %v5980_v5, %v3739_v35  ;;  %v6024_v5 = vld [vmem:[#allocation2 + $0xb8] sm:$0xf]  ;;  %v1751_v35 = vld [vmem:[#allocation2 + $0xbc] sm:$0x3] }
 0x227   : > { %v3652_v39 = vpop.f32.mrf.mxu2  ;;  %v1871_v52 = vrot.slane %v6024_v5, 6  ;;  %v1472_v40 = vrot.slane %v1470_v34, 4  ;;  %v1471_v37 = vsel %vm5314_vm8, %v4220_v56, %v1470_v34 }
 0x228   : > { %3906 = vst [vmem:[%s6003_s17 + $0x8] sm:$0xff] %v3828_v33  ;;  %v3937_v42 = vadd.f32 %v3828_v33, %v3826_v53  ;;  %v3975_v16 = vmul.f32 %v3828_v33, %v3828_v33  ;;  %3780 = vmatmul.bf16.gmra.mxu3 %v2441_v8  ;;  %v3653_v24 = vadd.f32 %v3652_v39, %v3564_v23  ;;  %v3568_v1 = vpop.f32.mrf.mxu1  ;;  %v6224_v33 = vld [vmem:[#allocation9_spill] sm:$0xff]  ;;  %v2278_v34 = vunpack.c.l.b16 %v1471_v37 }
 0x229   : > { %v1689_v53 = vsel %vm5302_vm5, %v4235_v57, %v1688_v3  ;;  %v3566_v31 = vadd.f32 %v3565_v63, %v6224_v33  ;;  %v1873_v39 = vrot.slane %v1871_v52, 4  ;;  %v2421_v57 = vunpack.c.l.b16 %v1692_v29  ;;  %v1558_v29 = vld [vmem:[#allocation2 + $0xb4] sm:$0xe] }
 0x22a   : > { %v4006_v55 = vadd.f32 %v3975_v16, %v3974_v22  ;;  %v6026_v60 = vpop.f32.mrf.mxu0  ;;  %v4252_v22 = vrot.slane %v1750_v12, 10  ;;  %v2420_v3 = vunpack.c.l.b16 %v1689_v53  ;;  %v1474_v63 = vsel %vm5314_vm8, %v1472_v40, %v1473_v59  ;;  %v1559_v40 = vld [vmem:[#allocation2 + $0xbc] sm:$0x1] }
 0x22b   : > { %v3741_v0 = vpop.f32.mrf.mxu3  ;;  %3607 = vmatmul.bf16.gmra.mxu1 %v2298_v49  ;;  %v1874_v49 = vrot.slane %v1751_v35, 6  ;;  %v2279_v56 = vunpack.c.l.b16 %v1474_v63 }
 0x22c   : > { %v3742_v8 = vadd.f32 %v3741_v0, %v3653_v24  ;;  %v1872_v0 = vsel %vm5314_vm8, %v4252_v22, %v1871_v52 }
 0x22d   : > { %3874 = vmatmul.bf16.gmra.mxu0 %v2506_v17  ;;  %v1875_v53 = vsel %vm5314_vm8, %v1873_v39, %v1874_v49  ;;  %v2299_v22 = vpack.c.b16 %v2279_v56, %v2278_v34  ;;  %v4236_v39 = vrot.slane %v1558_v29, 9 }
 0x22e   : > { %v3831_v23 = vadd.f32 %v5993_v62, %v3742_v8  ;;  %v2442_v8 = vpack.c.b16 %v2421_v57, %v2420_v3  ;;  %v2487_v59 = vunpack.c.l.b16 %v1875_v53  ;;  %v1351_v3 = vld [vmem:[#allocation2 + $0xa8] sm:$0xc]  ;;  %v4921_v57 = vld [vmem:[#allocation2 + $0xac] sm:$0xf]  ;;  %v6050_v53 = vld [vmem:[#allocation2 + $0xc4] sm:$0xf] }
 0x22f   : > { %v3654_v16 = vpop.f32.mrf.mxu2  ;;  %v4221_v56 = vrot.slane %v1351_v3, 10 }
 0x230   : > { %3907 = vst [vmem:[%s6003_s17 + $0x10] sm:$0xff] %v3831_v23  ;;  %v3938_v24 = vadd.f32 %v3937_v42, %v3831_v23  ;;  %v3976_v43 = vmul.f32 %v3831_v23, %v3831_v23  ;;  %v3655_v21 = vadd.f32 %v3654_v16, %v3566_v31  ;;  %v3570_v51 = vpop.f32.mrf.mxu1  ;;  %v1695_v42 = vrot.slane %v6024_v5, 5  ;;  %v6225_v31 = vld [vmem:[#allocation10_spill] sm:$0xff] }
 0x231   : > { %v3569_v52 = vadd.f32 %v3568_v1, %v6225_v31  ;;  %v1698_v16 = vrot.slane %v1559_v40, 5 }
 0x232   : > { %v4007_v17 = vadd.f32 %v4006_v55, %v3976_v43  ;;  %v6040_v62 = vpop.f32.mrf.mxu0  ;;  %v2486_v55 = vunpack.c.l.b16 %v1872_v0  ;;  %v1697_v49 = vrot.slane %v1695_v42, 4  ;;  %v1352_v0 = vld [vmem:[#allocation2 + $0xb0] sm:$0x3] }
 0x233   : > { %v3743_v12 = vpop.f32.mrf.mxu3 }
 0x234   : > { %v3744_v35 = vadd.f32 %v3743_v12, %v3655_v21  ;;  %3696 = vmatmul.bf16.gmra.mxu2 %v4781_v2  ;;  %v1477_v2 = vrot.slane %v4921_v57, 6  ;;  %v2507_v63 = vpack.c.b16 %v2487_v59, %v2486_v55  ;;  %v1878_v12 = vrot.slane %v6050_v53, 6 }
 0x235   : > { %v1699_v40 = vsel %vm5302_vm5, %v1697_v49, %v1698_v16  ;;  %v1480_v59 = vrot.slane %v1352_v0, 6  ;;  %v4782_v16 = vld [vmem:[#allocation2 + $0xb4] sm:$0xff] }
 0x236   : > { %v3833_v33 = vadd.f32 %v6014_v54, %v3744_v35  ;;  %v1752_v35 = vld [vmem:[#allocation2 + $0xc0] sm:$0xc]  ;;  %v1479_v55 = vrot.slane %v1477_v2, 4 }
 0x237   : > { %v3657_v23 = vpop.f32.mrf.mxu2  ;;  %v4253_v31 = vrot.slane %v1752_v35, 10 }
 0x238   : > { %3908 = vst [vmem:[%s6003_s17 + $0x18] sm:$0xff] %v3833_v33  ;;  %v3939_v37 = vadd.f32 %v3938_v24, %v3833_v33  ;;  %v3977_v43 = vmul.f32 %v3833_v33, %v3833_v33  ;;  %3785 = vmatmul.bf16.gmra.mxu3 %v2442_v8  ;;  %v3658_v5 = vadd.f32 %v3657_v23, %v3569_v52  ;;  %v3573_v21 = vpop.f32.mrf.mxu1  ;;  %v1753_v8 = vld [vmem:[#allocation2 + $0xc8] sm:$0x3]  ;;  %v1880_v52 = vrot.slane %v1878_v12, 4 }
 0x239   : > { %v1696_v24 = vsel %vm5302_vm5, %v4236_v39, %v1695_v42  ;;  %v1881_v23 = vrot.slane %v1753_v8, 6  ;;  %v2423_v39 = vunpack.c.l.b16 %v1699_v40  ;;  %v1560_v8 = vld [vmem:[#allocation2 + $0xc0] sm:$0xe] }
 0x23a   : > { %v4008_v54 = vadd.f32 %v4007_v17, %v3977_v43  ;;  %v6052_v1 = vpop.f32.mrf.mxu0  ;;  %v3571_v17 = vadd.f32 %v3570_v51, %v5613_v46  ;;  %v2422_v42 = vunpack.c.l.b16 %v1696_v24  ;;  %v1478_v43 = vsel %vm5314_vm8, %v4221_v56, %v1477_v2 }
 0x23b   : > { %v3746_v34 = vpop.f32.mrf.mxu3  ;;  %3612 = vmatmul.bf16.gmra.mxu1 %v2299_v22  ;;  %v1481_v46 = vsel %vm5314_vm8, %v1479_v55, %v1480_v59  ;;  %v1882_v0 = vsel %vm5314_vm8, %v1880_v52, %v1881_v23  ;;  %v2280_v2 = vunpack.c.l.b16 %v1478_v43 }
 0x23c   : > { %v3747_v29 = vadd.f32 %v3746_v34, %v3658_v5  ;;  %v2281_v24 = vunpack.c.l.b16 %v1481_v46  ;;  %v2443_v35 = vpack.c.b16 %v2423_v39, %v2422_v42  ;;  %v2489_v40 = vunpack.c.l.b16 %v1882_v0  ;;  %v1353_v42 = vld [vmem:[#allocation2 + $0xb4] sm:$0xc]  ;;  %v4922_v39 = vld [vmem:[#allocation2 + $0xb8] sm:$0xf]  ;;  %v6076_v46 = vld [vmem:[#allocation2 + $0xd0] sm:$0xf] }
 0x23d   : > { %3879 = vmatmul.bf16.gmra.mxu0 %v2507_v63  ;;  %v1879_v63 = vsel %vm5314_vm8, %v4253_v31, %v1878_v12  ;;  %v3574_v12 = vadd.f32 %v3573_v21, %v5631_v13  ;;  %v1885_v21 = vrot.slane %v6076_v46, 6  ;;  %v4222_v0 = vrot.slane %v1353_v42, 10 }
 0x23e   : > { %v3836_v33 = vadd.f32 %v6026_v60, %v3747_v29  ;;  %v1561_v29 = vld [vmem:[#allocation2 + $0xc8] sm:$0x1] }
 0x23f   : > { %v3659_v22 = vpop.f32.mrf.mxu2  ;;  %v1705_v52 = vrot.slane %v1561_v29, 5 }
 0x240   : > { %3909 = vst [vmem:[%s6003_s17 + $0x20] sm:$0xff] %v3836_v33  ;;  %v3940_v5 = vadd.f32 %v3939_v37, %v3836_v33  ;;  %v3978_v3 = vmul.f32 %v3836_v33, %v3836_v33  ;;  %v3660_v49 = vadd.f32 %v3659_v22, %v3571_v17  ;;  %v3575_v57 = vpop.f32.mrf.mxu1  ;;  %v1702_v37 = vrot.slane %v6050_v53, 5 }
 0x241   : > { %v2300_v17 = vpack.c.b16 %v2281_v24, %v2280_v2  ;;  %v4237_v33 = vrot.slane %v1560_v8, 9  ;;  %v1755_v2 = vld [vmem:[#allocation2 + $0xd4] sm:$0x3] }
 0x242   : > { %v4009_v51 = vadd.f32 %v4008_v54, %v3978_v3  ;;  %v6066_v60 = vpop.f32.mrf.mxu0  ;;  %v2488_v54 = vunpack.c.l.b16 %v1879_v63  ;;  %v1704_v31 = vrot.slane %v1702_v37, 4  ;;  %v1484_v3 = vrot.slane %v4922_v39, 6 }
 0x243   : > { %v3748_v34 = vpop.f32.mrf.mxu3 }
 0x244   : > { %v3749_v56 = vadd.f32 %v3748_v34, %v3660_v49  ;;  %3701 = vmatmul.bf16.gmra.mxu2 %v4782_v16  ;;  %v2508_v49 = vpack.c.b16 %v2489_v40, %v2488_v54  ;;  %v1354_v16 = vld [vmem:[#allocation2 + $0xbc] sm:$0x3]  ;;  %v1754_v34 = vld [vmem:[#allocation2 + $0xcc] sm:$0xc]  ;;  %v1887_v40 = vrot.slane %v1885_v21, 4 }
 0x245   : > { %v1487_v8 = vrot.slane %v1354_v16, 6  ;;  %v4254_v54 = vrot.slane %v1754_v34, 10  ;;  %v1563_v34 = vld [vmem:[#allocation2 + $0xd4] sm:$0x1] }
 0x246   : > { %v3838_v55 = vadd.f32 %v6040_v62, %v3749_v56  ;;  %v1706_v56 = vsel %vm5302_vm5, %v1704_v31, %v1705_v52  ;;  %v4783_v52 = vld [vmem:[#allocation2 + $0xc0] sm:$0xff] }
 0x247   : > { %v3662_v59 = vpop.f32.mrf.mxu2  ;;  %v1886_v42 = vsel %vm5314_vm8, %v4254_v54, %v1885_v21 }
 0x248   : > { %3910 = vst [vmem:[%s6003_s17 + $0x28] sm:$0xff] %v3838_v55  ;;  %v3941_v23 = vadd.f32 %v3940_v5, %v3838_v55  ;;  %v3979_v22 = vmul.f32 %v3838_v55, %v3838_v55  ;;  %3790 = vmatmul.bf16.gmra.mxu3 %v2443_v35  ;;  %v3663_v53 = vadd.f32 %v3662_v59, %v3574_v12  ;;  %v3578_v43 = vpop.f32.mrf.mxu1  ;;  %v1486_v35 = vrot.slane %v1484_v3, 4 }
 0x249   : > { %v1703_v5 = vsel %vm5302_vm5, %v4237_v33, %v1702_v37  ;;  %v1888_v55 = vrot.slane %v1755_v2, 6  ;;  %v2425_v59 = vunpack.c.l.b16 %v1706_v56  ;;  %v3579_v21 = vadd.f32 %v3578_v43, %v5669_v20 }
 0x24a   : > { %v4010_v62 = vadd.f32 %v4009_v51, %v3979_v22  ;;  %v6078_v13 = vpop.f32.mrf.mxu0  ;;  %v3576_v51 = vadd.f32 %v3575_v57, %v5655_v4  ;;  %v2424_v37 = vunpack.c.l.b16 %v1703_v5  ;;  %v1488_v4 = vsel %vm5314_vm8, %v1486_v35, %v1487_v8 }
 0x24b   : > { %v3751_v63 = vpop.f32.mrf.mxu3  ;;  %3617 = vmatmul.bf16.gmra.mxu1 %v2300_v17  ;;  %v1485_v17 = vsel %vm5314_vm8, %v4222_v0, %v1484_v3  ;;  %v1889_v39 = vsel %vm5314_vm8, %v1887_v40, %v1888_v55  ;;  %v2283_v16 = vunpack.c.l.b16 %v1488_v4  ;;  %v1562_v0 = vld [vmem:[#allocation2 + $0xcc] sm:$0xe] }
 0x24c   : > { %v3752_v24 = vadd.f32 %v3751_v63, %v3663_v53  ;;  %v2282_v3 = vunpack.c.l.b16 %v1485_v17  ;;  %v2444_v5 = vpack.c.b16 %v2425_v59, %v2424_v37  ;;  %v2491_v2 = vunpack.c.l.b16 %v1889_v39  ;;  %v4923_v37 = vld [vmem:[#allocation2 + $0xc4] sm:$0xf]  ;;  %v1757_v39 = vld [vmem:[#allocation2 + $0xe0] sm:$0x3] }
 0x24d   : > { %3884 = vmatmul.bf16.gmra.mxu0 %v2508_v49  ;;  %v4238_v8 = vrot.slane %v1562_v0, 9  ;;  %v1491_v59 = vrot.slane %v4923_v37, 6 }
 0x24e   : > { %v3841_v29 = vadd.f32 %v6052_v1, %v3752_v24  ;;  %v2301_v35 = vpack.c.b16 %v2283_v16, %v2282_v3 }
 0x24f   : > { %v3664_v12 = vpop.f32.mrf.mxu2  ;;  %v1493_v16 = vrot.slane %v1491_v59, 4 }
 0x250   : > { %3911 = vst [vmem:[%s6003_s17 + $0x30] sm:$0xff] %v3841_v29  ;;  %v3942_v33 = vadd.f32 %v3941_v23, %v3841_v29  ;;  %v3980_v22 = vmul.f32 %v3841_v29, %v3841_v29  ;;  %v3665_v31 = vadd.f32 %v3664_v12, %v3576_v51  ;;  %v3580_v53 = vpop.f32.mrf.mxu1  ;;  %v1709_v23 = vrot.slane %v6076_v46, 5  ;;  %v1355_v12 = vld [vmem:[#allocation2 + $0xc0] sm:$0xc] }
 0x251   : > { %v1712_v29 = vrot.slane %v1563_v34, 5  ;;  %v4223_v4 = vrot.slane %v1355_v12, 10 }
 0x252   : > { %v4011_v57 = vadd.f32 %v4010_v62, %v3980_v22  ;;  %v6092_v1 = vpop.f32.mrf.mxu0  ;;  %v2490_v62 = vunpack.c.l.b16 %v1886_v42  ;;  %v1711_v51 = vrot.slane %v1709_v23, 4  ;;  %v1356_v22 = vld [vmem:[#allocation2 + $0xc8] sm:$0x3]  ;;  %v1756_v42 = vld [vmem:[#allocation2 + $0xd8] sm:$0xc] }
 0x253   : > { %v3753_v49 = vpop.f32.mrf.mxu3  ;;  %v4255_v0 = vrot.slane %v1756_v42, 10 }
 0x254   : > { %v3754_v63 = vadd.f32 %v3753_v49, %v3665_v31  ;;  %3706 = vmatmul.bf16.gmra.mxu2 %v4783_v52  ;;  %v2509_v17 = vpack.c.b16 %v2491_v2, %v2490_v62  ;;  %v6102_v31 = vld [vmem:[#allocation2 + $0xdc] sm:$0xf]  ;;  %v1713_v3 = vsel %vm5302_vm5, %v1711_v51, %v1712_v29  ;;  %v1895_v62 = vrot.slane %v1757_v39, 6  ;;  %v4784_v51 = vld [vmem:[#allocation2 + $0xcc] sm:$0xff] }
 0x255   : > { %v1892_v43 = vrot.slane %v6102_v31, 6 }
 0x256   : > { %v3843_v24 = vadd.f32 %v6066_v60, %v3754_v63  ;;  %v1494_v63 = vrot.slane %v1356_v22, 6 }
 0x257   : > { %v3667_v56 = vpop.f32.mrf.mxu2  ;;  %v1894_v34 = vrot.slane %v1892_v43, 4 }
 0x258   : > { %3912 = vst [vmem:[%s6003_s17 + $0x38] sm:$0xff] %v3843_v24  ;;  %v3943_v54 = vadd.f32 %v3942_v33, %v3843_v24  ;;  %v3981_v40 = vmul.f32 %v3843_v24, %v3843_v24  ;;  %3795 = vmatmul.bf16.gmra.mxu3 %v2444_v5  ;;  %v3668_v46 = vadd.f32 %v3667_v56, %v3579_v21  ;;  %v3583_v55 = vpop.f32.mrf.mxu1  ;;  %v2427_v24 = vunpack.c.l.b16 %v1713_v3 }
 0x259   : > { %v1710_v33 = vsel %vm5302_vm5, %v4238_v8, %v1709_v23  ;;  %v1492_v21 = vsel %vm5314_vm8, %v4223_v4, %v1491_v59 }
 0x25a   : > { %v4012_v60 = vadd.f32 %v4011_v57, %v3981_v40  ;;  %v6104_v20 = vpop.f32.mrf.mxu0  ;;  %v3581_v57 = vadd.f32 %v3580_v53, %v5687_v14  ;;  %v2426_v23 = vunpack.c.l.b16 %v1710_v33  ;;  %v1495_v14 = vsel %vm5314_vm8, %v1493_v16, %v1494_v63  ;;  %v1565_v33 = vld [vmem:[#allocation2 + $0xe0] sm:$0x1] }
 0x25b   : > { %v3756_v52 = vpop.f32.mrf.mxu3  ;;  %3622 = vmatmul.bf16.gmra.mxu1 %v2301_v35  ;;  %v1893_v40 = vsel %vm5314_vm8, %v4255_v0, %v1892_v43  ;;  %v2284_v37 = vunpack.c.l.b16 %v1492_v21  ;;  %v2285_v59 = vunpack.c.l.b16 %v1495_v14  ;;  %v3584_v43 = vadd.f32 %v3583_v55, %v5698_v19  ;;  %v6128_v21 = vld [vmem:[#allocation2 + $0xe8] sm:$0xf]  ;;  %v1759_v14 = vld [vmem:[#allocation2 + $0xec] sm:$0x3] }
 0x25c   : > { %v3757_v49 = vadd.f32 %v3756_v52, %v3668_v46  ;;  %v1896_v46 = vsel %vm5314_vm8, %v1894_v34, %v1895_v62  ;;  %v2445_v22 = vpack.c.b16 %v2427_v24, %v2426_v23  ;;  %v1564_v52 = vld [vmem:[#allocation2 + $0xd8] sm:$0xe]  ;;  %v1719_v63 = vrot.slane %v1565_v33, 5  ;;  %v1357_v34 = vld [vmem:[#allocation2 + $0xcc] sm:$0xc] }
 0x25d   : > { %3889 = vmatmul.bf16.gmra.mxu0 %v2509_v17  ;;  %v2493_v4 = vunpack.c.l.b16 %v1896_v46  ;;  %v4239_v3 = vrot.slane %v1564_v52, 9  ;;  %v4924_v62 = vld [vmem:[#allocation2 + $0xd0] sm:$0xf]  ;;  %v1358_v24 = vld [vmem:[#allocation2 + $0xd4] sm:$0x3]  ;;  %v1899_v55 = vrot.slane %v6128_v21, 6 }
 0x25e   : > { %v3846_v5 = vadd.f32 %v6078_v13, %v3757_v49  ;;  %v2302_v49 = vpack.c.b16 %v2285_v59, %v2284_v37  ;;  %v1501_v37 = vrot.slane %v1358_v24, 6  ;;  %v1902_v52 = vrot.slane %v1759_v14, 6 }
 0x25f   : > { %v3669_v2 = vpop.f32.mrf.mxu2 }
 0x260   : > { %3913 = vst [vmem:[%s6003_s17 + $0x40] sm:$0xff] %v3846_v5  ;;  %v3944_v56 = vadd.f32 %v3943_v54, %v3846_v5  ;;  %v3982_v35 = vmul.f32 %v3846_v5, %v3846_v5  ;;  %v3670_v8 = vadd.f32 %v3669_v2, %v3581_v57  ;;  %v3585_v29 = vpop.f32.mrf.mxu1  ;;  %v1716_v54 = vrot.slane %v6102_v31, 5 }
 0x261   : > { %v1498_v2 = vrot.slane %v4924_v62, 6 }
 0x262   : > { %v4013_v53 = vadd.f32 %v4012_v60, %v3982_v35  ;;  %v6118_v13 = vpop.f32.mrf.mxu0  ;;  %v2492_v60 = vunpack.c.l.b16 %v1893_v40  ;;  %v1718_v16 = vrot.slane %v1716_v54, 4 }
 0x263   : > { %v3758_v12 = vpop.f32.mrf.mxu3 }
 0x264   : > { %v3759_v17 = vadd.f32 %v3758_v12, %v3670_v8  ;;  %3711 = vmatmul.bf16.gmra.mxu2 %v4784_v51  ;;  %v2510_v23 = vpack.c.b16 %v2493_v4, %v2492_v60  ;;  %v4224_v8 = vrot.slane %v1357_v34, 10  ;;  %v1758_v51 = vld [vmem:[#allocation2 + $0xe4] sm:$0xc]  ;;  %v1720_v46 = vsel %vm5302_vm5, %v1718_v16, %v1719_v63 }
 0x265   : > { %v1500_v12 = vrot.slane %v1498_v2, 4  ;;  %v2429_v60 = vunpack.c.l.b16 %v1720_v46 }
 0x266   : > { %v3848_v42 = vadd.f32 %v6092_v1, %v3759_v17  ;;  %v4256_v17 = vrot.slane %v1758_v51, 10  ;;  %v1499_v4 = vsel %vm5314_vm8, %v4224_v8, %v1498_v2  ;;  %v1566_v2 = vld [vmem:[#allocation2 + $0xe4] sm:$0xe] }
 0x267   : > { %v3672_v39 = vpop.f32.mrf.mxu2 }
 0x268   : > { %3914 = vst [vmem:[%s6003_s17 + $0x48] sm:$0xff] %v3848_v42  ;;  %v3945_v57 = vadd.f32 %v3944_v56, %v3848_v42  ;;  %v3983_v5 = vmul.f32 %v3848_v42, %v3848_v42  ;;  %3800 = vmatmul.bf16.gmra.mxu3 %v2445_v22  ;;  %v3673_v31 = vadd.f32 %v3672_v39, %v3584_v43  ;;  %v3588_v0 = vpop.f32.mrf.mxu1  ;;  %v1901_v22 = vrot.slane %v1899_v55, 4 }
 0x269   : > { %v1717_v56 = vsel %vm5302_vm5, %v4239_v3, %v1716_v54  ;;  %v1900_v16 = vsel %vm5314_vm8, %v4256_v17, %v1899_v55  ;;  %v1567_v55 = vld [vmem:[#allocation2 + $0xec] sm:$0x1] }
 0x26a   : > { %v4014_v1 = vadd.f32 %v4013_v53, %v3983_v5  ;;  %v6130_v19 = vpop.f32.mrf.mxu0  ;;  %v3586_v53 = vadd.f32 %v3585_v29, %v5713_v11  ;;  %v2428_v54 = vunpack.c.l.b16 %v1717_v56  ;;  %v1502_v11 = vsel %vm5314_vm8, %v1500_v12, %v1501_v37 }
 0x26b   : > { %v3761_v35 = vpop.f32.mrf.mxu3  ;;  %3627 = vmatmul.bf16.gmra.mxu1 %v2302_v49  ;;  %v4785_v49 = vld [vmem:[#allocation2 + $0xd8] sm:$0xff]  ;;  %v1903_v63 = vsel %vm5314_vm8, %v1901_v22, %v1902_v52  ;;  %v2287_v34 = vunpack.c.l.b16 %v1502_v11  ;;  %v2494_v24 = vunpack.c.l.b16 %v1900_v16  ;;  %v3589_v56 = vadd.f32 %v3588_v0, %v5723_v10 }
 0x26c   : > { %v3762_v40 = vadd.f32 %v3761_v35, %v3673_v31  ;;  %v2286_v31 = vunpack.c.l.b16 %v1499_v4  ;;  %v2446_v62 = vpack.c.b16 %v2429_v60, %v2428_v54  ;;  %v2495_v35 = vunpack.c.l.b16 %v1903_v63 }
 0x26d   : > { %3894 = vmatmul.bf16.gmra.mxu0 %v2510_v23  ;;  %v1723_v23 = vrot.slane %v6128_v21, 5  ;;  %v4240_v12 = vrot.slane %v1566_v2, 9 }
 0x26e   : > { %v3851_v59 = vadd.f32 %v6104_v20, %v3762_v40  ;;  %v2303_v58 = vpack.c.b16 %v2287_v34, %v2286_v31  ;;  %v2511_v21 = vpack.c.b16 %v2495_v35, %v2494_v24 }
 0x26f   : > { %v3674_v33 = vpop.f32.mrf.mxu2  ;;  %v1725_v37 = vrot.slane %v1723_v23, 4  ;;  %v1724_v10 = vsel %vm5302_vm5, %v4240_v12, %v1723_v23 }
 0x270   : > { %3915 = vst [vmem:[%s6003_s17 + $0x50] sm:$0xff] %v3851_v59  ;;  %v3946_v42 = vadd.f32 %v3945_v57, %v3851_v59  ;;  %v3984_v43 = vmul.f32 %v3851_v59, %v3851_v59  ;;  %v3675_v39 = vadd.f32 %v3674_v33, %v3586_v53  ;;  %v3590_v3 = vpop.f32.mrf.mxu1  ;;  %v1726_v53 = vrot.slane %v1567_v55, 5 }
 0x271   : > { %v3591_v33 = vadd.f32 %v3590_v3, %v5737_v32  ;;  %v2430_v60 = vunpack.c.l.b16 %v1724_v10 }
 0x272   : > { %v4015_v29 = vadd.f32 %v4014_v1, %v3984_v43  ;;  %v3857_v20 = vpop.f32.mrf.mxu0  ;;  %v1727_v0 = vsel %vm5302_vm5, %v1725_v37, %v1726_v53 }
 0x273   : > { %v3763_v5 = vpop.f32.mrf.mxu3 }
 0x274   : > { %v3764_v57 = vadd.f32 %v3763_v5, %v3675_v39  ;;  %3716 = vmatmul.bf16.gmra.mxu2 %v4785_v49  ;;  %v4786_v39 = vld [vmem:[#allocation2 + $0xe4] sm:$0xff]  ;;  %v2431_v49 = vunpack.c.l.b16 %v1727_v0 }
 0x276   : > { %v3853_v1 = vadd.f32 %v6118_v13, %v3764_v57  ;;  %v2447_v5 = vpack.c.b16 %v2431_v49, %v2430_v60 }
 0x277   : > { %v3677_v8 = vpop.f32.mrf.mxu2 }
 0x278   : > { %3916 = vst [vmem:[%s6003_s17 + $0x58] sm:$0xff] %v3853_v1  ;;  %v3947_v51 = vadd.f32 %v3946_v42, %v3853_v1  ;;  %v3985_v14 = vmul.f32 %v3853_v1, %v3853_v1  ;;  %3805 = vmatmul.bf16.gmra.mxu3 %v2446_v62  ;;  %v3678_v40 = vadd.f32 %v3677_v8, %v3589_v56  ;;  %v3593_v46 = vpop.f32.mrf.mxu1 }
 0x279   : > { %v3594_v32 = vadd.f32 %v3593_v46, %v5750_v61 }
 0x27a   : > { %v4016_v59 = vadd.f32 %v4015_v29, %v3985_v14  ;;  %v3860_v17 = vpop.f32.mrf.mxu0 }
 0x27b   : > { %v3766_v22 = vpop.f32.mrf.mxu3  ;;  %3632 = vmatmul.bf16.gmra.mxu1 %v2303_v58 }
 0x27c   : > { %v3767_v13 = vadd.f32 %v3766_v22, %v3678_v40 }
 0x27d   : > { %3899 = vmatmul.bf16.gmra.mxu0 %v2511_v21 }
 0x27e   : > { %v3856_v52 = vadd.f32 %v6130_v19, %v3767_v13 }
 0x27f   : > { %v3679_v54 = vpop.f32.mrf.mxu2 }
 0x280   : > { %3917 = vst [vmem:[%s6003_s17 + $0x60] sm:$0xff] %v3856_v52  ;;  %v3948_v4 = vadd.f32 %v3947_v51, %v3856_v52  ;;  %v3986_v42 = vmul.f32 %v3856_v52, %v3856_v52  ;;  %v3680_v43 = vadd.f32 %v3679_v54, %v3591_v33  ;;  %v3595_v11 = vpop.f32.mrf.mxu1 }
 0x281   : > { %v3596_v56 = vadd.f32 %v3595_v11, %v5765_v7 }
 0x282   : > { %v4017_v29 = vadd.f32 %v4016_v59, %v3986_v42  ;;  %v3862_v16 = vpop.f32.mrf.mxu0 }
 0x283   : > { %v3768_v63 = vpop.f32.mrf.mxu3 }
 0x284   : > { %v3769_v45 = vadd.f32 %v3768_v63, %v3680_v43  ;;  %3721 = vmatmul.bf16.gmra.mxu2 %v4786_v39 }
 0x286   : > { %v3858_v31 = vadd.f32 %v3857_v20, %v3769_v45 }
 0x287   : > { %v3682_v19 = vpop.f32.mrf.mxu2 }
 0x288   : > { %3918 = vst [vmem:[%s6003_s17 + $0x68] sm:$0xff] %v3858_v31  ;;  %v3949_v3 = vadd.f32 %v3948_v4, %v3858_v31  ;;  %v3987_v34 = vmul.f32 %v3858_v31, %v3858_v31  ;;  %3810 = vmatmul.bf16.gmra.mxu3 %v2447_v5  ;;  %v3683_v57 = vadd.f32 %v3682_v19, %v3594_v32  ;;  %v3598_v62 = vpop.f32.mrf.mxu1 }
 0x289   : > { %v3599_v37 = vadd.f32 %v3598_v62, %v5778_v28 }
 0x28a   : > { %v4018_v2 = vadd.f32 %v4017_v29, %v3987_v34  ;;  %v3865_v23 = vpop.f32.mrf.mxu0 }
 0x28b   : > { %v3771_v24 = vpop.f32.mrf.mxu3 }
 0x28c   : > { %v3772_v35 = vadd.f32 %v3771_v24, %v3683_v57 }
 0x28e   : > { %v3861_v1 = vadd.f32 %v3860_v17, %v3772_v35 }
 0x28f   : > { %v3684_v55 = vpop.f32.mrf.mxu2 }
 0x290   : > { %3919 = vst [vmem:[%s6003_s17 + $0x70] sm:$0xff] %v3861_v1  ;;  %v3950_v20 = vadd.f32 %v3949_v3, %v3861_v1  ;;  %v3988_v8 = vmul.f32 %v3861_v1, %v3861_v1  ;;  %v3685_v61 = vadd.f32 %v3684_v55, %v3596_v56  ;;  %v3600_v58 = vpop.f32.mrf.mxu1 }
 0x291   : > { %v3601_v33 = vadd.f32 %v3600_v58, %v5793_v50 }
 0x292   : > { %v4019_v51 = vadd.f32 %v4018_v2, %v3988_v8  ;;  %v3867_v14 = vpop.f32.mrf.mxu0 }
 0x293   : > { %v3773_v40 = vpop.f32.mrf.mxu3 }
 0x294   : > { %v3774_v46 = vadd.f32 %v3773_v40, %v3685_v61 }
 0x296   : > { %v3863_v12 = vadd.f32 %v3862_v16, %v3774_v46 }
 0x297   : > { %v3687_v53 = vpop.f32.mrf.mxu2 }
 0x298   : > { %3920 = vst [vmem:[%s6003_s17 + $0x78] sm:$0xff] %v3863_v12  ;;  %v3951_v21 = vadd.f32 %v3950_v20, %v3863_v12  ;;  %v3989_v59 = vmul.f32 %v3863_v12, %v3863_v12  ;;  %v3688_v17 = vadd.f32 %v3687_v53, %v3599_v37  ;;  %v3603_v7 = vpop.f32.mrf.mxu1 }
 0x299   : > { %v3604_v16 = vadd.f32 %v3603_v7, %v5806_v44 }
 0x29a   : > { %v4020_v22 = vadd.f32 %v4019_v51, %v3989_v59  ;;  %v3870_v13 = vpop.f32.mrf.mxu0 }
 0x29b   : > { %v3776_v10 = vpop.f32.mrf.mxu3 }
 0x29c   : > { %v3777_v0 = vadd.f32 %v3776_v10, %v3688_v17 }
 0x29e   : > { %v3866_v52 = vadd.f32 %v3865_v23, %v3777_v0 }
 0x29f   : > { %v3689_v54 = vpop.f32.mrf.mxu2 }
 0x2a0   : > { %3921 = vst [vmem:[%s6003_s17 + $0x80] sm:$0xff] %v3866_v52  ;;  %v3952_v60 = vadd.f32 %v3951_v21, %v3866_v52  ;;  %v3990_v4 = vmul.f32 %v3866_v52, %v3866_v52  ;;  %v3690_v42 = vadd.f32 %v3689_v54, %v3601_v33  ;;  %v3605_v28 = vpop.f32.mrf.mxu1 }
 0x2a1   : > { %v3606_v62 = vadd.f32 %v3605_v28, %v5821_v6 }
 0x2a2   : > { %v4021_v43 = vadd.f32 %v4020_v22, %v3990_v4  ;;  %v3872_v39 = vpop.f32.mrf.mxu0 }
 0x2a3   : > { %v3778_v49 = vpop.f32.mrf.mxu3 }
 0x2a4   : > { %v3779_v11 = vadd.f32 %v3778_v49, %v3690_v42 }
 0x2a6   : > { %v3868_v29 = vadd.f32 %v3867_v14, %v3779_v11 }
 0x2a7   : > { %v3692_v63 = vpop.f32.mrf.mxu2 }
 0x2a8   : > { %3922 = vst [vmem:[%s6003_s17 + $0x88] sm:$0xff] %v3868_v29  ;;  %v3953_v45 = vadd.f32 %v3952_v60, %v3868_v29  ;;  %v3991_v5 = vmul.f32 %v3868_v29, %v3868_v29  ;;  %v3693_v31 = vadd.f32 %v3692_v63, %v3604_v16  ;;  %v3608_v50 = vpop.f32.mrf.mxu1 }
 0x2a9   : > { %v3609_v61 = vadd.f32 %v3608_v50, %v5834_v38 }
 0x2aa   : > { %v4022_v32 = vadd.f32 %v4021_v43, %v3991_v5  ;;  %v3875_v19 = vpop.f32.mrf.mxu0 }
 0x2ab   : > { %v3781_v3 = vpop.f32.mrf.mxu3 }
 0x2ac   : > { %v3782_v34 = vadd.f32 %v3781_v3, %v3693_v31 }
 0x2ae   : > { %v3871_v57 = vadd.f32 %v3870_v13, %v3782_v34 }
 0x2af   : > { %v3694_v2 = vpop.f32.mrf.mxu2 }
 0x2b0   : > { %3923 = vst [vmem:[%s6003_s17 + $0x90] sm:$0xff] %v3871_v57  ;;  %v3954_v23 = vadd.f32 %v3953_v45, %v3871_v57  ;;  %v3992_v24 = vmul.f32 %v3871_v57, %v3871_v57  ;;  %v3695_v35 = vadd.f32 %v3694_v2, %v3606_v62  ;;  %v3610_v44 = vpop.f32.mrf.mxu1 }
 0x2b1   : > { %v3611_v59 = vadd.f32 %v3610_v44, %v5849_v27 }
 0x2b2   : > { %v4023_v1 = vadd.f32 %v4022_v32, %v3992_v24  ;;  %v3877_v56 = vpop.f32.mrf.mxu0 }
 0x2b3   : > { %v3783_v55 = vpop.f32.mrf.mxu3 }
 0x2b4   : > { %v3784_v20 = vadd.f32 %v3783_v55, %v3695_v35 }
 0x2b6   : > { %v3873_v8 = vadd.f32 %v3872_v39, %v3784_v20 }
 0x2b7   : > { %v3697_v58 = vpop.f32.mrf.mxu2 }
 0x2b8   : > { %3924 = vst [vmem:[%s6003_s17 + $0x98] sm:$0xff] %v3873_v8  ;;  %v3955_v51 = vadd.f32 %v3954_v23, %v3873_v8  ;;  %v3993_v14 = vmul.f32 %v3873_v8, %v3873_v8  ;;  %v3698_v40 = vadd.f32 %v3697_v58, %v3609_v61  ;;  %v3613_v6 = vpop.f32.mrf.mxu1 }
 0x2b9   : > { %v3614_v60 = vadd.f32 %v3613_v6, %v5862_v47 }
 0x2ba   : > { %v4024_v46 = vadd.f32 %v4023_v1, %v3993_v14  ;;  %v3880_v12 = vpop.f32.mrf.mxu0 }
 0x2bb   : > { %v3786_v37 = vpop.f32.mrf.mxu3 }
 0x2bc   : > { %v3787_v53 = vadd.f32 %v3786_v37, %v3698_v40 }
 0x2be   : > { %v3876_v21 = vadd.f32 %v3875_v19, %v3787_v53 }
 0x2bf   : > { %v3699_v17 = vpop.f32.mrf.mxu2 }
 0x2c0   : > { %3925 = vst [vmem:[%s6003_s17 + $0xa0] sm:$0xff] %v3876_v21  ;;  %v3956_v7 = vadd.f32 %v3955_v51, %v3876_v21  ;;  %v3994_v22 = vmul.f32 %v3876_v21, %v3876_v21  ;;  %v3700_v13 = vadd.f32 %v3699_v17, %v3611_v59  ;;  %v3615_v38 = vpop.f32.mrf.mxu1 }
 0x2c1   : > { %v3616_v16 = vadd.f32 %v3615_v38, %v5877_v15 }
 0x2c2   : > { %v4025_v10 = vadd.f32 %v4024_v46, %v3994_v22  ;;  %v3882_v33 = vpop.f32.mrf.mxu0 }
 0x2c3   : > { %v3788_v0 = vpop.f32.mrf.mxu3 }
 0x2c4   : > { %v3789_v52 = vadd.f32 %v3788_v0, %v3700_v13 }
 0x2c6   : > { %v3878_v54 = vadd.f32 %v3877_v56, %v3789_v52 }
 0x2c7   : > { %v3702_v4 = vpop.f32.mrf.mxu2 }
 0x2c8   : > { %3926 = vst [vmem:[%s6003_s17 + $0xa8] sm:$0xff] %v3878_v54  ;;  %v3957_v42 = vadd.f32 %v3956_v7, %v3878_v54  ;;  %v3995_v28 = vmul.f32 %v3878_v54, %v3878_v54  ;;  %v3703_v43 = vadd.f32 %v3702_v4, %v3614_v60  ;;  %v3618_v27 = vpop.f32.mrf.mxu1 }
 0x2c9   : > { %v3619_v57 = vadd.f32 %v3618_v27, %v5890_v26 }
 0x2ca   : > { %v4026_v39 = vadd.f32 %v4025_v10, %v3995_v28  ;;  %v3885_v63 = vpop.f32.mrf.mxu0 }
 0x2cb   : > { %v3791_v49 = vpop.f32.mrf.mxu3 }
 0x2cc   : > { %v3792_v11 = vadd.f32 %v3791_v49, %v3703_v43 }
 0x2ce   : > { %v3881_v29 = vadd.f32 %v3880_v12, %v3792_v11 }
 0x2cf   : > { %v3704_v45 = vpop.f32.mrf.mxu2 }
 0x2d0   : > { %3927 = vst [vmem:[%s6003_s17 + $0xb0] sm:$0xff] %v3881_v29  ;;  %v3958_v5 = vadd.f32 %v3957_v42, %v3881_v29  ;;  %v3996_v31 = vmul.f32 %v3881_v29, %v3881_v29  ;;  %v3705_v50 = vadd.f32 %v3704_v45, %v3616_v16  ;;  %v3620_v47 = vpop.f32.mrf.mxu1 }
 0x2d1   : > { %v3621_v20 = vadd.f32 %v3620_v47, %v5905_v48 }
 0x2d2   : > { %v4027_v32 = vadd.f32 %v4026_v39, %v3996_v31  ;;  %v3887_v15 = vpop.f32.mrf.mxu0 }
 0x2d3   : > { %v3793_v19 = vpop.f32.mrf.mxu3 }
 0x2d4   : > { %v3794_v3 = vadd.f32 %v3793_v19, %v3705_v50 }
 0x2d6   : > { %v3883_v34 = vadd.f32 %v3882_v33, %v3794_v3 }
 0x2d7   : > { %v3707_v62 = vpop.f32.mrf.mxu2 }
 0x2d8   : > { %3928 = vst [vmem:[%s6003_s17 + $0xb8] sm:$0xff] %v3883_v34  ;;  %v3959_v2 = vadd.f32 %v3958_v5, %v3883_v34  ;;  %v3997_v23 = vmul.f32 %v3883_v34, %v3883_v34  ;;  %v3708_v24 = vadd.f32 %v3707_v62, %v3619_v57  ;;  %v3623_v35 = vpop.f32.mrf.mxu1 }
 0x2d9   : > { %v3624_v37 = vadd.f32 %v3623_v35, %v5918_v25 }
 0x2da   : > { %v4028_v44 = vadd.f32 %v4027_v32, %v3997_v23  ;;  %v3890_v14 = vpop.f32.mrf.mxu0 }
 0x2db   : > { %v3796_v1 = vpop.f32.mrf.mxu3 }
 0x2dc   : > { %v3797_v56 = vadd.f32 %v3796_v1, %v3708_v24 }
 0x2de   : > { %v3886_v55 = vadd.f32 %v3885_v63, %v3797_v56 }
 0x2df   : > { %v3709_v8 = vpop.f32.mrf.mxu2 }
 0x2e0   : > { %3929 = vst [vmem:[%s6003_s17 + $0xc0] sm:$0xff] %v3886_v55  ;;  %v3960_v61 = vadd.f32 %v3959_v2, %v3886_v55  ;;  %v3998_v58 = vmul.f32 %v3886_v55, %v3886_v55  ;;  %v3710_v51 = vadd.f32 %v3709_v8, %v3621_v20  ;;  %v3625_v6 = vpop.f32.mrf.mxu1 }
 0x2e1   : > { %v3626_v0 = vadd.f32 %v3625_v6, %v5933_v36 }
 0x2e2   : > { %v4029_v26 = vadd.f32 %v4028_v44, %v3998_v58  ;;  %v3892_v13 = vpop.f32.mrf.mxu0 }
 0x2e3   : > { %v3798_v40 = vpop.f32.mrf.mxu3 }
 0x2e4   : > { %v3799_v46 = vadd.f32 %v3798_v40, %v3710_v51 }
 0x2e6   : > { %v3888_v12 = vadd.f32 %v3887_v15, %v3799_v46 }
 0x2e7   : > { %v3712_v53 = vpop.f32.mrf.mxu2 }
 0x2e8   : > { %3930 = vst [vmem:[%s6003_s17 + $0xc8] sm:$0xff] %v3888_v12  ;;  %v3961_v21 = vadd.f32 %v3960_v61, %v3888_v12  ;;  %v3999_v59 = vmul.f32 %v3888_v12, %v3888_v12  ;;  %v3713_v17 = vadd.f32 %v3712_v53, %v3624_v37  ;;  %v3628_v38 = vpop.f32.mrf.mxu1 }
 0x2e9   : > { %v3629_v43 = vadd.f32 %v3628_v38, %v5946_v9 }
 0x2ea   : > { %v4030_v48 = vadd.f32 %v4029_v26, %v3999_v59  ;;  %v3895_v27 = vpop.f32.mrf.mxu0 }
 0x2eb   : > { %v3801_v7 = vpop.f32.mrf.mxu3 }
 0x2ec   : > { %v3802_v22 = vadd.f32 %v3801_v7, %v3713_v17 }
 0x2ee   : > { %v3891_v10 = vadd.f32 %v3890_v14, %v3802_v22 }
 0x2ef   : > { %v3714_v52 = vpop.f32.mrf.mxu2 }
 0x2f0   : > { %3931 = vst [vmem:[%s6003_s17 + $0xd0] sm:$0xff] %v3891_v10  ;;  %v3962_v33 = vadd.f32 %v3961_v21, %v3891_v10  ;;  %v4000_v54 = vmul.f32 %v3891_v10, %v3891_v10  ;;  %v3715_v60 = vadd.f32 %v3714_v52, %v3626_v0  ;;  %v3630_v49 = vpop.f32.mrf.mxu1 }
 0x2f1   : > { %v3631_v31 = vadd.f32 %v3630_v49, %v5961_v18 }
 0x2f2   : > { %v4031_v25 = vadd.f32 %v4030_v48, %v4000_v54  ;;  %v3897_v19 = vpop.f32.mrf.mxu0  ;;  %v4043_v48 = vlaneseq }
 0x2f3   : > { %v3803_v4 = vpop.f32.mrf.mxu3 }
 0x2f4   : > { %v3804_v42 = vadd.f32 %v3803_v4, %v3715_v60  ;;  %v4044_v10 = vshrl.u32 %v4043_v48, 7 }
 0x2f6   : > { %v3893_v28 = vadd.f32 %v3892_v13, %v3804_v42  ;;  %vm4046_vm9 = vcmp.eq.s32.totalorder %v4044_v10, 1  ;;  %vm4045_vm10 = vcmp.eq.s32.totalorder %v4044_v10, 0 }
 0x2f7   : > { %v3717_v39 = vpop.f32.mrf.mxu2 }
 0x2f8   : > { %3932 = vst [vmem:[%s6003_s17 + $0xd8] sm:$0xff] %v3893_v28  ;;  %v3963_v11 = vadd.f32 %v3962_v33, %v3893_v28  ;;  %v4001_v29 = vmul.f32 %v3893_v28, %v3893_v28  ;;  %v3718_v16 = vadd.f32 %v3717_v39, %v3629_v43  ;;  %v3633_v3 = vpop.f32.mrf.mxu1 }
 0x2f9   : > { %v3634_v23 = vadd.f32 %v3633_v3, %v5974_v30 }
 0x2fa   : > { %v4032_v36 = vadd.f32 %v4031_v25, %v4001_v29  ;;  %v3900_v1 = vpop.f32.mrf.mxu0 }
 0x2fb   : > { %v3806_v63 = vpop.f32.mrf.mxu3 }
 0x2fc   : > { %v3807_v45 = vadd.f32 %v3806_v63, %v3718_v16 }
 0x2fe   : > { %v3896_v5 = vadd.f32 %v3895_v27, %v3807_v45 }
 0x2ff   : > { %v3719_v50 = vpop.f32.mrf.mxu2 }
 0x300   : > { %3933 = vst [vmem:[%s6003_s17 + $0xe0] sm:$0xff] %v3896_v5  ;;  %v3964_v47 = vadd.f32 %v3963_v11, %v3896_v5  ;;  %v4002_v32 = vmul.f32 %v3896_v5, %v3896_v5  ;;  %v3720_v9 = vadd.f32 %v3719_v50, %v3631_v31  ;;  %v3635_v55 = vpop.f32.mrf.mxu1 }
 0x301   : > { %v3636_v61 = vadd.f32 %v3635_v55, %v5989_v41 }
 0x302   : > { %v4033_v34 = vadd.f32 %v4032_v36, %v4002_v32  ;;  %v3902_v46 = vpop.f32.mrf.mxu0 }
 0x303   : > { %v3808_v57 = vpop.f32.mrf.mxu3 }
 0x304   : > { %v3809_v62 = vadd.f32 %v3808_v57, %v3720_v9 }
 0x306   : > { %v3898_v2 = vadd.f32 %v3897_v19, %v3809_v62 }
 0x307   : > { %v3722_v24 = vpop.f32.mrf.mxu2 }
 0x308   : > { %3934 = vst [vmem:[%s6003_s17 + $0xe8] sm:$0xff] %v3898_v2  ;;  %v3965_v15 = vadd.f32 %v3964_v47, %v3898_v2  ;;  %v4003_v35 = vmul.f32 %v3898_v2, %v3898_v2  ;;  %v3723_v44 = vadd.f32 %v3722_v24, %v3634_v23 }
 0x30a   : > { %v4034_v18 = vadd.f32 %v4033_v34, %v4003_v35 }
 0x30b   : > { %v3811_v56 = vpop.f32.mrf.mxu3 }
 0x30c   : > { %v3812_v20 = vadd.f32 %v3811_v56, %v3723_v44 }
 0x30e   : > { %v3901_v8 = vadd.f32 %v3900_v1, %v3812_v20 }
 0x30f   : > { %v3724_v58 = vpop.f32.mrf.mxu2 }
 0x310   : > { %3935 = vst [vmem:[%s6003_s17 + $0xf0] sm:$0xff] %v3901_v8  ;;  %v3966_v51 = vadd.f32 %v3965_v15, %v3901_v8  ;;  %v4004_v26 = vmul.f32 %v3901_v8, %v3901_v8  ;;  %v3725_v30 = vadd.f32 %v3724_v58, %v3636_v61 }
 0x312   : > { %v4035_v14 = vadd.f32 %v4034_v18, %v4004_v26 }
 0x313   : > { %v3813_v40 = vpop.f32.mrf.mxu3 }
 0x314   : > { %v3814_v6 = vadd.f32 %v3813_v40, %v3725_v30 }
 0x316   : > { %v3903_v12 = vadd.f32 %v3902_v46, %v3814_v6 }
 0x318   : > { %3936 = vst [vmem:[%s6003_s17 + $0xf8] sm:$0xff] %v3903_v12  ;;  %v3967_v37 = vadd.f32 %v3966_v51, %v3903_v12  ;;  %v4005_v53 = vmul.f32 %v3903_v12, %v3903_v12 }
 0x31a   : > { %v3968_v21 = vrot.slane %v3967_v37, 4  ;;  %v4036_v59 = vadd.f32 %v4035_v14, %v4005_v53 }
 0x31c   : > { %v3969_v17 = vadd.f32 %v3968_v21, %v3967_v37  ;;  %v4037_v41 = vrot.slane %v4036_v59, 4 }
 0x31e   : > { %v3970_v7 = vrot.slane %v3969_v17, 2  ;;  %v4038_v22 = vadd.f32 %v4037_v41, %v4036_v59 }
 0x320   : > { %v3971_v13 = vadd.f32 %v3970_v7, %v3969_v17  ;;  %v4039_v38 = vrot.slane %v4038_v22, 2 }
 0x322   : > { %v4040_v0 = vadd.f32 %v4039_v38, %v4038_v22  ;;  %v3972_v52 = vrot.slane %v3971_v13, 1 }
 0x324   : > { %v4041_v33 = vrot.slane %v4040_v0, 1  ;;  %v3973_v60 = vadd.f32 %v3972_v52, %v3971_v13 }
 0x326   : > { %v4042_v54 = vadd.f32 %v4041_v33, %v4040_v0 }
 0x328   : > { %v4047_v25 = vsel %vm4046_vm9, %v4042_v54, 0.0 }
 0x329   : > { %v4048_v4 = vsel %vm4045_vm10, %v3973_v60, %v4047_v25 }
 0x32a   : > { %4049 = vst [vmem:[%s255_s23] sm:$0xff] %v4048_v4 }
 0x32b PF: > { %s17_s18 = sadd.s32 1, %s4965_s18  }
 0x32c   : > { %p14_p8 = scmp.ge.s32.totalorder %s17_s18, 4  }
 0x32e   :  { %16 = sbr.rel (!%p14_p8) target bundleno = 1 (0x1), region = 85 }
 0x333   :  { %4086 = vsyncpa [#allocation4], 1 }
 0x334   :  { %4088 = vsyncpa [#allocation4 + $0x1], 1 }

</bundles_post_ra>
